<compile_context>
chip_gen: v5e
topology: v5e:2x2
jax: 0.10.0
libtpu: 0.0.40
codegen_flags: <defaults>
</compile_context>

<pallas_src>
import functools

import jax
import jax.numpy as jnp
from jax import lax
from jax.experimental import pallas as pl
from jax.experimental.pallas import tpu as pltpu

EPS = 1e-5
MM_DTYPE = jnp.bfloat16            # MXU input dtype; accumulation is always f32.


def _lane_shift(a, d):
    """t[:, j] = a[:, j + d] for 0 <= j + d < a.shape[1], else 0 (static d)."""
    if d == 0:
        return a
    rows, cols = a.shape
    pad = jnp.zeros((rows, abs(d)), a.dtype)
    if d > 0:
        return jnp.concatenate([a[:, d:], pad], axis=1)
    return jnp.concatenate([pad, a[:, :cols + d]], axis=1)


def _row_sums(y):
    """Per-channel sum and sum-of-squares over the lane (H*W) axis: (C, HW) -> 2x(C, 1)."""
    return (jnp.sum(y, axis=1, keepdims=True),
            jnp.sum(y * y, axis=1, keepdims=True))


# ------------------------------ stage 1: conv1 (1x1) --------------------------------
def _conv1_kernel(x_ref, w1_ref, y1_ref, s_ref, q_ref):
    # x_ref: (1, Cin, HW) f32   w1_ref: (P, Cin) bf16
    y1 = jnp.dot(w1_ref[...], x_ref[0].astype(MM_DTYPE),
                 preferred_element_type=jnp.float32)                   # (P, HW) f32
    y1_ref[0] = y1
    s_ref[0], q_ref[0] = _row_sums(y1)


# ---------------- stage 2: IBN fold + ReLU + conv2 (3x3, one deep dot) --------------
def _conv2_kernel(s1_ref, q1_ref, g1_ref, b1_ref, y1_ref, w2_ref,
                  z2_ref, s_ref, q_ref, *, nbatch, width, half_in):
    n = pl.program_id(0)
    P, HW = y1_ref.shape[1], y1_ref.shape[2]
    cnt = HW

    # IBN: InstanceNorm (per-sample stats) on channels [0, half_in), BatchNorm
    # (cross-batch stats) on the rest; folded to a single per-(n, c) scale/shift.
    mu_in = s1_ref[n] / cnt                                            # (P, 1)
    var_in = jnp.maximum(q1_ref[n] / cnt - mu_in * mu_in, 0.0)
    mu_bn = jnp.sum(s1_ref[...], axis=0) / (nbatch * cnt)
    var_bn = jnp.maximum(jnp.sum(q1_ref[...], axis=0) / (nbatch * cnt)
                         - mu_bn * mu_bn, 0.0)
    is_in = lax.broadcasted_iota(jnp.int32, (P, 1), 0) < half_in
    mu = jnp.where(is_in, mu_in, mu_bn)
    var = jnp.where(is_in, var_in, var_bn)
    scale = g1_ref[...] * lax.rsqrt(var + EPS)                         # (P, 1)
    shift = b1_ref[...] - mu * scale

    a1 = jnp.maximum(y1_ref[0] * scale + shift, 0.0).astype(MM_DTYPE)  # (P, HW) bf16

    # 3x3 conv as a single K = 9*P contraction: the nine taps are lane shifts of the
    # flattened-HW axis (zero fill handles the top/bottom image border) plus masks for
    # the left/right border, stacked along the sublane axis (im2col).
    wpos = lax.broadcasted_iota(jnp.int32, (1, HW), 1) % width
    taps = []
    for kh in range(3):
        for kw in range(3):
            t = _lane_shift(a1, (kh - 1) * width + (kw - 1))
            if kw == 0:
                t = jnp.where(wpos == 0, 0.0, t)
            elif kw == 2:
                t = jnp.where(wpos == width - 1, 0.0, t)
            taps.append(t)
    lhs = jnp.concatenate(taps, axis=0)                                # (9P, HW) bf16
    z2 = jnp.dot(w2_ref[...], lhs, preferred_element_type=jnp.float32) # (P, HW) f32
    z2_ref[0] = z2
    s_ref[0], q_ref[0] = _row_sums(z2)


# ----------------------- stage 3: bn2 fold + ReLU + conv3 (1x1) ---------------------
def _conv3_kernel(s2_ref, q2_ref, g2_ref, b2_ref, z2_ref, w3_ref,
                  y3_ref, s_ref, q_ref, *, nbatch):
    cnt = nbatch * z2_ref.shape[2]
    mu = jnp.sum(s2_ref[...], axis=0) / cnt
    var = jnp.maximum(jnp.sum(q2_ref[...], axis=0) / cnt - mu * mu, 0.0)
    scale = g2_ref[...] * lax.rsqrt(var + EPS)
    shift = b2_ref[...] - mu * scale
    a2 = jnp.maximum(z2_ref[0] * scale + shift, 0.0).astype(MM_DTYPE)  # (P, HW) bf16
    y3 = jnp.dot(w3_ref[...], a2, preferred_element_type=jnp.float32)  # (C4, HW) f32
    y3_ref[0] = y3
    s_ref[0], q_ref[0] = _row_sums(y3)


# ----------------------- stage 4: bn3 fold + residual + ReLU ------------------------
def _residual_kernel(s3_ref, q3_ref, g3_ref, b3_ref, y3_ref, x_ref, o_ref, *, nbatch):
    cnt = nbatch * y3_ref.shape[2]
    mu = jnp.sum(s3_ref[...], axis=0) / cnt
    var = jnp.maximum(jnp.sum(q3_ref[...], axis=0) / cnt - mu * mu, 0.0)
    scale = g3_ref[...] * lax.rsqrt(var + EPS)
    shift = b3_ref[...] - mu * scale
    o_ref[0] = jnp.maximum(y3_ref[0] * scale + shift + x_ref[0], 0.0)


def bottleneck_ibn_forward(x_nchw, params):
    (w1, in_g, in_b, bn1_g, bn1_b, w2, g2, b2, w3, g3, b3) = params
    N, Cin, H, W = x_nchw.shape
    P = w1.shape[0]
    half1 = P // 2
    C4 = 4 * P
    HW = H * W
    assert Cin == C4, "downsample is None: inplanes must equal planes * expansion"

    # Channel-major per-sample layout: NCHW -> (N, C, H*W) is a pure reshape.
    x = x_nchw.reshape(N, Cin, HW).astype(jnp.float32)

    # Weights reshaped / cast to bf16 once.
    w1m = w1[:, :, 0, 0].astype(MM_DTYPE)                              # (P, Cin)
    w2m = jnp.transpose(w2, (0, 2, 3, 1)).reshape(P, 9 * P).astype(MM_DTYPE)
    w3m = w3[:, :, 0, 0].astype(MM_DTYPE)                              # (C4, P)
    g1 = jnp.concatenate([in_g, bn1_g]).reshape(P, 1).astype(jnp.float32)
    b1 = jnp.concatenate([in_b, bn1_b]).reshape(P, 1).astype(jnp.float32)
    g2c = g2.reshape(P, 1).astype(jnp.float32)
    b2c = b2.reshape(P, 1).astype(jnp.float32)
    g3c = g3.reshape(C4, 1).astype(jnp.float32)
    b3c = b3.reshape(C4, 1).astype(jnp.float32)

    cp = pltpu.CompilerParams(dimension_semantics=("parallel",),
                              vmem_limit_bytes=32 * 1024 * 1024)
    f32 = jnp.float32

    def act(c):                # per-sample (C, HW) activation block (lane-dense)
        return pl.BlockSpec((1, c, HW), lambda n: (n, 0, 0))

    def vec(c):                # per-sample (C, 1) stat block
        return pl.BlockSpec((1, c, 1), lambda n: (n, 0, 0))

    def full2(r, c):           # whole 2-D array, resident across grid steps
        return pl.BlockSpec((r, c), lambda n: (0, 0))

    def full3(a, b_, c):       # whole 3-D array (cross-batch stats)
        return pl.BlockSpec((a, b_, c), lambda n: (0, 0, 0))

    # ---- stage 1: conv1 (1x1) + per-sample sum / sumsq -----------------------------
    y1, s1, q1 = pl.pallas_call(
        _conv1_kernel,
        grid=(N,),
        in_specs=[act(Cin), full2(P, Cin)],
        out_specs=(act(P), vec(P), vec(P)),
        out_shape=(jax.ShapeDtypeStruct((N, P, HW), f32),
                   jax.ShapeDtypeStruct((N, P, 1), f32),
                   jax.ShapeDtypeStruct((N, P, 1), f32)),
        compiler_params=cp,
        cost_estimate=pl.CostEstimate(
            flops=2 * N * HW * Cin * P, transcendentals=0,
            bytes_accessed=4 * N * HW * (Cin + P) + 2 * Cin * P),
    )(x, w1m)

    # ---- stage 2: IBN fold + ReLU + conv2 (3x3 as one K=9P dot) --------------------
    k2 = functools.partial(_conv2_kernel, nbatch=N, width=W, half_in=half1)
    z2, s2, q2 = pl.pallas_call(
        k2,
        grid=(N,),
        in_specs=[full3(N, P, 1), full3(N, P, 1), full2(P, 1), full2(P, 1),
                  act(P), full2(P, 9 * P)],
        out_specs=(act(P), vec(P), vec(P)),
        out_shape=(jax.ShapeDtypeStruct((N, P, HW), f32),
                   jax.ShapeDtypeStruct((N, P, 1), f32),
                   jax.ShapeDtypeStruct((N, P, 1), f32)),
        compiler_params=cp,
        cost_estimate=pl.CostEstimate(
            flops=2 * N * HW * 9 * P * P, transcendentals=0,
            bytes_accessed=4 * 2 * N * HW * P + 2 * 9 * P * P),
    )(s1, q1, g1, b1, y1, w2m)

    # ---- stage 3: bn2 fold + ReLU + conv3 (1x1) ------------------------------------
    k3 = functools.partial(_conv3_kernel, nbatch=N)
    y3, s3, q3 = pl.pallas_call(
        k3,
        grid=(N,),
        in_specs=[full3(N, P, 1), full3(N, P, 1), full2(P, 1), full2(P, 1),
                  act(P), full2(C4, P)],
        out_specs=(act(C4), vec(C4), vec(C4)),
        out_shape=(jax.ShapeDtypeStruct((N, C4, HW), f32),
                   jax.ShapeDtypeStruct((N, C4, 1), f32),
                   jax.ShapeDtypeStruct((N, C4, 1), f32)),
        compiler_params=cp,
        cost_estimate=pl.CostEstimate(
            flops=2 * N * HW * P * C4, transcendentals=0,
            bytes_accessed=4 * N * HW * (P + C4) + 2 * P * C4),
    )(s2, q2, g2c, b2c, z2, w3m)

    # ---- stage 4: bn3 fold + residual + ReLU (in place over y3's HBM buffer) -------
    k4 = functools.partial(_residual_kernel, nbatch=N)
    out = pl.pallas_call(
        k4,
        grid=(N,),
        in_specs=[full3(N, C4, 1), full3(N, C4, 1), full2(C4, 1), full2(C4, 1),
                  act(C4), act(Cin)],
        out_specs=act(C4),
        out_shape=jax.ShapeDtypeStruct((N, C4, HW), f32),
        input_output_aliases={4: 0},          # reuse y3's HBM buffer for the output
        compiler_params=cp,
        cost_estimate=pl.CostEstimate(
            flops=4 * N * C4 * HW, transcendentals=0,
            bytes_accessed=4 * 3 * N * C4 * HW),
    )(s3, q3, g3c, b3c, y3, x)

    return out.reshape(N, C4, H, W)


def _ref_forward(x_nchw, params, conv_dtype=jnp.float32):
    """Plain-JAX/XLA reference mirroring the PyTorch forward (training-mode norms).

    conv_dtype=bfloat16 gives a precision-matched reference for the kernel (bf16 MXU
    inputs, f32 accumulation); conv_dtype=float32 is the full-precision reference.
    """
    (w1, in_g, in_b, bn1_g, bn1_b, w2, g2, b2, w3, g3, b3) = params
    x = x_nchw.astype(jnp.float32)

    def conv(v, w, pad=0):
        return lax.conv_general_dilated(
            v.astype(conv_dtype), w.astype(conv_dtype), (1, 1),
            [(pad, pad), (pad, pad)],
            dimension_numbers=('NCHW', 'OIHW', 'NCHW'),
            preferred_element_type=jnp.float32,
            precision=lax.Precision.HIGHEST)

    def bn(v, g, b):
        mu = jnp.mean(v, axis=(0, 2, 3), keepdims=True)
        var = jnp.mean((v - mu) ** 2, axis=(0, 2, 3), keepdims=True)
        return (v - mu) * lax.rsqrt(var + EPS) * g[None, :, None, None] \
            + b[None, :, None, None]

    y = conv(x, w1)
    half = w1.shape[0] // 2
    ya, yb = y[:, :half], y[:, half:]
    mu = jnp.mean(ya, axis=(2, 3), keepdims=True)
    var = jnp.mean((ya - mu) ** 2, axis=(2, 3), keepdims=True)
    ya = (ya - mu) * lax.rsqrt(var + EPS) * in_g[None, :, None, None] \
        + in_b[None, :, None, None]
    yb = bn(yb, bn1_g, bn1_b)
    y = jax.nn.relu(jnp.concatenate([ya, yb], axis=1))
    y = jax.nn.relu(bn(conv(y, w2, pad=1), g2, b2))
    y = bn(conv(y, w3), g3, b3)
    return jax.nn.relu(y + x)


if __name__ == "__main__":
    N, planes, Hs, Ws = 2, 32, 16, 16
    inplanes = planes * 4            # downsample=None requires inplanes == planes * 4
    half1 = planes // 2

    key = jax.random.PRNGKey(0)
    ks = jax.random.split(key, 12)
    x = jax.random.normal(ks[0], (N, inplanes, Hs, Ws), jnp.float32)

    w1 = 0.1 * jax.random.normal(ks[1], (planes, inplanes, 1, 1), jnp.float32)
    in_g = 1.0 + 0.1 * jax.random.normal(ks[2], (half1,), jnp.float32)
    in_b = 0.1 * jax.random.normal(ks[3], (half1,), jnp.float32)
    bn1_g = 1.0 + 0.1 * jax.random.normal(ks[4], (planes - half1,), jnp.float32)
    bn1_b = 0.1 * jax.random.normal(ks[5], (planes - half1,), jnp.float32)
    w2 = 0.1 * jax.random.normal(ks[6], (planes, planes, 3, 3), jnp.float32)
    g2 = 1.0 + 0.1 * jax.random.normal(ks[7], (planes,), jnp.float32)
    b2 = 0.1 * jax.random.normal(ks[8], (planes,), jnp.float32)
    w3 = 0.1 * jax.random.normal(ks[9], (planes * 4, planes, 1, 1), jnp.float32)
    g3 = 1.0 + 0.1 * jax.random.normal(ks[10], (planes * 4,), jnp.float32)
    b3 = 0.1 * jax.random.normal(ks[11], (planes * 4,), jnp.float32)

    params = (w1, in_g, in_b, bn1_g, bn1_b, w2, g2, b2, w3, g3, b3)

    out = jax.block_until_ready(jax.jit(bottleneck_ibn_forward)(x, params))
    ref_mx = jax.block_until_ready(_ref_forward(x, params, conv_dtype=jnp.bfloat16))
    ref_f32 = jax.block_until_ready(_ref_forward(x, params, conv_dtype=jnp.float32))

    assert out.shape == (N, planes * 4, Hs, Ws)
    err_mx = float(jnp.max(jnp.abs(out - ref_mx)))    # precision-matched (bf16 matmul) ref
    err_f32 = float(jnp.max(jnp.abs(out - ref_f32)))  # full-f32 sanity ref
    assert err_mx < 2e-2, f"mismatch vs bf16-matmul reference: {err_mx}"
    assert err_f32 < 2e-1, f"mismatch vs f32 reference: {err_f32}"
    print("KERNEL_OK")
</pallas_src>

<mosaic_0001>
module attributes {stable_mosaic.version = 11 : i64} {
  func.func @_conv1_kernel(%arg0: i32, %arg1: memref<1x128x256xf32, #tpu.memory_space<vmem>>, %arg2: memref<32x128xbf16, #tpu.memory_space<vmem>>, %arg3: memref<1x32x256xf32, #tpu.memory_space<vmem>>, %arg4: memref<1x32x1xf32, #tpu.memory_space<vmem>>, %arg5: memref<1x32x1xf32, #tpu.memory_space<vmem>>) attributes {dimension_semantics = [#tpu.dimension_semantics<parallel>], iteration_bounds = array<i64: 2>, scalar_prefetch = 0 : i64, scratch_operands = 0 : i64, tpu.core_type = #tpu.core_type<tc>, window_params = [{transform_indices = @transform_0, window_bounds = array<i64: 1, 128, 256>}, {pipeline_mode = #tpu.pipeline_mode<synchronous>, transform_indices = @transform_1, window_bounds = array<i64: 32, 128>}, {transform_indices = @transform_2, window_bounds = array<i64: 1, 32, 256>}, {transform_indices = @transform_3, window_bounds = array<i64: 1, 32, 1>}, {transform_indices = @transform_4, window_bounds = array<i64: 1, 32, 1>}]} {
    %c0 = arith.constant 0 : index
    %c0_0 = arith.constant 0 : index
    %0 = vector.load %arg2[%c0, %c0_0] : memref<32x128xbf16, #tpu.memory_space<vmem>>, vector<32x128xbf16>
    %c0_1 = arith.constant 0 : index
    %c0_2 = arith.constant 0 : index
    %c0_3 = arith.constant 0 : index
    %1 = vector.load %arg1[%c0_1, %c0_2, %c0_3] : memref<1x128x256xf32, #tpu.memory_space<vmem>>, vector<1x128x256xf32>
    %2 = vector.shape_cast %1 : vector<1x128x256xf32> to vector<128x256xf32>
    %3 = arith.truncf %2 : vector<128x256xf32> to vector<128x256xbf16>
    %cst = arith.constant dense<0.000000e+00> : vector<32x256xf32>
    %4 = tpu.matmul %0, %3, %cst {dimension_numbers = #tpu.dot_dimension_numbers<[1], [0], [0], [1], [0, 0, 1, 1], [], []>} : vector<32x128xbf16>, vector<128x256xbf16>, vector<32x256xf32> -> vector<32x256xf32>
    %c0_4 = arith.constant 0 : index
    %c0_5 = arith.constant 0 : index
    %c0_6 = arith.constant 0 : index
    %5 = vector.load %arg3[%c0_4, %c0_5, %c0_6] : memref<1x32x256xf32, #tpu.memory_space<vmem>>, vector<1x32x256xf32>
    %6 = vector.shape_cast %5 : vector<1x32x256xf32> to vector<32x256xf32>
    %7 = vector.shape_cast %4 : vector<32x256xf32> to vector<1x32x256xf32>
    tpu.vector_store %arg3[%c0_4, %c0_5, %c0_6], %7 {strides = array<i32>} : memref<1x32x256xf32, #tpu.memory_space<vmem>>, vector<1x32x256xf32>,
    %cst_7 = arith.constant dense<0.000000e+00> : vector<32xf32>
    %8 = vector.multi_reduction <add>, %4, %cst_7 [1] : vector<32x256xf32> to vector<32xf32>
    %9 = vector.shape_cast %8 : vector<32xf32> to vector<32x1xf32>
    %10 = arith.mulf %4, %4 : vector<32x256xf32>
    %cst_8 = arith.constant dense<0.000000e+00> : vector<32xf32>
    %11 = vector.multi_reduction <add>, %10, %cst_8 [1] : vector<32x256xf32> to vector<32xf32>
    %12 = vector.shape_cast %11 : vector<32xf32> to vector<32x1xf32>
    %c0_9 = arith.constant 0 : index
    %c0_10 = arith.constant 0 : index
    %c0_11 = arith.constant 0 : index
    %13 = vector.load %arg4[%c0_9, %c0_10, %c0_11] : memref<1x32x1xf32, #tpu.memory_space<vmem>>, vector<1x32x1xf32>
    %14 = vector.shape_cast %13 : vector<1x32x1xf32> to vector<32x1xf32>
    %15 = vector.shape_cast %9 : vector<32x1xf32> to vector<1x32x1xf32>
    tpu.vector_store %arg4[%c0_9, %c0_10, %c0_11], %15 {strides = array<i32>} : memref<1x32x1xf32, #tpu.memory_space<vmem>>, vector<1x32x1xf32>,
    %c0_12 = arith.constant 0 : index
    %c0_13 = arith.constant 0 : index
    %c0_14 = arith.constant 0 : index
    %16 = vector.load %arg5[%c0_12, %c0_13, %c0_14] : memref<1x32x1xf32, #tpu.memory_space<vmem>>, vector<1x32x1xf32>
    %17 = vector.shape_cast %16 : vector<1x32x1xf32> to vector<32x1xf32>
    %18 = vector.shape_cast %12 : vector<32x1xf32> to vector<1x32x1xf32>
    tpu.vector_store %arg5[%c0_12, %c0_13, %c0_14], %18 {strides = array<i32>} : memref<1x32x1xf32, #tpu.memory_space<vmem>>, vector<1x32x1xf32>,
    return
  }
  func.func @transform_0(%arg0: i32) -> (i32, i32, i32) {
    %c0_i32 = arith.constant 0 : i32
    %c0_i32_0 = arith.constant 0 : i32
    %c0_i32_1 = arith.constant 0 : i32
    return %arg0, %c0_i32, %c0_i32_0 : i32, i32, i32
  }
  func.func @transform_1(%arg0: i32) -> (i32, i32) {
    %c0_i32 = arith.constant 0 : i32
    %c0_i32_0 = arith.constant 0 : i32
    %c0_i32_1 = arith.constant 0 : i32
    return %c0_i32, %c0_i32_0 : i32, i32
  }
  func.func @transform_2(%arg0: i32) -> (i32, i32, i32) {
    %c0_i32 = arith.constant 0 : i32
    %c0_i32_0 = arith.constant 0 : i32
    %c0_i32_1 = arith.constant 0 : i32
    return %arg0, %c0_i32, %c0_i32_0 : i32, i32, i32
  }
  func.func @transform_3(%arg0: i32) -> (i32, i32, i32) {
    %c0_i32 = arith.constant 0 : i32
    %c0_i32_0 = arith.constant 0 : i32
    %c0_i32_1 = arith.constant 0 : i32
    return %arg0, %c0_i32, %c0_i32_0 : i32, i32, i32
  }
  func.func @transform_4(%arg0: i32) -> (i32, i32, i32) {
    %c0_i32 = arith.constant 0 : i32
    %c0_i32_0 = arith.constant 0 : i32
    %c0_i32_1 = arith.constant 0 : i32
    return %arg0, %c0_i32, %c0_i32_0 : i32, i32, i32
  }
}

module attributes {stable_mosaic.version = 11 : i64} {
  func.func @_conv3_kernel(%arg0: i32, %arg1: memref<2x32x1xf32, #tpu.memory_space<vmem>>, %arg2: memref<2x32x1xf32, #tpu.memory_space<vmem>>, %arg3: memref<32x1xf32, #tpu.memory_space<vmem>>, %arg4: memref<32x1xf32, #tpu.memory_space<vmem>>, %arg5: memref<1x32x256xf32, #tpu.memory_space<vmem>>, %arg6: memref<128x32xbf16, #tpu.memory_space<vmem>>, %arg7: memref<1x128x256xf32, #tpu.memory_space<vmem>>, %arg8: memref<1x128x1xf32, #tpu.memory_space<vmem>>, %arg9: memref<1x128x1xf32, #tpu.memory_space<vmem>>) attributes {dimension_semantics = [#tpu.dimension_semantics<parallel>], iteration_bounds = array<i64: 2>, scalar_prefetch = 0 : i64, scratch_operands = 0 : i64, tpu.core_type = #tpu.core_type<tc>, window_params = [{pipeline_mode = #tpu.pipeline_mode<synchronous>, transform_indices = @transform_0, window_bounds = array<i64: 2, 32, 1>}, {pipeline_mode = #tpu.pipeline_mode<synchronous>, transform_indices = @transform_1, window_bounds = array<i64: 2, 32, 1>}, {pipeline_mode = #tpu.pipeline_mode<synchronous>, transform_indices = @transform_2, window_bounds = array<i64: 32, 1>}, {pipeline_mode = #tpu.pipeline_mode<synchronous>, transform_indices = @transform_3, window_bounds = array<i64: 32, 1>}, {transform_indices = @transform_4, window_bounds = array<i64: 1, 32, 256>}, {pipeline_mode = #tpu.pipeline_mode<synchronous>, transform_indices = @transform_5, window_bounds = array<i64: 128, 32>}, {transform_indices = @transform_6, window_bounds = array<i64: 1, 128, 256>}, {transform_indices = @transform_7, window_bounds = array<i64: 1, 128, 1>}, {transform_indices = @transform_8, window_bounds = array<i64: 1, 128, 1>}]} {
    %c0 = arith.constant 0 : index
    %c0_0 = arith.constant 0 : index
    %c0_1 = arith.constant 0 : index
    %0 = vector.load %arg1[%c0, %c0_0, %c0_1] : memref<2x32x1xf32, #tpu.memory_space<vmem>>, vector<2x32x1xf32>
    %cst = arith.constant dense<0.000000e+00> : vector<32x1xf32>
    %1 = vector.multi_reduction <add>, %0, %cst [0] : vector<2x32x1xf32> to vector<32x1xf32>
    %cst_2 = arith.constant 5.120000e+02 : f32
    %2 = vector.broadcast %cst_2 : f32 to vector<32x1xf32>
    %3 = arith.divf %1, %2 : vector<32x1xf32>
    %c0_3 = arith.constant 0 : index
    %c0_4 = arith.constant 0 : index
    %c0_5 = arith.constant 0 : index
    %4 = vector.load %arg2[%c0_3, %c0_4, %c0_5] : memref<2x32x1xf32, #tpu.memory_space<vmem>>, vector<2x32x1xf32>
    %cst_6 = arith.constant dense<0.000000e+00> : vector<32x1xf32>
    %5 = vector.multi_reduction <add>, %4, %cst_6 [0] : vector<2x32x1xf32> to vector<32x1xf32>
    %cst_7 = arith.constant 5.120000e+02 : f32
    %6 = vector.broadcast %cst_7 : f32 to vector<32x1xf32>
    %7 = arith.divf %5, %6 : vector<32x1xf32>
    %8 = arith.mulf %3, %3 : vector<32x1xf32>
    %9 = arith.subf %7, %8 : vector<32x1xf32>
    %cst_8 = arith.constant 0.000000e+00 : f32
    %10 = vector.broadcast %cst_8 : f32 to vector<32x1xf32>
    %11 = arith.maximumf %9, %10 : vector<32x1xf32>
    %c0_9 = arith.constant 0 : index
    %c0_10 = arith.constant 0 : index
    %12 = vector.load %arg3[%c0_9, %c0_10] : memref<32x1xf32, #tpu.memory_space<vmem>>, vector<32x1xf32>
    %cst_11 = arith.constant 9.99999974E-6 : f32
    %13 = vector.broadcast %cst_11 : f32 to vector<32x1xf32>
    %14 = arith.addf %11, %13 : vector<32x1xf32>
    %15 = math.rsqrt %14 : vector<32x1xf32>
    %16 = arith.mulf %12, %15 : vector<32x1xf32>
    %c0_12 = arith.constant 0 : index
    %c0_13 = arith.constant 0 : index
    %17 = vector.load %arg4[%c0_12, %c0_13] : memref<32x1xf32, #tpu.memory_space<vmem>>, vector<32x1xf32>
    %18 = arith.mulf %3, %16 : vector<32x1xf32>
    %19 = arith.subf %17, %18 : vector<32x1xf32>
    %c0_14 = arith.constant 0 : index
    %c0_15 = arith.constant 0 : index
    %c0_16 = arith.constant 0 : index
    %20 = vector.load %arg5[%c0_14, %c0_15, %c0_16] : memref<1x32x256xf32, #tpu.memory_space<vmem>>, vector<1x32x256xf32>
    %21 = vector.shape_cast %20 : vector<1x32x256xf32> to vector<32x256xf32>
    %22 = vector.broadcast %16 : vector<32x1xf32> to vector<32x256xf32>
    %23 = arith.mulf %21, %22 : vector<32x256xf32>
    %24 = vector.broadcast %19 : vector<32x1xf32> to vector<32x256xf32>
    %25 = arith.addf %23, %24 : vector<32x256xf32>
    %cst_17 = arith.constant 0.000000e+00 : f32
    %26 = vector.broadcast %cst_17 : f32 to vector<32x256xf32>
    %27 = arith.maximumf %25, %26 : vector<32x256xf32>
    %28 = arith.truncf %27 : vector<32x256xf32> to vector<32x256xbf16>
    %c0_18 = arith.constant 0 : index
    %c0_19 = arith.constant 0 : index
    %29 = vector.load %arg6[%c0_18, %c0_19] : memref<128x32xbf16, #tpu.memory_space<vmem>>, vector<128x32xbf16>
    %cst_20 = arith.constant dense<0.000000e+00> : vector<128x256xf32>
    %30 = tpu.matmul %29, %28, %cst_20 {dimension_numbers = #tpu.dot_dimension_numbers<[1], [0], [0], [1], [0, 0, 1, 1], [], []>} : vector<128x32xbf16>, vector<32x256xbf16>, vector<128x256xf32> -> vector<128x256xf32>
    %c0_21 = arith.constant 0 : index
    %c0_22 = arith.constant 0 : index
    %c0_23 = arith.constant 0 : index
    %31 = vector.load %arg7[%c0_21, %c0_22, %c0_23] : memref<1x128x256xf32, #tpu.memory_space<vmem>>, vector<1x128x256xf32>
    %32 = vector.shape_cast %31 : vector<1x128x256xf32> to vector<128x256xf32>
    %33 = vector.shape_cast %30 : vector<128x256xf32> to vector<1x128x256xf32>
    tpu.vector_store %arg7[%c0_21, %c0_22, %c0_23], %33 {strides = array<i32>} : memref<1x128x256xf32, #tpu.memory_space<vmem>>, vector<1x128x256xf32>,
    %cst_24 = arith.constant dense<0.000000e+00> : vector<128xf32>
    %34 = vector.multi_reduction <add>, %30, %cst_24 [1] : vector<128x256xf32> to vector<128xf32>
    %35 = vector.shape_cast %34 : vector<128xf32> to vector<128x1xf32>
    %36 = arith.mulf %30, %30 : vector<128x256xf32>
    %cst_25 = arith.constant dense<0.000000e+00> : vector<128xf32>
    %37 = vector.multi_reduction <add>, %36, %cst_25 [1] : vector<128x256xf32> to vector<128xf32>
    %38 = vector.shape_cast %37 : vector<128xf32> to vector<128x1xf32>
    %c0_26 = arith.constant 0 : index
    %c0_27 = arith.constant 0 : index
    %c0_28 = arith.constant 0 : index
    %39 = vector.load %arg8[%c0_26, %c0_27, %c0_28] : memref<1x128x1xf32, #tpu.memory_space<vmem>>, vector<1x128x1xf32>
    %40 = vector.shape_cast %39 : vector<1x128x1xf32> to vector<128x1xf32>
    %41 = vector.shape_cast %35 : vector<128x1xf32> to vector<1x128x1xf32>
    tpu.vector_store %arg8[%c0_26, %c0_27, %c0_28], %41 {strides = array<i32>} : memref<1x128x1xf32, #tpu.memory_space<vmem>>, vector<1x128x1xf32>,
    %c0_29 = arith.constant 0 : index
    %c0_30 = arith.constant 0 : index
    %c0_31 = arith.constant 0 : index
    %42 = vector.load %arg9[%c0_29, %c0_30, %c0_31] : memref<1x128x1xf32, #tpu.memory_space<vmem>>, vector<1x128x1xf32>
    %43 = vector.shape_cast %42 : vector<1x128x1xf32> to vector<128x1xf32>
    %44 = vector.shape_cast %38 : vector<128x1xf32> to vector<1x128x1xf32>
    tpu.vector_store %arg9[%c0_29, %c0_30, %c0_31], %44 {strides = array<i32>} : memref<1x128x1xf32, #tpu.memory_space<vmem>>, vector<1x128x1xf32>,
    return
  }
  func.func @transform_0(%arg0: i32) -> (i32, i32, i32) {
    %c0_i32 = arith.constant 0 : i32
    %c0_i32_0 = arith.constant 0 : i32
    %c0_i32_1 = arith.constant 0 : i32
    %c0_i32_2 = arith.constant 0 : i32
    return %c0_i32, %c0_i32_0, %c0_i32_1 : i32, i32, i32
  }
  func.func @transform_1(%arg0: i32) -> (i32, i32, i32) {
    %c0_i32 = arith.constant 0 : i32
    %c0_i32_0 = arith.constant 0 : i32
    %c0_i32_1 = arith.constant 0 : i32
    %c0_i32_2 = arith.constant 0 : i32
    return %c0_i32, %c0_i32_0, %c0_i32_1 : i32, i32, i32
  }
  func.func @transform_2(%arg0: i32) -> (i32, i32) {
    %c0_i32 = arith.constant 0 : i32
    %c0_i32_0 = arith.constant 0 : i32
    %c0_i32_1 = arith.constant 0 : i32
    return %c0_i32, %c0_i32_0 : i32, i32
  }
  func.func @transform_3(%arg0: i32) -> (i32, i32) {
    %c0_i32 = arith.constant 0 : i32
    %c0_i32_0 = arith.constant 0 : i32
    %c0_i32_1 = arith.constant 0 : i32
    return %c0_i32, %c0_i32_0 : i32, i32
  }
  func.func @transform_4(%arg0: i32) -> (i32, i32, i32) {
    %c0_i32 = arith.constant 0 : i32
    %c0_i32_0 = arith.constant 0 : i32
    %c0_i32_1 = arith.constant 0 : i32
    return %arg0, %c0_i32, %c0_i32_0 : i32, i32, i32
  }
  func.func @transform_5(%arg0: i32) -> (i32, i32) {
    %c0_i32 = arith.constant 0 : i32
    %c0_i32_0 = arith.constant 0 : i32
    %c0_i32_1 = arith.constant 0 : i32
    return %c0_i32, %c0_i32_0 : i32, i32
  }
  func.func @transform_6(%arg0: i32) -> (i32, i32, i32) {
    %c0_i32 = arith.constant 0 : i32
    %c0_i32_0 = arith.constant 0 : i32
    %c0_i32_1 = arith.constant 0 : i32
    return %arg0, %c0_i32, %c0_i32_0 : i32, i32, i32
  }
  func.func @transform_7(%arg0: i32) -> (i32, i32, i32) {
    %c0_i32 = arith.constant 0 : i32
    %c0_i32_0 = arith.constant 0 : i32
    %c0_i32_1 = arith.constant 0 : i32
    return %arg0, %c0_i32, %c0_i32_0 : i32, i32, i32
  }
  func.func @transform_8(%arg0: i32) -> (i32, i32, i32) {
    %c0_i32 = arith.constant 0 : i32
    %c0_i32_0 = arith.constant 0 : i32
    %c0_i32_1 = arith.constant 0 : i32
    return %arg0, %c0_i32, %c0_i32_0 : i32, i32, i32
  }
}

module attributes {stable_mosaic.version = 11 : i64} {
  func.func @_residual_kernel(%arg0: i32, %arg1: memref<2x128x1xf32, #tpu.memory_space<vmem>>, %arg2: memref<2x128x1xf32, #tpu.memory_space<vmem>>, %arg3: memref<128x1xf32, #tpu.memory_space<vmem>>, %arg4: memref<128x1xf32, #tpu.memory_space<vmem>>, %arg5: memref<1x128x256xf32, #tpu.memory_space<vmem>>, %arg6: memref<1x128x256xf32, #tpu.memory_space<vmem>>, %arg7: memref<1x128x256xf32, #tpu.memory_space<vmem>>) attributes {dimension_semantics = [#tpu.dimension_semantics<parallel>], iteration_bounds = array<i64: 2>, scalar_prefetch = 0 : i64, scratch_operands = 0 : i64, tpu.core_type = #tpu.core_type<tc>, window_params = [{pipeline_mode = #tpu.pipeline_mode<synchronous>, transform_indices = @transform_0, window_bounds = array<i64: 2, 128, 1>}, {pipeline_mode = #tpu.pipeline_mode<synchronous>, transform_indices = @transform_1, window_bounds = array<i64: 2, 128, 1>}, {pipeline_mode = #tpu.pipeline_mode<synchronous>, transform_indices = @transform_2, window_bounds = array<i64: 128, 1>}, {pipeline_mode = #tpu.pipeline_mode<synchronous>, transform_indices = @transform_3, window_bounds = array<i64: 128, 1>}, {transform_indices = @transform_4, window_bounds = array<i64: 1, 128, 256>}, {transform_indices = @transform_5, window_bounds = array<i64: 1, 128, 256>}, {transform_indices = @transform_6, window_bounds = array<i64: 1, 128, 256>}]} {
    %c0 = arith.constant 0 : index
    %c0_0 = arith.constant 0 : index
    %c0_1 = arith.constant 0 : index
    %0 = vector.load %arg1[%c0, %c0_0, %c0_1] : memref<2x128x1xf32, #tpu.memory_space<vmem>>, vector<2x128x1xf32>
    %cst = arith.constant dense<0.000000e+00> : vector<128x1xf32>
    %1 = vector.multi_reduction <add>, %0, %cst [0] : vector<2x128x1xf32> to vector<128x1xf32>
    %cst_2 = arith.constant 5.120000e+02 : f32
    %2 = vector.broadcast %cst_2 : f32 to vector<128x1xf32>
    %3 = arith.divf %1, %2 : vector<128x1xf32>
    %c0_3 = arith.constant 0 : index
    %c0_4 = arith.constant 0 : index
    %c0_5 = arith.constant 0 : index
    %4 = vector.load %arg2[%c0_3, %c0_4, %c0_5] : memref<2x128x1xf32, #tpu.memory_space<vmem>>, vector<2x128x1xf32>
    %cst_6 = arith.constant dense<0.000000e+00> : vector<128x1xf32>
    %5 = vector.multi_reduction <add>, %4, %cst_6 [0] : vector<2x128x1xf32> to vector<128x1xf32>
    %cst_7 = arith.constant 5.120000e+02 : f32
    %6 = vector.broadcast %cst_7 : f32 to vector<128x1xf32>
    %7 = arith.divf %5, %6 : vector<128x1xf32>
    %8 = arith.mulf %3, %3 : vector<128x1xf32>
    %9 = arith.subf %7, %8 : vector<128x1xf32>
    %cst_8 = arith.constant 0.000000e+00 : f32
    %10 = vector.broadcast %cst_8 : f32 to vector<128x1xf32>
    %11 = arith.maximumf %9, %10 : vector<128x1xf32>
    %c0_9 = arith.constant 0 : index
    %c0_10 = arith.constant 0 : index
    %12 = vector.load %arg3[%c0_9, %c0_10] : memref<128x1xf32, #tpu.memory_space<vmem>>, vector<128x1xf32>
    %cst_11 = arith.constant 9.99999974E-6 : f32
    %13 = vector.broadcast %cst_11 : f32 to vector<128x1xf32>
    %14 = arith.addf %11, %13 : vector<128x1xf32>
    %15 = math.rsqrt %14 : vector<128x1xf32>
    %16 = arith.mulf %12, %15 : vector<128x1xf32>
    %c0_12 = arith.constant 0 : index
    %c0_13 = arith.constant 0 : index
    %17 = vector.load %arg4[%c0_12, %c0_13] : memref<128x1xf32, #tpu.memory_space<vmem>>, vector<128x1xf32>
    %18 = arith.mulf %3, %16 : vector<128x1xf32>
    %19 = arith.subf %17, %18 : vector<128x1xf32>
    %c0_14 = arith.constant 0 : index
    %c0_15 = arith.constant 0 : index
    %c0_16 = arith.constant 0 : index
    %20 = vector.load %arg5[%c0_14, %c0_15, %c0_16] : memref<1x128x256xf32, #tpu.memory_space<vmem>>, vector<1x128x256xf32>
    %21 = vector.shape_cast %20 : vector<1x128x256xf32> to vector<128x256xf32>
    %22 = vector.broadcast %16 : vector<128x1xf32> to vector<128x256xf32>
    %23 = arith.mulf %21, %22 : vector<128x256xf32>
    %24 = vector.broadcast %19 : vector<128x1xf32> to vector<128x256xf32>
    %25 = arith.addf %23, %24 : vector<128x256xf32>
    %c0_17 = arith.constant 0 : index
    %c0_18 = arith.constant 0 : index
    %c0_19 = arith.constant 0 : index
    %26 = vector.load %arg6[%c0_17, %c0_18, %c0_19] : memref<1x128x256xf32, #tpu.memory_space<vmem>>, vector<1x128x256xf32>
    %27 = vector.shape_cast %26 : vector<1x128x256xf32> to vector<128x256xf32>
    %28 = arith.addf %25, %27 : vector<128x256xf32>
    %cst_20 = arith.constant 0.000000e+00 : f32
    %29 = vector.broadcast %cst_20 : f32 to vector<128x256xf32>
    %30 = arith.maximumf %28, %29 : vector<128x256xf32>
    %c0_21 = arith.constant 0 : index
    %c0_22 = arith.constant 0 : index
    %c0_23 = arith.constant 0 : index
    %31 = vector.load %arg7[%c0_21, %c0_22, %c0_23] : memref<1x128x256xf32, #tpu.memory_space<vmem>>, vector<1x128x256xf32>
    %32 = vector.shape_cast %31 : vector<1x128x256xf32> to vector<128x256xf32>
    %33 = vector.shape_cast %30 : vector<128x256xf32> to vector<1x128x256xf32>
    tpu.vector_store %arg7[%c0_21, %c0_22, %c0_23], %33 {strides = array<i32>} : memref<1x128x256xf32, #tpu.memory_space<vmem>>, vector<1x128x256xf32>,
    return
  }
  func.func @transform_0(%arg0: i32) -> (i32, i32, i32) {
    %c0_i32 = arith.constant 0 : i32
    %c0_i32_0 = arith.constant 0 : i32
    %c0_i32_1 = arith.constant 0 : i32
    %c0_i32_2 = arith.constant 0 : i32
    return %c0_i32, %c0_i32_0, %c0_i32_1 : i32, i32, i32
  }
  func.func @transform_1(%arg0: i32) -> (i32, i32, i32) {
    %c0_i32 = arith.constant 0 : i32
    %c0_i32_0 = arith.constant 0 : i32
    %c0_i32_1 = arith.constant 0 : i32
    %c0_i32_2 = arith.constant 0 : i32
    return %c0_i32, %c0_i32_0, %c0_i32_1 : i32, i32, i32
  }
  func.func @transform_2(%arg0: i32) -> (i32, i32) {
    %c0_i32 = arith.constant 0 : i32
    %c0_i32_0 = arith.constant 0 : i32
    %c0_i32_1 = arith.constant 0 : i32
    return %c0_i32, %c0_i32_0 : i32, i32
  }
  func.func @transform_3(%arg0: i32) -> (i32, i32) {
    %c0_i32 = arith.constant 0 : i32
    %c0_i32_0 = arith.constant 0 : i32
    %c0_i32_1 = arith.constant 0 : i32
    return %c0_i32, %c0_i32_0 : i32, i32
  }
  func.func @transform_4(%arg0: i32) -> (i32, i32, i32) {
    %c0_i32 = arith.constant 0 : i32
    %c0_i32_0 = arith.constant 0 : i32
    %c0_i32_1 = arith.constant 0 : i32
    return %arg0, %c0_i32, %c0_i32_0 : i32, i32, i32
  }
  func.func @transform_5(%arg0: i32) -> (i32, i32, i32) {
    %c0_i32 = arith.constant 0 : i32
    %c0_i32_0 = arith.constant 0 : i32
    %c0_i32_1 = arith.constant 0 : i32
    return %arg0, %c0_i32, %c0_i32_0 : i32, i32, i32
  }
  func.func @transform_6(%arg0: i32) -> (i32, i32, i32) {
    %c0_i32 = arith.constant 0 : i32
    %c0_i32_0 = arith.constant 0 : i32
    %c0_i32_1 = arith.constant 0 : i32
    return %arg0, %c0_i32, %c0_i32_0 : i32, i32, i32
  }
}

module attributes {stable_mosaic.version = 11 : i64} {
  func.func @_conv2_kernel(%arg0: i32, %arg1: memref<2x32x1xf32, #tpu.memory_space<vmem>>, %arg2: memref<2x32x1xf32, #tpu.memory_space<vmem>>, %arg3: memref<32x1xf32, #tpu.memory_space<vmem>>, %arg4: memref<32x1xf32, #tpu.memory_space<vmem>>, %arg5: memref<1x32x256xf32, #tpu.memory_space<vmem>>, %arg6: memref<32x288xbf16, #tpu.memory_space<vmem>>, %arg7: memref<1x32x256xf32, #tpu.memory_space<vmem>>, %arg8: memref<1x32x1xf32, #tpu.memory_space<vmem>>, %arg9: memref<1x32x1xf32, #tpu.memory_space<vmem>>) attributes {dimension_semantics = [#tpu.dimension_semantics<parallel>], iteration_bounds = array<i64: 2>, scalar_prefetch = 0 : i64, scratch_operands = 0 : i64, tpu.core_type = #tpu.core_type<tc>, window_params = [{pipeline_mode = #tpu.pipeline_mode<synchronous>, transform_indices = @transform_0, window_bounds = array<i64: 2, 32, 1>}, {pipeline_mode = #tpu.pipeline_mode<synchronous>, transform_indices = @transform_1, window_bounds = array<i64: 2, 32, 1>}, {pipeline_mode = #tpu.pipeline_mode<synchronous>, transform_indices = @transform_2, window_bounds = array<i64: 32, 1>}, {pipeline_mode = #tpu.pipeline_mode<synchronous>, transform_indices = @transform_3, window_bounds = array<i64: 32, 1>}, {transform_indices = @transform_4, window_bounds = array<i64: 1, 32, 256>}, {pipeline_mode = #tpu.pipeline_mode<synchronous>, transform_indices = @transform_5, window_bounds = array<i64: 32, 288>}, {transform_indices = @transform_6, window_bounds = array<i64: 1, 32, 256>}, {transform_indices = @transform_7, window_bounds = array<i64: 1, 32, 1>}, {transform_indices = @transform_8, window_bounds = array<i64: 1, 32, 1>}]} {
    %0 = arith.index_cast %arg0 : i32 to index
    %c0 = arith.constant 0 : index
    %c0_0 = arith.constant 0 : index
    %1 = vector.load %arg1[%0, %c0, %c0_0] : memref<2x32x1xf32, #tpu.memory_space<vmem>>, vector<1x32x1xf32>
    %2 = vector.shape_cast %1 : vector<1x32x1xf32> to vector<32x1xf32>
    %cst = arith.constant 2.560000e+02 : f32
    %3 = vector.broadcast %cst : f32 to vector<32x1xf32>
    %4 = arith.divf %2, %3 : vector<32x1xf32>
    %5 = arith.index_cast %arg0 : i32 to index
    %c0_1 = arith.constant 0 : index
    %c0_2 = arith.constant 0 : index
    %6 = vector.load %arg2[%5, %c0_1, %c0_2] : memref<2x32x1xf32, #tpu.memory_space<vmem>>, vector<1x32x1xf32>
    %7 = vector.shape_cast %6 : vector<1x32x1xf32> to vector<32x1xf32>
    %cst_3 = arith.constant 2.560000e+02 : f32
    %8 = vector.broadcast %cst_3 : f32 to vector<32x1xf32>
    %9 = arith.divf %7, %8 : vector<32x1xf32>
    %10 = arith.mulf %4, %4 : vector<32x1xf32>
    %11 = arith.subf %9, %10 : vector<32x1xf32>
    %cst_4 = arith.constant 0.000000e+00 : f32
    %12 = vector.broadcast %cst_4 : f32 to vector<32x1xf32>
    %13 = arith.maximumf %11, %12 : vector<32x1xf32>
    %c0_5 = arith.constant 0 : index
    %c0_6 = arith.constant 0 : index
    %c0_7 = arith.constant 0 : index
    %14 = vector.load %arg1[%c0_5, %c0_6, %c0_7] : memref<2x32x1xf32, #tpu.memory_space<vmem>>, vector<2x32x1xf32>
    %cst_8 = arith.constant dense<0.000000e+00> : vector<32x1xf32>
    %15 = vector.multi_reduction <add>, %14, %cst_8 [0] : vector<2x32x1xf32> to vector<32x1xf32>
    %cst_9 = arith.constant 5.120000e+02 : f32
    %16 = vector.broadcast %cst_9 : f32 to vector<32x1xf32>
    %17 = arith.divf %15, %16 : vector<32x1xf32>
    %c0_10 = arith.constant 0 : index
    %c0_11 = arith.constant 0 : index
    %c0_12 = arith.constant 0 : index
    %18 = vector.load %arg2[%c0_10, %c0_11, %c0_12] : memref<2x32x1xf32, #tpu.memory_space<vmem>>, vector<2x32x1xf32>
    %cst_13 = arith.constant dense<0.000000e+00> : vector<32x1xf32>
    %19 = vector.multi_reduction <add>, %18, %cst_13 [0] : vector<2x32x1xf32> to vector<32x1xf32>
    %cst_14 = arith.constant 5.120000e+02 : f32
    %20 = vector.broadcast %cst_14 : f32 to vector<32x1xf32>
    %21 = arith.divf %19, %20 : vector<32x1xf32>
    %22 = arith.mulf %17, %17 : vector<32x1xf32>
    %23 = arith.subf %21, %22 : vector<32x1xf32>
    %cst_15 = arith.constant 0.000000e+00 : f32
    %24 = vector.broadcast %cst_15 : f32 to vector<32x1xf32>
    %25 = arith.maximumf %23, %24 : vector<32x1xf32>
    %26 = tpu.iota {dimensions = array<i32: 0>} : vector<32x1xi32>
    %c16_i32 = arith.constant 16 : i32
    %27 = vector.broadcast %c16_i32 : i32 to vector<32x1xi32>
    %28 = arith.cmpi slt, %26, %27 : vector<32x1xi32>
    %29 = arith.select %28, %4, %17 : vector<32x1xi1>, vector<32x1xf32>
    %30 = arith.select %28, %13, %25 : vector<32x1xi1>, vector<32x1xf32>
    %c0_16 = arith.constant 0 : index
    %c0_17 = arith.constant 0 : index
    %31 = vector.load %arg3[%c0_16, %c0_17] : memref<32x1xf32, #tpu.memory_space<vmem>>, vector<32x1xf32>
    %cst_18 = arith.constant 9.99999974E-6 : f32
    %32 = vector.broadcast %cst_18 : f32 to vector<32x1xf32>
    %33 = arith.addf %30, %32 : vector<32x1xf32>
    %34 = math.rsqrt %33 : vector<32x1xf32>
    %35 = arith.mulf %31, %34 : vector<32x1xf32>
    %c0_19 = arith.constant 0 : index
    %c0_20 = arith.constant 0 : index
    %36 = vector.load %arg4[%c0_19, %c0_20] : memref<32x1xf32, #tpu.memory_space<vmem>>, vector<32x1xf32>
    %37 = arith.mulf %29, %35 : vector<32x1xf32>
    %38 = arith.subf %36, %37 : vector<32x1xf32>
    %c0_21 = arith.constant 0 : index
    %c0_22 = arith.constant 0 : index
    %c0_23 = arith.constant 0 : index
    %39 = vector.load %arg5[%c0_21, %c0_22, %c0_23] : memref<1x32x256xf32, #tpu.memory_space<vmem>>, vector<1x32x256xf32>
    %40 = vector.shape_cast %39 : vector<1x32x256xf32> to vector<32x256xf32>
    %41 = vector.broadcast %35 : vector<32x1xf32> to vector<32x256xf32>
    %42 = arith.mulf %40, %41 : vector<32x256xf32>
    %43 = vector.broadcast %38 : vector<32x1xf32> to vector<32x256xf32>
    %44 = arith.addf %42, %43 : vector<32x256xf32>
    %cst_24 = arith.constant 0.000000e+00 : f32
    %45 = vector.broadcast %cst_24 : f32 to vector<32x256xf32>
    %46 = arith.maximumf %44, %45 : vector<32x256xf32>
    %47 = arith.truncf %46 : vector<32x256xf32> to vector<32x256xbf16>
    %48 = tpu.iota {dimensions = array<i32: 1>} : vector<1x256xi32>
    %c16_i32_25 = arith.constant 16 : i32
    %c0_i32 = arith.constant 0 : i32
    %49 = arith.cmpi eq, %c16_i32_25, %c0_i32 : i32
    %c1_i32 = arith.constant 1 : i32
    %50 = arith.select %49, %c1_i32, %c16_i32_25 : i32
    %51 = vector.broadcast %50 : i32 to vector<1x256xi32>
    %52 = arith.remsi %48, %51 : vector<1x256xi32>
    %c0_i32_26 = arith.constant 0 : i32
    %53 = vector.broadcast %c0_i32_26 : i32 to vector<1x256xi32>
    %54 = arith.cmpi ne, %52, %53 : vector<1x256xi32>
    %c0_i32_27 = arith.constant 0 : i32
    %55 = vector.broadcast %c0_i32_27 : i32 to vector<1x256xi32>
    %56 = arith.cmpi slt, %52, %55 : vector<1x256xi32>
    %c0_i32_28 = arith.constant 0 : i32
    %57 = arith.cmpi slt, %50, %c0_i32_28 : i32
    %58 = vector.broadcast %57 : i1 to vector<1x256xi1>
    %59 = vector.broadcast %58 : vector<1x256xi1> to vector<1x256xi1>
    %60 = arith.xori %56, %59 : vector<1x256xi1>
    %61 = arith.andi %60, %54 : vector<1x256xi1>
    %62 = vector.broadcast %50 : i32 to vector<1x256xi32>
    %63 = arith.addi %52, %62 : vector<1x256xi32>
    %64 = arith.select %61, %63, %52 : vector<1x256xi1>, vector<1x256xi32>
    %cst_29 = arith.constant 0.000000e+00 : bf16
    %65 = vector.broadcast %cst_29 : bf16 to vector<32x17xbf16>
    %66 = vector.extract_strided_slice %47 {offsets = [0, 0], sizes = [32, 239], strides = [1, 1]} : vector<32x256xbf16> to vector<32x239xbf16>
    %67 = tpu.concatenate %65, %66 in 1 : vector<32x17xbf16>, vector<32x239xbf16> -> vector<32x256xbf16>
    %c0_i32_30 = arith.constant 0 : i32
    %68 = vector.broadcast %c0_i32_30 : i32 to vector<1x256xi32>
    %69 = arith.cmpi eq, %64, %68 : vector<1x256xi32>
    %cst_31 = arith.constant 0.000000e+00 : f32
    %70 = arith.truncf %cst_31 : f32 to bf16
    %71 = vector.shape_cast %69 : vector<1x256xi1> to vector<1x256xi1>
    %72 = vector.broadcast %71 : vector<1x256xi1> to vector<32x256xi1>
    %73 = vector.broadcast %70 : bf16 to vector<32x256xbf16>
    %74 = arith.select %72, %73, %67 : vector<32x256xi1>, vector<32x256xbf16>
    %cst_32 = arith.constant 0.000000e+00 : bf16
    %75 = vector.broadcast %cst_32 : bf16 to vector<32x16xbf16>
    %76 = vector.extract_strided_slice %47 {offsets = [0, 0], sizes = [32, 240], strides = [1, 1]} : vector<32x256xbf16> to vector<32x240xbf16>
    %77 = tpu.concatenate %75, %76 in 1 : vector<32x16xbf16>, vector<32x240xbf16> -> vector<32x256xbf16>
    %cst_33 = arith.constant 0.000000e+00 : bf16
    %78 = vector.broadcast %cst_33 : bf16 to vector<32x15xbf16>
    %79 = vector.extract_strided_slice %47 {offsets = [0, 0], sizes = [32, 241], strides = [1, 1]} : vector<32x256xbf16> to vector<32x241xbf16>
    %80 = tpu.concatenate %78, %79 in 1 : vector<32x15xbf16>, vector<32x241xbf16> -> vector<32x256xbf16>
    %c15_i32 = arith.constant 15 : i32
    %81 = vector.broadcast %c15_i32 : i32 to vector<1x256xi32>
    %82 = arith.cmpi eq, %64, %81 : vector<1x256xi32>
    %cst_34 = arith.constant 0.000000e+00 : f32
    %83 = arith.truncf %cst_34 : f32 to bf16
    %84 = vector.shape_cast %82 : vector<1x256xi1> to vector<1x256xi1>
    %85 = vector.broadcast %84 : vector<1x256xi1> to vector<32x256xi1>
    %86 = vector.broadcast %83 : bf16 to vector<32x256xbf16>
    %87 = arith.select %85, %86, %80 : vector<32x256xi1>, vector<32x256xbf16>
    %cst_35 = arith.constant 0.000000e+00 : bf16
    %88 = vector.broadcast %cst_35 : bf16 to vector<32x1xbf16>
    %89 = vector.extract_strided_slice %47 {offsets = [0, 0], sizes = [32, 255], strides = [1, 1]} : vector<32x256xbf16> to vector<32x255xbf16>
    %90 = tpu.concatenate %88, %89 in 1 : vector<32x1xbf16>, vector<32x255xbf16> -> vector<32x256xbf16>
    %c0_i32_36 = arith.constant 0 : i32
    %91 = vector.broadcast %c0_i32_36 : i32 to vector<1x256xi32>
    %92 = arith.cmpi eq, %64, %91 : vector<1x256xi32>
    %cst_37 = arith.constant 0.000000e+00 : f32
    %93 = arith.truncf %cst_37 : f32 to bf16
    %94 = vector.shape_cast %92 : vector<1x256xi1> to vector<1x256xi1>
    %95 = vector.broadcast %94 : vector<1x256xi1> to vector<32x256xi1>
    %96 = vector.broadcast %93 : bf16 to vector<32x256xbf16>
    %97 = arith.select %95, %96, %90 : vector<32x256xi1>, vector<32x256xbf16>
    %cst_38 = arith.constant 0.000000e+00 : bf16
    %98 = vector.broadcast %cst_38 : bf16 to vector<32x1xbf16>
    %99 = vector.extract_strided_slice %47 {offsets = [0, 1], sizes = [32, 255], strides = [1, 1]} : vector<32x256xbf16> to vector<32x255xbf16>
    %100 = tpu.concatenate %99, %98 in 1 : vector<32x255xbf16>, vector<32x1xbf16> -> vector<32x256xbf16>
    %c15_i32_39 = arith.constant 15 : i32
    %101 = vector.broadcast %c15_i32_39 : i32 to vector<1x256xi32>
    %102 = arith.cmpi eq, %64, %101 : vector<1x256xi32>
    %cst_40 = arith.constant 0.000000e+00 : f32
    %103 = arith.truncf %cst_40 : f32 to bf16
    %104 = vector.shape_cast %102 : vector<1x256xi1> to vector<1x256xi1>
    %105 = vector.broadcast %104 : vector<1x256xi1> to vector<32x256xi1>
    %106 = vector.broadcast %103 : bf16 to vector<32x256xbf16>
    %107 = arith.select %105, %106, %100 : vector<32x256xi1>, vector<32x256xbf16>
    %cst_41 = arith.constant 0.000000e+00 : bf16
    %108 = vector.broadcast %cst_41 : bf16 to vector<32x15xbf16>
    %109 = vector.extract_strided_slice %47 {offsets = [0, 15], sizes = [32, 241], strides = [1, 1]} : vector<32x256xbf16> to vector<32x241xbf16>
    %110 = tpu.concatenate %109, %108 in 1 : vector<32x241xbf16>, vector<32x15xbf16> -> vector<32x256xbf16>
    %c0_i32_42 = arith.constant 0 : i32
    %111 = vector.broadcast %c0_i32_42 : i32 to vector<1x256xi32>
    %112 = arith.cmpi eq, %64, %111 : vector<1x256xi32>
    %cst_43 = arith.constant 0.000000e+00 : f32
    %113 = arith.truncf %cst_43 : f32 to bf16
    %114 = vector.shape_cast %112 : vector<1x256xi1> to vector<1x256xi1>
    %115 = vector.broadcast %114 : vector<1x256xi1> to vector<32x256xi1>
    %116 = vector.broadcast %113 : bf16 to vector<32x256xbf16>
    %117 = arith.select %115, %116, %110 : vector<32x256xi1>, vector<32x256xbf16>
    %cst_44 = arith.constant 0.000000e+00 : bf16
    %118 = vector.broadcast %cst_44 : bf16 to vector<32x16xbf16>
    %119 = vector.extract_strided_slice %47 {offsets = [0, 16], sizes = [32, 240], strides = [1, 1]} : vector<32x256xbf16> to vector<32x240xbf16>
    %120 = tpu.concatenate %119, %118 in 1 : vector<32x240xbf16>, vector<32x16xbf16> -> vector<32x256xbf16>
    %cst_45 = arith.constant 0.000000e+00 : bf16
    %121 = vector.broadcast %cst_45 : bf16 to vector<32x17xbf16>
    %122 = vector.extract_strided_slice %47 {offsets = [0, 17], sizes = [32, 239], strides = [1, 1]} : vector<32x256xbf16> to vector<32x239xbf16>
    %123 = tpu.concatenate %122, %121 in 1 : vector<32x239xbf16>, vector<32x17xbf16> -> vector<32x256xbf16>
    %c15_i32_46 = arith.constant 15 : i32
    %124 = vector.broadcast %c15_i32_46 : i32 to vector<1x256xi32>
    %125 = arith.cmpi eq, %64, %124 : vector<1x256xi32>
    %cst_47 = arith.constant 0.000000e+00 : f32
    %126 = arith.truncf %cst_47 : f32 to bf16
    %127 = vector.shape_cast %125 : vector<1x256xi1> to vector<1x256xi1>
    %128 = vector.broadcast %127 : vector<1x256xi1> to vector<32x256xi1>
    %129 = vector.broadcast %126 : bf16 to vector<32x256xbf16>
    %130 = arith.select %128, %129, %123 : vector<32x256xi1>, vector<32x256xbf16>
    %131 = tpu.concatenate %74, %77, %87, %97, %47, %107, %117, %120, %130 in 0 : vector<32x256xbf16>, vector<32x256xbf16>, vector<32x256xbf16>, vector<32x256xbf16>, vector<32x256xbf16>, vector<32x256xbf16>, vector<32x256xbf16>, vector<32x256xbf16>, vector<32x256xbf16> -> vector<288x256xbf16>
    %c0_48 = arith.constant 0 : index
    %c0_49 = arith.constant 0 : index
    %132 = vector.load %arg6[%c0_48, %c0_49] : memref<32x288xbf16, #tpu.memory_space<vmem>>, vector<32x288xbf16>
    %cst_50 = arith.constant dense<0.000000e+00> : vector<32x256xf32>
    %133 = tpu.matmul %132, %131, %cst_50 {dimension_numbers = #tpu.dot_dimension_numbers<[1], [0], [0], [1], [0, 0, 1, 1], [], []>} : vector<32x288xbf16>, vector<288x256xbf16>, vector<32x256xf32> -> vector<32x256xf32>
    %c0_51 = arith.constant 0 : index
    %c0_52 = arith.constant 0 : index
    %c0_53 = arith.constant 0 : index
    %134 = vector.load %arg7[%c0_51, %c0_52, %c0_53] : memref<1x32x256xf32, #tpu.memory_space<vmem>>, vector<1x32x256xf32>
    %135 = vector.shape_cast %134 : vector<1x32x256xf32> to vector<32x256xf32>
    %136 = vector.shape_cast %133 : vector<32x256xf32> to vector<1x32x256xf32>
    tpu.vector_store %arg7[%c0_51, %c0_52, %c0_53], %136 {strides = array<i32>} : memref<1x32x256xf32, #tpu.memory_space<vmem>>, vector<1x32x256xf32>,
    %cst_54 = arith.constant dense<0.000000e+00> : vector<32xf32>
    %137 = vector.multi_reduction <add>, %133, %cst_54 [1] : vector<32x256xf32> to vector<32xf32>
    %138 = vector.shape_cast %137 : vector<32xf32> to vector<32x1xf32>
    %139 = arith.mulf %133, %133 : vector<32x256xf32>
    %cst_55 = arith.constant dense<0.000000e+00> : vector<32xf32>
    %140 = vector.multi_reduction <add>, %139, %cst_55 [1] : vector<32x256xf32> to vector<32xf32>
    %141 = vector.shape_cast %140 : vector<32xf32> to vector<32x1xf32>
    %c0_56 = arith.constant 0 : index
    %c0_57 = arith.constant 0 : index
    %c0_58 = arith.constant 0 : index
    %142 = vector.load %arg8[%c0_56, %c0_57, %c0_58] : memref<1x32x1xf32, #tpu.memory_space<vmem>>, vector<1x32x1xf32>
    %143 = vector.shape_cast %142 : vector<1x32x1xf32> to vector<32x1xf32>
    %144 = vector.shape_cast %138 : vector<32x1xf32> to vector<1x32x1xf32>
    tpu.vector_store %arg8[%c0_56, %c0_57, %c0_58], %144 {strides = array<i32>} : memref<1x32x1xf32, #tpu.memory_space<vmem>>, vector<1x32x1xf32>,
    %c0_59 = arith.constant 0 : index
    %c0_60 = arith.constant 0 : index
    %c0_61 = arith.constant 0 : index
    %145 = vector.load %arg9[%c0_59, %c0_60, %c0_61] : memref<1x32x1xf32, #tpu.memory_space<vmem>>, vector<1x32x1xf32>
    %146 = vector.shape_cast %145 : vector<1x32x1xf32> to vector<32x1xf32>
    %147 = vector.shape_cast %141 : vector<32x1xf32> to vector<1x32x1xf32>
    tpu.vector_store %arg9[%c0_59, %c0_60, %c0_61], %147 {strides = array<i32>} : memref<1x32x1xf32, #tpu.memory_space<vmem>>, vector<1x32x1xf32>,
    return
  }
  func.func @transform_0(%arg0: i32) -> (i32, i32, i32) {
    %c0_i32 = arith.constant 0 : i32
    %c0_i32_0 = arith.constant 0 : i32
    %c0_i32_1 = arith.constant 0 : i32
    %c0_i32_2 = arith.constant 0 : i32
    return %c0_i32, %c0_i32_0, %c0_i32_1 : i32, i32, i32
  }
  func.func @transform_1(%arg0: i32) -> (i32, i32, i32) {
    %c0_i32 = arith.constant 0 : i32
    %c0_i32_0 = arith.constant 0 : i32
    %c0_i32_1 = arith.constant 0 : i32
    %c0_i32_2 = arith.constant 0 : i32
    return %c0_i32, %c0_i32_0, %c0_i32_1 : i32, i32, i32
  }
  func.func @transform_2(%arg0: i32) -> (i32, i32) {
    %c0_i32 = arith.constant 0 : i32
    %c0_i32_0 = arith.constant 0 : i32
    %c0_i32_1 = arith.constant 0 : i32
    return %c0_i32, %c0_i32_0 : i32, i32
  }
  func.func @transform_3(%arg0: i32) -> (i32, i32) {
    %c0_i32 = arith.constant 0 : i32
    %c0_i32_0 = arith.constant 0 : i32
    %c0_i32_1 = arith.constant 0 : i32
    return %c0_i32, %c0_i32_0 : i32, i32
  }
  func.func @transform_4(%arg0: i32) -> (i32, i32, i32) {
    %c0_i32 = arith.constant 0 : i32
    %c0_i32_0 = arith.constant 0 : i32
    %c0_i32_1 = arith.constant 0 : i32
    return %arg0, %c0_i32, %c0_i32_0 : i32, i32, i32
  }
  func.func @transform_5(%arg0: i32) -> (i32, i32) {
    %c0_i32 = arith.constant 0 : i32
    %c0_i32_0 = arith.constant 0 : i32
    %c0_i32_1 = arith.constant 0 : i32
    return %c0_i32, %c0_i32_0 : i32, i32
  }
  func.func @transform_6(%arg0: i32) -> (i32, i32, i32) {
    %c0_i32 = arith.constant 0 : i32
    %c0_i32_0 = arith.constant 0 : i32
    %c0_i32_1 = arith.constant 0 : i32
    return %arg0, %c0_i32, %c0_i32_0 : i32, i32, i32
  }
  func.func @transform_7(%arg0: i32) -> (i32, i32, i32) {
    %c0_i32 = arith.constant 0 : i32
    %c0_i32_0 = arith.constant 0 : i32
    %c0_i32_1 = arith.constant 0 : i32
    return %arg0, %c0_i32, %c0_i32_0 : i32, i32, i32
  }
  func.func @transform_8(%arg0: i32) -> (i32, i32, i32) {
    %c0_i32 = arith.constant 0 : i32
    %c0_i32_0 = arith.constant 0 : i32
    %c0_i32_1 = arith.constant 0 : i32
    return %arg0, %c0_i32, %c0_i32_0 : i32, i32, i32
  }
}

</mosaic_0001>

<bundles_post_ra>
// kernel: bottleneck_ibn_forward.4
= control target key start
LH: loop header
LB: loop body
LE: loop exit
PB: predicated region body
PF: predicated region fallthrough
CT: control target
= control target key end

     0   :  { %s581_s15 = smov 0   ;;  %s667_s0 = inlined_call_operand.vmem [shape: f32[2,128,256], index: 0, kind: input, shape index: {}]   ;;  %s668_s1 = inlined_call_operand.vmem [shape: bf16[32,128], index: 1, kind: input, shape index: {}]   ;;  %s669_s2 = inlined_call_operand.vmem [shape: f32[2,32,256], index: 2, kind: output, shape index: {0}]   ;;  %s670_s3 = inlined_call_operand.vmem [shape: f32[2,32,1], index: 3, kind: output, shape index: {1}]   ;;  %s671_s4 = inlined_call_operand.vmem [shape: f32[2,32,1], index: 4, kind: output, shape index: {2}]  }
   0x1 LB: > { %s495_s16 = sadd.s32 4294967295, %s554_s15   ;;  %p499_p0 = scmp.ge.s32.totalorder %s554_s15, 1  ;;  %s554_s15 = sphi %s581_s15, %s15_s15  }
   0x2   : > { %p167_p1 = scmp.lt.s32.totalorder %s554_s15, 3 }
   0x4   : > { %p168_p2 = pnand %p499_p0, %p167_p1 }
   0x5   : > { %p203_p3 = scmp.lt.s32.totalorder (!%p168_p2), %s495_s16, 1 }
   0x6   : > { %171 = sbr.rel (%p168_p2) target bundleno = 316 (0x13c), region = 28 }
   0xb   : > { %s673_s16 = smov (!%p203_p3, %s495_s16), 1  ;;  %v522_v48 = vld [vmem:[%s668_s1] sm:$0xff]  ;;  %v523_v49 = vld [vmem:[%s668_s1 + $0x8] sm:$0xff]  ;;  %vm365_vm0 = vcmask 7168  }
   0xc   : > { %s518_s17 = sshll.u32 %s673_s16, 8  ;;  %s519_s25 = sshll.u32 %s673_s16, 6 }
   0xd   : > { %s595_s20 = scalar_lea.vmem %s667_s0, %s518_s17  ;;  %s639_s28 = scalar_lea.vmem %s669_s2, %s519_s25 }
   0xe   : > { %v255_v0 = vld [vmem:[%s595_s20 + $0xe0] sm:$0xff]  ;;  %v257_v1 = vld [vmem:[%s595_s20 + $0xf0] sm:$0xff]  ;;  %v256_v2 = vld [vmem:[%s595_s20 + $0xe8] sm:$0xff]  ;;  %s520_s29 = sshll.u32 %s673_s16, 5 }
   0xf   : > { %v273_v3 = vpack.c.bf16 %v257_v1, %v255_v0  ;;  %v258_v4 = vld [vmem:[%s595_s20 + $0xf8] sm:$0xff]  ;;  %v251_v5 = vld [vmem:[%s595_s20 + $0xc0] sm:$0xff]  ;;  %v253_v6 = vld [vmem:[%s595_s20 + $0xd0] sm:$0xff]  ;;  %s217_s6 = scalar_lea.vmem %s670_s3, %s520_s29  ;;  %s222_s9 = scalar_lea.vmem %s671_s4, %s520_s29 }
  0x10   : > { %v274_v7 = vpack.c.bf16 %v258_v4, %v256_v2  ;;  %v252_v8 = vld [vmem:[%s595_s20 + $0xc8] sm:$0xff]  ;;  %v254_v9 = vld [vmem:[%s595_s20 + $0xd8] sm:$0xff]  ;;  %v271_v10 = vpack.c.bf16 %v253_v6, %v251_v5  ;;  %v247_v12 = vld [vmem:[%s595_s20 + $0xa0] sm:$0xff] }
  0x11   : > { %287 = vmatpush.bf16.msra.mxu0 %v273_v3  ;;  %524 = vmatpush.bf16.msra.mxu2 %v273_v3  ;;  %v272_v11 = vpack.c.bf16 %v254_v9, %v252_v8  ;;  %v249_v13 = vld [vmem:[%s595_s20 + $0xb0] sm:$0xff]  ;;  %v248_v14 = vld [vmem:[%s595_s20 + $0xa8] sm:$0xff]  ;;  %v250_v15 = vld [vmem:[%s595_s20 + $0xb8] sm:$0xff] }
  0x12   : > { %306 = vmatpush.bf16.msra.mxu1 %v274_v7  ;;  %532 = vmatpush.bf16.msra.mxu3 %v274_v7  ;;  %v269_v16 = vpack.c.bf16 %v249_v13, %v247_v12  ;;  %v270_v17 = vpack.c.bf16 %v250_v15, %v248_v14  ;;  %v243_v18 = vld [vmem:[%s595_s20 + $0x80] sm:$0xff]  ;;  %v245_v19 = vld [vmem:[%s595_s20 + $0x90] sm:$0xff]  ;;  %v244_v20 = vld [vmem:[%s595_s20 + $0x88] sm:$0xff] }
  0x13   : > { %v246_v21 = vld [vmem:[%s595_s20 + $0x98] sm:$0xff]  ;;  %v267_v22 = vpack.c.bf16 %v245_v19, %v243_v18  ;;  %v239_v24 = vld [vmem:[%s595_s20 + $0x60] sm:$0xff]  ;;  %v241_v25 = vld [vmem:[%s595_s20 + $0x70] sm:$0xff] }
  0x14   : > { %v268_v23 = vpack.c.bf16 %v246_v21, %v244_v20  ;;  %v240_v26 = vld [vmem:[%s595_s20 + $0x68] sm:$0xff]  ;;  %v242_v27 = vld [vmem:[%s595_s20 + $0x78] sm:$0xff]  ;;  %v265_v28 = vpack.c.bf16 %v241_v25, %v239_v24  ;;  %v235_v30 = vld [vmem:[%s595_s20 + $0x40] sm:$0xff] }
  0x15   : > { %288 = vmatpush.bf16.msra.mxu0 %v271_v10  ;;  %525 = vmatpush.bf16.msra.mxu2 %v271_v10  ;;  %v266_v29 = vpack.c.bf16 %v242_v27, %v240_v26  ;;  %v237_v31 = vld [vmem:[%s595_s20 + $0x50] sm:$0xff]  ;;  %v236_v32 = vld [vmem:[%s595_s20 + $0x48] sm:$0xff]  ;;  %v238_v33 = vld [vmem:[%s595_s20 + $0x58] sm:$0xff] }
  0x16   : > { %307 = vmatpush.bf16.msra.mxu1 %v272_v11  ;;  %533 = vmatpush.bf16.msra.mxu3 %v272_v11  ;;  %v263_v34 = vpack.c.bf16 %v237_v31, %v235_v30  ;;  %v264_v35 = vpack.c.bf16 %v238_v33, %v236_v32  ;;  %v231_v36 = vld [vmem:[%s595_s20 + $0x20] sm:$0xff]  ;;  %v233_v37 = vld [vmem:[%s595_s20 + $0x30] sm:$0xff]  ;;  %v232_v38 = vld [vmem:[%s595_s20 + $0x28] sm:$0xff] }
  0x17   : > { %v234_v39 = vld [vmem:[%s595_s20 + $0x38] sm:$0xff]  ;;  %v261_v40 = vpack.c.bf16 %v233_v37, %v231_v36  ;;  %v227_v42 = vld [vmem:[%s595_s20] sm:$0xff]  ;;  %v229_v43 = vld [vmem:[%s595_s20 + $0x10] sm:$0xff] }
  0x18   : > { %v262_v41 = vpack.c.bf16 %v234_v39, %v232_v38  ;;  %v228_v44 = vld [vmem:[%s595_s20 + $0x8] sm:$0xff]  ;;  %v230_v45 = vld [vmem:[%s595_s20 + $0x18] sm:$0xff]  ;;  %v259_v46 = vpack.c.bf16 %v229_v43, %v227_v42 }
  0x19   : > { %289 = vmatpush.bf16.msra.mxu0 %v269_v16  ;;  %526 = vmatpush.bf16.msra.mxu2 %v269_v16  ;;  %v260_v47 = vpack.c.bf16 %v230_v45, %v228_v44 }
  0x1a   : > { %308 = vmatpush.bf16.msra.mxu1 %v270_v17  ;;  %534 = vmatpush.bf16.msra.mxu3 %v270_v17 }
  0x1d   : > { %290 = vmatpush.bf16.msra.mxu0 %v267_v22  ;;  %527 = vmatpush.bf16.msra.mxu2 %v267_v22 }
  0x1e   : > { %309 = vmatpush.bf16.msra.mxu1 %v268_v23  ;;  %535 = vmatpush.bf16.msra.mxu3 %v268_v23 }
  0x21   : > { %291 = vmatpush.bf16.msra.mxu0 %v265_v28  ;;  %528 = vmatpush.bf16.msra.mxu2 %v265_v28 }
  0x22   : > { %310 = vmatpush.bf16.msra.mxu1 %v266_v29  ;;  %536 = vmatpush.bf16.msra.mxu3 %v266_v29 }
  0x25   : > { %292 = vmatpush.bf16.msra.mxu0 %v263_v34  ;;  %529 = vmatpush.bf16.msra.mxu2 %v263_v34 }
  0x26   : > { %311 = vmatpush.bf16.msra.mxu1 %v264_v35  ;;  %537 = vmatpush.bf16.msra.mxu3 %v264_v35 }
  0x29   : > { %293 = vmatpush.bf16.msra.mxu0 %v261_v40  ;;  %530 = vmatpush.bf16.msra.mxu2 %v261_v40 }
  0x2a   : > { %312 = vmatpush.bf16.msra.mxu1 %v262_v41  ;;  %538 = vmatpush.bf16.msra.mxu3 %v262_v41 }
  0x2d   : > { %294 = vmatpush.bf16.msra.mxu0 %v259_v46  ;;  %531 = vmatpush.bf16.msra.mxu2 %v259_v46 }
  0x2e   : > { %313 = vmatpush.bf16.msra.mxu1 %v260_v47  ;;  %539 = vmatpush.bf16.msra.mxu3 %v260_v47 }
  0x30   : > { %295 = vmatmul.bf16.vlgmr.msra.gmra.mxu0 %v522_v48  ;;  %300 = vmatmul.bf16.vlgmr.msra.gmra.mxu2 %v523_v49 }
  0x31   : > { %314 = vmatmul.bf16.vlgmr.msra.gmra.mxu1 %v522_v48  ;;  %319 = vmatmul.bf16.vlgmr.msra.gmra.mxu3 %v523_v49 }
  0xad   : > { %v296_v50 = vpop.f32.mrf.mxu0 }
  0xae   : > { %325 = vst [vmem:[%s639_s28] sm:$0xff] %v296_v50  ;;  %v315_v51 = vpop.f32.mrf.mxu1  ;;  %v345_v52 = vmul.f32 %v296_v50, %v296_v50 }
  0xaf   : > { %326 = vst [vmem:[%s639_s28 + $0x8] sm:$0xff] %v315_v51  ;;  %v333_v53 = vadd.f32 %v315_v51, %v296_v50  ;;  %v346_v54 = vmul.f32 %v315_v51, %v315_v51 }
  0xb1   : > { %334 = vadd.xlane.f32.xlu0 %v333_v53  ;;  %v353_v55 = vadd.f32 %v346_v54, %v345_v52 }
  0xb3   : > { %354 = vadd.xlane.f32.xlu2 %v353_v55  ;;  %v301_v56 = vpop.f32.mrf.mxu2 }
  0xb4   : > { %329 = vst [vmem:[%s639_s28 + $0x20] sm:$0xff] %v301_v56  ;;  %v320_v57 = vpop.f32.mrf.mxu3  ;;  %v349_v2 = vmul.f32 %v301_v56, %v301_v56 }
  0xb5   : > { %330 = vst [vmem:[%s639_s28 + $0x28] sm:$0xff] %v320_v57  ;;  %v298_v58 = vpop.f32.mrf.mxu0  ;;  %v339_v59 = vadd.f32 %v320_v57, %v301_v56  ;;  %v350_v3 = vmul.f32 %v320_v57, %v320_v57 }
  0xb6   : > { %327 = vst [vmem:[%s639_s28 + $0x10] sm:$0xff] %v298_v58  ;;  %v347_v60 = vmul.f32 %v298_v58, %v298_v58  ;;  %v317_v61 = vpop.f32.mrf.mxu1 }
  0xb7   : > { %328 = vst [vmem:[%s639_s28 + $0x18] sm:$0xff] %v317_v61  ;;  %v348_v62 = vmul.f32 %v317_v61, %v317_v61  ;;  %340 = vadd.xlane.f32.xlu1 %v339_v59  ;;  %v336_v63 = vadd.f32 %v317_v61, %v298_v58  ;;  %v359_v6 = vadd.f32 %v350_v3, %v349_v2 }
  0xb9   : > { %337 = vadd.xlane.f32.xlu0 %v336_v63  ;;  %v356_v0 = vadd.f32 %v348_v62, %v347_v60 }
  0xbb   : > { %357 = vadd.xlane.f32.xlu2 %v356_v0  ;;  %v303_v1 = vpop.f32.mrf.mxu2 }
  0xbc   : > { %331 = vst [vmem:[%s639_s28 + $0x30] sm:$0xff] %v303_v1  ;;  %v322_v4 = vpop.f32.mrf.mxu3  ;;  %v351_v7 = vmul.f32 %v303_v1, %v303_v1 }
  0xbd   : > { %332 = vst [vmem:[%s639_s28 + $0x38] sm:$0xff] %v322_v4  ;;  %v342_v5 = vadd.f32 %v322_v4, %v303_v1  ;;  %v352_v8 = vmul.f32 %v322_v4, %v322_v4 }
  0xbf   : > { %343 = vadd.xlane.f32.xlu1 %v342_v5  ;;  %v362_v9 = vadd.f32 %v352_v8, %v351_v7 }
  0xc1   : > { %360 = vadd.xlane.f32.xlu0 %v359_v6 }
  0xc7   : > { %363 = vadd.xlane.f32.xlu1 %v362_v9 }
 0x124   : > { %v335_v10 = vpop.xlane.xlu0 %334 }
 0x125   : > { %366 = vst.msk [vmem:[%s217_s6] sm:$0xff] %vm365_vm0, %v335_v10 }
 0x126   : > { %v355_v11 = vpop.xlane.xlu2 %354 }
 0x127   : > { %370 = vst.msk [vmem:[%s222_s9] sm:$0xff] %vm365_vm0, %v355_v11 }
 0x12a   : > { %v341_v12 = vpop.xlane.xlu1 %340 }
 0x12b   : > { %368 = vst.msk [vmem:[%s217_s6 + $0x10] sm:$0xff] %vm365_vm0, %v341_v12 }
 0x12c   : > { %v338_v13 = vpop.xlane.xlu0 %337 }
 0x12d   : > { %367 = vst.msk [vmem:[%s217_s6 + $0x8] sm:$0xff] %vm365_vm0, %v338_v13 }
 0x12e   : > { %v358_v14 = vpop.xlane.xlu2 %357 }
 0x12f   : > { %371 = vst.msk [vmem:[%s222_s9 + $0x8] sm:$0xff] %vm365_vm0, %v358_v14 }
 0x132   : > { %v344_v15 = vpop.xlane.xlu1 %343 }
 0x133   : > { %369 = vst.msk [vmem:[%s217_s6 + $0x18] sm:$0xff] %vm365_vm0, %v344_v15 }
 0x134   : > { %v361_v16 = vpop.xlane.xlu0 %360 }
 0x135   : > { %372 = vst.msk [vmem:[%s222_s9 + $0x10] sm:$0xff] %vm365_vm0, %v361_v16 }
 0x13a   : > { %v364_v17 = vpop.xlane.xlu1 %363 }
 0x13b   : > { %373 = vst.msk [vmem:[%s222_s9 + $0x18] sm:$0xff] %vm365_vm0, %v364_v17 }
 0x13c PF: > { %s15_s15 = sadd.s32 1, %s554_s15  }
 0x13d   : > { %p12_p4 = scmp.ge.s32.totalorder %s15_s15, 4  }
 0x13f   :  { %14 = sbr.rel (!%p12_p4) target bundleno = 1 (0x1), region = 82 }

// kernel: bottleneck_ibn_forward.5
= control target key start
LH: loop header
LB: loop body
LE: loop exit
PB: predicated region body
PF: predicated region fallthrough
CT: control target
= control target key end

     0   :  { %s1366_s27 = smov 0   ;;  %s1739_s0 = inlined_call_operand.vmem [shape: f32[2,32,1], index: 0, kind: input, shape index: {}]   ;;  %s1740_s1 = inlined_call_operand.vmem [shape: f32[2,32,1], index: 1, kind: input, shape index: {}]   ;;  %s1741_s2 = inlined_call_operand.vmem [shape: f32[32,1], index: 2, kind: input, shape index: {}]   ;;  %s1742_s3 = inlined_call_operand.vmem [shape: f32[32,1], index: 3, kind: input, shape index: {}]   ;;  %s1743_s4 = inlined_call_operand.vmem [shape: f32[2,32,256], index: 4, kind: input, shape index: {}]   ;;  %s1744_s5 = inlined_call_operand.vmem [shape: bf16[32,288], index: 5, kind: input, shape index: {}]   ;;  %s1745_s6 = inlined_call_operand.vmem [shape: f32[2,32,256], index: 6, kind: output, shape index: {0}]   ;;  %s1746_s7 = inlined_call_operand.vmem [shape: f32[2,32,1], index: 7, kind: output, shape index: {1}]   ;;  %s1747_s8 = inlined_call_operand.vmem [shape: f32[2,32,1], index: 8, kind: output, shape index: {2}]  }
   0x1 LB: > { %s1372_s28 = sadd.s32 4294967295, %s1308_s27   ;;  %p1212_p0 = scmp.ge.s32.totalorder %s1308_s27, 1  ;;  %s1308_s27 = sphi %s1366_s27, %s19_s27  }
   0x2   : > { %p267_p1 = scmp.lt.s32.totalorder %s1308_s27, 3 }
   0x4   : > { %p268_p2 = pnand %p1212_p0, %p267_p1 }
   0x5   : > { %s1221_s23 = sshll.u32 (!%p268_p2), %s1372_s28, 5  ;;  %p311_p3 = scmp.lt.s32.totalorder (!%p268_p2), %s1372_s28, 1 }
   0x6   : > { %271 = sbr.rel (%p268_p2) target bundleno = 690 (0x2b2), region = 44  ;;  %s335_s26 = scalar_lea.vmem (!%p268_p2), %s1739_s0, %s1221_s23 }
   0x7   : > { %s351_s9 = scalar_lea.vmem (!%p268_p2), %s1740_s1, %s1221_s23  ;;  %s1313_s10 = smov (!%p268_p2), 111  }
   0x8   : > { %s1314_s11 = smov (!%p268_p2), 1   ;;  %s1315_s12 = smov (!%p268_p2), 112  }
   0x9   : > { %s1316_s13 = smov (!%p268_p2), 15   ;;  %s1317_s14 = smov (!%p268_p2), 113  }
   0xa   : > { %s1318_s15 = smov (!%p268_p2), 127   ;;  %s1319_s16 = smov (!%p268_p2), 16  }
   0xb   : > { %v1310_v0 = vmov 0   ;;  %v1311_v1 = vmov 512.0   ;;  %v374_v2 = vld [vmem:[%s1739_s0 + $0x10] sm:$0xff]  ;;  %vm380_vm0 = vcmask 7168   ;;  %v1312_v4 = vmov 256.0   ;;  %v375_v7 = vld [vmem:[%s1739_s0 + $0x18] sm:$0xff] }
   0xc   : > { %1287 = vset.pattern.permute.xlu0 %v1310_v0  ;;  %1290 = vrcp.f32 %v1311_v1  ;;  %1289 = vset.pattern.permute.xlu1 %v1310_v0  ;;  %v378_v3 = vld [vmem:[%s1739_s0 + $0x30] sm:$0xff]  ;;  %v379_v9 = vld [vmem:[%s1739_s0 + $0x38] sm:$0xff]  ;;  %v387_v12 = vsel %vm380_vm0, %v374_v2, 0.0  ;;  %v390_v17 = vsel %vm380_vm0, %v375_v7, 0.0  ;;  %v336_v37 = vld [vmem:[%s335_s26] sm:$0xff]  ;;  %s1761_s28 = smov (!%p311_p3, %s1372_s28), 1 }
   0xd   : > { %1288 = vset.pattern.permute.xlu2 %v1310_v0  ;;  %1292 = vrcp.f32 %v1312_v4  ;;  %v406_v5 = vld [vmem:[%s1740_s1 + $0x10] sm:$0xff]  ;;  %v407_v10 = vld [vmem:[%s1740_s1 + $0x18] sm:$0xff]  ;;  %v388_v14 = vsel %vm380_vm0, %v378_v3, 0.0  ;;  %v391_v19 = vsel %vm380_vm0, %v379_v9, 0.0  ;;  %v352_v39 = vld [vmem:[%s351_s9] sm:$0xff]  ;;  %s1320_s17 = smov 17  }
   0xe   : > { %v410_v6 = vld [vmem:[%s1740_s1 + $0x30] sm:$0xff]  ;;  %v411_v11 = vld [vmem:[%s1740_s1 + $0x38] sm:$0xff]  ;;  %v418_v15 = vsel %vm380_vm0, %v406_v5, 0.0  ;;  %v421_v20 = vsel %vm380_vm0, %v407_v10, 0.0  ;;  %v389_v23 = vadd.f32 %v388_v14, %v387_v12  ;;  %v392_v27 = vadd.f32 %v391_v19, %v390_v17  ;;  %v353_v42 = vld [vmem:[%s351_s9 + $0x8] sm:$0xff] }
   0xf   : > { %v419_v16 = vsel %vm380_vm0, %v410_v6, 0.0  ;;  %v422_v21 = vsel %vm380_vm0, %v411_v11, 0.0  ;;  %v337_v43 = vld [vmem:[%s335_s26 + $0x8] sm:$0xff]  ;;  %s1256_s26 = sshll.u32 %s1761_s28, 6 }
  0x10   : > { %v420_v26 = vadd.f32 %v419_v16, %v418_v15  ;;  %v423_v28 = vadd.f32 %v422_v21, %v421_v20  ;;  %v459_v16 = vld [vmem:[%s1741_s2 + $0x10] sm:$0xff]  ;;  %s1478_s9 = scalar_lea.vmem %s1743_s4, %s1256_s26  ;;  %s1711_s25 = scalar_lea.vmem %s1745_s6, %s1256_s26 }
  0x11   : > { %s1258_s26 = sshll.u32 %s1761_s28, 5 }
  0x12   : > { %v1291_v8 = vpop.eup %1290 }
  0x13   : > { %v394_v13 = vmul.f32 512.0, %v1291_v8  ;;  %v1293_v22 = vpop.eup %1292  ;;  %vm398_vm1 = vweird.f32 %v1291_v8 }
  0x14   : > { %v341_v25 = vmul.f32 256.0, %v1293_v22  ;;  %vm345_vm2 = vweird.f32 %v1293_v22 }
  0x15   : > { %v395_v18 = vsub.f32 1.0, %v394_v13 }
  0x16   : > { %v342_v30 = vsub.f32 1.0, %v341_v25 }
  0x17   : > { %v396_v24 = vmul.f32 %v1291_v8, %v395_v18 }
  0x18   : > { %v343_v32 = vmul.f32 %v1293_v22, %v342_v30 }
  0x19   : > { %v397_v29 = vadd.f32 %v1291_v8, %v396_v24 }
  0x1a   : > { %v344_v38 = vadd.f32 %v1293_v22, %v343_v32 }
  0x1b   : > { %v399_v31 = vsel %vm398_vm1, %v1291_v8, %v397_v29  ;;  %v457_v29 = vld [vmem:[%s1741_s2] sm:$0xff] }
  0x1c   : > { %v1418_v33 = vmul.f32 %v399_v31, %v389_v23  ;;  %v426_v34 = vmul.f32 %v420_v26, %v399_v31  ;;  %v1420_v35 = vmul.f32 %v399_v31, %v392_v27  ;;  %v427_v36 = vmul.f32 %v423_v28, %v399_v31  ;;  %v460_v23 = vld [vmem:[%s1741_s2 + $0x18] sm:$0xff]  ;;  %v511_v28 = vld [vmem:[%s1742_s3 + $0x10] sm:$0xff] }
  0x1d   : > { %v346_v44 = vsel %vm345_vm2, %v1293_v22, %v344_v38 }
  0x1e   : > { %v430_v40 = vmul.f32 %v1418_v33, %v1418_v33  ;;  %v431_v41 = vmul.f32 %v1420_v35, %v1420_v35  ;;  %v1426_v47 = vmul.f32 %v346_v44, %v336_v37  ;;  %v356_v48 = vmul.f32 %v352_v39, %v346_v44 }
  0x1f   : > { %v1428_v49 = vmul.f32 %v346_v44, %v337_v43  ;;  %v357_v50 = vmul.f32 %v353_v42, %v346_v44 }
  0x20   : > { %v434_v45 = vsub.f32 %v426_v34, %v430_v40  ;;  %v435_v46 = vsub.f32 %v427_v36, %v431_v41  ;;  %v360_v53 = vmul.f32 %v1426_v47, %v1426_v47  ;;  %v512_v40 = vld [vmem:[%s1742_s3 + $0x18] sm:$0xff]  ;;  %v458_v41 = vld [vmem:[%s1741_s2 + $0x8] sm:$0xff] }
  0x21   : > { %v361_v54 = vmul.f32 %v1428_v49, %v1428_v49 }
  0x22   : > { %v438_v51 = vmax.f32 %v434_v45, 0.0  ;;  %v439_v52 = vmax.f32 %v435_v46, 0.0  ;;  %v364_v57 = vsub.f32 %v356_v48, %v360_v53  ;;  %v510_v48 = vld [vmem:[%s1742_s3 + $0x8] sm:$0xff] }
  0x23   : > { %v365_v58 = vsub.f32 %v357_v50, %v361_v54 }
  0x24   : > { %v463_v55 = vadd.f32 1e-05, %v438_v51  ;;  %v464_v56 = vadd.f32 1e-05, %v439_v52  ;;  %v368_v59 = vmax.f32 %v364_v57, 0.0  ;;  %v526_v51 = vld [vmem:[%s1478_s9 + $0x28] sm:$0xff] }
  0x25   : > { %v369_v60 = vmax.f32 %v365_v58, 0.0 }
  0x26   : > { %1294 = vrsqrt.f32 %v463_v55  ;;  %v461_v61 = vadd.f32 1e-05, %v368_v59  ;;  %vm491_vm3 = vweird.f32 %v463_v55  ;;  %vm501_vm5 = vweird.f32 %v464_v56  ;;  %v527_v59 = vld [vmem:[%s1478_s9 + $0x30] sm:$0xff] }
  0x27   : > { %1296 = vrsqrt.f32 %v464_v56  ;;  %v462_v62 = vadd.f32 1e-05, %v369_v60  ;;  %v528_v60 = vld [vmem:[%s1478_s9 + $0x38] sm:$0xff] }
  0x28   : > { %1298 = vrsqrt.f32 %v461_v61  ;;  %vm471_vm9 = vweird.f32 %v461_v61 }
  0x29   : > { %1300 = vrsqrt.f32 %v462_v62  ;;  %vm481_vm12 = vweird.f32 %v462_v62 }
  0x2c   : > { %v1295_v63 = vpop.eup %1294 }
  0x2d   : > { %v1297_v1 = vpop.eup %1296  ;;  %v486_v2 = vmul.f32 %v1295_v63, %v463_v55  ;;  %vm492_vm4 = vweird.f32 %v1295_v63 }
  0x2e   : > { %v496_v3 = vmul.f32 %v1297_v1, %v464_v56  ;;  %v1299_v5 = vpop.eup %1298  ;;  %vm502_vm6 = vweird.f32 %v1297_v1  ;;  %vm493_vm7 = vmor %vm491_vm3, %vm492_vm4 }
  0x2f   : > { %v487_v4 = vmul.f32 %v1295_v63, %v486_v2  ;;  %v1301_v7 = vpop.eup %1300  ;;  %v466_v9 = vmul.f32 %v1299_v5, %v461_v61  ;;  %vm1437_vm8 = vmor %vm501_vm5, %vm502_vm6  ;;  %vm472_vm10 = vweird.f32 %v1299_v5  ;;  %v521_v61 = vld [vmem:[%s1478_s9] sm:$0xff] }
  0x30   : > { %v497_v6 = vmul.f32 %v1297_v1, %v496_v3  ;;  %v476_v11 = vmul.f32 %v1301_v7, %v462_v62  ;;  %vm473_vm11 = vmor %vm471_vm9, %vm472_vm10  ;;  %vm482_vm13 = vweird.f32 %v1301_v7  ;;  %v522_v62 = vld [vmem:[%s1478_s9 + $0x8] sm:$0xff] }
  0x31   : > { %v488_v8 = vmul.f32 0.5, %v487_v4  ;;  %v467_v13 = vmul.f32 %v1299_v5, %v466_v9  ;;  %vm483_vm14 = vmor %vm481_vm12, %vm482_vm13  ;;  %vm836_vm13 = vcmask 916480  }
  0x32   : > { %v498_v10 = vmul.f32 0.5, %v497_v6  ;;  %v477_v15 = vmul.f32 %v1301_v7, %v476_v11 }
  0x33   : > { %v489_v12 = vsub.f32 1.5, %v488_v8  ;;  %v468_v19 = vmul.f32 0.5, %v467_v13  ;;  %v523_v13 = vld [vmem:[%s1478_s9 + $0x10] sm:$0xff] }
  0x34   : > { %v499_v14 = vsub.f32 1.5, %v498_v10  ;;  %v478_v21 = vmul.f32 0.5, %v477_v15 }
  0x35   : > { %v490_v17 = vmul.f32 %v1295_v63, %v489_v12  ;;  %v469_v24 = vsub.f32 1.5, %v468_v19 }
  0x36   : > { %v500_v20 = vmul.f32 %v1297_v1, %v499_v14  ;;  %v479_v27 = vsub.f32 1.5, %v478_v21 }
  0x37   : > { %v494_v22 = vsel %vm493_vm7, %v1295_v63, %v490_v17  ;;  %v470_v30 = vmul.f32 %v1299_v5, %v469_v24 }
  0x38   : > { %v507_v25 = vmul.f32 %v494_v22, %v459_v16  ;;  %v504_v26 = vsel %vm1437_vm8, %v1297_v1, %v500_v20  ;;  %v480_v36 = vmul.f32 %v1301_v7, %v479_v27  ;;  %v524_v16 = vld [vmem:[%s1478_s9 + $0x18] sm:$0xff] }
  0x39   : > { %v508_v32 = vmul.f32 %v504_v26, %v460_v23  ;;  %v474_v34 = vsel %vm473_vm11, %v1299_v5, %v470_v30  ;;  %vm856_vm11 = vcmask 908288  }
  0x3a   : > { %541 = vperm.xlu0 %1287, %v507_v25   ;;  %v515_v31 = vmul.f32 %v507_v25, %v1418_v33  ;;  %v505_v38 = vmul.f32 %v474_v34, %v457_v29  ;;  %v484_v33 = vsel %vm483_vm14, %v1301_v7, %v480_v36  ;;  %vm914_vm14 = vcmask 261120  }
  0x3b   : > { %v516_v39 = vmul.f32 %v508_v32, %v1420_v35  ;;  %v506_v44 = vmul.f32 %v484_v33, %v458_v41  ;;  %v509_v35 = vld [vmem:[%s1742_s3] sm:$0xff] }
  0x3c   : > { %v519_v37 = vsub.f32 %v511_v28, %v515_v31  ;;  %531 = vperm.xlu2 %1288, %v505_v38   ;;  %v513_v43 = vmul.f32 %v505_v38, %v1426_v47 }
  0x3d   : > { %v520_v42 = vsub.f32 %v512_v40, %v516_v39  ;;  %v514_v46 = vmul.f32 %v506_v44, %v1428_v49  ;;  %v525_v49 = vld [vmem:[%s1478_s9 + $0x20] sm:$0xff]  ;;  %s325_s9 = scalar_lea.vmem %s1746_s7, %s1258_s26 }
  0x3e   : > { %569 = vperm.xlu1 %1289, %v519_v37   ;;  %v517_v45 = vsub.f32 %v509_v35, %v513_v43  ;;  %v597_v43 = vlaneseq }
  0x3f   : > { %v518_v50 = vsub.f32 %v510_v48, %v514_v46 }
  0x42   : > { %546 = vperm.xlu0 %1287, %v508_v32  }
  0x44   : > { %536 = vperm.xlu2 %1288, %v506_v44   ;;  %v598_v44 = vand.u32 127, %v597_v43 }
  0x46   : > { %574 = vperm.xlu1 %1289, %v520_v42   ;;  %v599_v35 = vadd.s32 128, %v598_v44 }
  0x48   : > { %v611_v46 = vand.u32 15, %v599_v35 }
  0x4a   : > { %559 = vperm.xlu0 %1287, %v517_v45   ;;  %v604_v45 = vand.u32 15, %v598_v44  ;;  %vm662_vm1 = vcmp.eq.s32.totalorder %v611_v46, 0  ;;  %vm730_vm7 = vcmp.eq.s32.totalorder %v611_v46, 15 }
  0x4c   : > { %vm661_vm15 = vcmp.eq.s32.totalorder %v604_v45, 0  ;;  %vm729_vm6 = vcmp.eq.s32.totalorder %v604_v45, 15 }
  0x4d   : > { %vm667_vm2 = vmpackc.low %vm662_vm1, %vm661_vm15  ;;  %vm717_vm15 = vcmask 121856  }
  0x4e   : > { %564 = vperm.xlu1 %1289, %v518_v50   ;;  %v668_v48 = vsel %vm667_vm2, 65537, %v1310_v0  ;;  %vm735_vm8 = vmpackc.low %vm730_vm7, %vm729_vm6 }
  0x4f   : > { %v669_v50 = vperm.slane %v668_v48, 0 }
  0x96   : > { %v532_v55 = vpop.permute.xlu2 %531 }
  0x97   : > { %v549_v5 = vmul.f32 %v532_v55, %v521_v61  ;;  %v550_v6 = vmul.f32 %v532_v55, %v522_v62 }
  0x9e   : > { %v537_v12 = vpop.permute.xlu2 %536 }
  0x9f   : > { %v551_v19 = vmul.f32 %v537_v12, %v523_v13  ;;  %v552_v24 = vmul.f32 %v537_v12, %v524_v16  ;;  %v670_v12 = vperm.slane %v668_v48, 4 }
  0xac   : > { %v542_v47 = vpop.permute.xlu0 %541 }
  0xad   : > { %v553_v52 = vmul.f32 %v542_v47, %v525_v49  ;;  %v554_v53 = vmul.f32 %v542_v47, %v526_v51  ;;  %v671_v47 = vunpack.c.l.b16 %v669_v50  ;;  %v672_v49 = vunpack.c.h.b16 %v669_v50 }
  0xae   : > { %v1530_v51 = vunpack.c.l.b16 %v1310_v0 }
  0xb0   : > { %v570_v54 = vpop.permute.xlu1 %569  ;;  %vm675_vm3 = vcmp.ne.s32.totalorder %v671_v47, %v1530_v51 }
  0xb1   : > { %v581_v56 = vadd.f32 %v570_v54, %v553_v52  ;;  %v582_v57 = vadd.f32 %v570_v54, %v554_v53  ;;  %v1533_v52 = vunpack.c.h.b16 %v1310_v0 }
  0xb3   : > { %v589_v63 = vmax.f32 %v581_v56, 0.0  ;;  %v590_v1 = vmax.f32 %v582_v57, 0.0  ;;  %vm676_vm4 = vcmp.ne.s32.totalorder %v672_v49, %v1533_v52 }
  0xb4   : > { %v547_v58 = vpop.permute.xlu0 %546  ;;  %vm1537_vm5 = vmpackc.low %vm676_vm4, %vm675_vm3  ;;  %vm812_vm4 = vcmask 924672  }
  0xb5   : > { %v555_v2 = vmul.f32 %v547_v58, %v527_v59  ;;  %v556_v3 = vmul.f32 %v547_v58, %v528_v60  ;;  %v595_v9 = vpack.c.bf16 %v590_v1, %v589_v63  ;;  %v736_v58 = vsel %vm735_vm8, 65537, %v1310_v0 }
  0xb6   : > { %v737_v59 = vperm.slane %v736_v58, 0 }
  0xb7   : > { %v632_v20 = vunpack.c.l.b16 %v595_v9  ;;  %v633_v21 = vunpack.c.h.b16 %v595_v9 }
  0xb8   : > { %v575_v4 = vpop.permute.xlu1 %574  ;;  %v739_v60 = vunpack.c.l.b16 %v737_v59  ;;  %v740_v61 = vunpack.c.h.b16 %v737_v59 }
  0xb9   : > { %v583_v7 = vadd.f32 %v575_v4, %v555_v2  ;;  %v584_v8 = vadd.f32 %v575_v4, %v556_v3 }
  0xba   : > { %vm743_vm9 = vcmp.ne.s32.totalorder %v739_v60, %v1530_v51  ;;  %vm744_vm10 = vcmp.ne.s32.totalorder %v740_v61, %v1533_v52 }
  0xbb   : > { %v591_v10 = vmax.f32 %v583_v7, 0.0  ;;  %v592_v11 = vmax.f32 %v584_v8, 0.0  ;;  %vm1550_vm12 = vmpackc.low %vm744_vm10, %vm743_vm9  ;;  %vm697_vm9 = vcmask 130048  }
  0xbc   : > { %v560_v14 = vpop.permute.xlu0 %559  ;;  %vm1624_vm10 = vmneg %vm697_vm9 }
  0xbd   : > { %v596_v15 = vpack.c.bf16 %v592_v11, %v591_v10  ;;  %v577_v17 = vadd.f32 %v560_v14, %v549_v5  ;;  %v578_v18 = vadd.f32 %v560_v14, %v550_v6 }
  0xbf   : > { %v634_v22 = vunpack.c.l.b16 %v596_v15  ;;  %v635_v23 = vunpack.c.h.b16 %v596_v15  ;;  %v585_v25 = vmax.f32 %v577_v17, 0.0  ;;  %v586_v26 = vmax.f32 %v578_v18, 0.0 }
  0xc0   : > { %v565_v27 = vpop.permute.xlu1 %564 }
  0xc1   : > { %v1488_v28 = vpack.c.b16 %v634_v22, %v632_v20  ;;  %v1490_v29 = vpack.c.b16 %v635_v23, %v633_v21  ;;  %v579_v30 = vadd.f32 %v565_v27, %v551_v19  ;;  %v580_v31 = vadd.f32 %v565_v27, %v552_v24  ;;  %v1232_v22 = vld [vmem:[%s1744_s5 + $0x8] sm:$0xf]  ;;  %v1262_v23 = vld [vmem:[%s1744_s5 + $0x10] sm:$0xf0] }
  0xc2   : > { %v593_v34 = vpack.c.bf16 %v586_v26, %v585_v25  ;;  %v678_v20 = vunpack.c.l.b16 %v670_v12  ;;  %v679_v21 = vunpack.c.h.b16 %v670_v12  ;;  %v1578_v24 = vor.u32 %v1262_v23, %v1232_v22  ;;  %v1260_v22 = vld [vmem:[%s1744_s5 + $0x4] sm:$0xf]  ;;  %v1226_v23 = vld [vmem:[%s1744_s5 + $0xc] sm:$0xf0] }
  0xc3   : > { %v587_v32 = vmax.f32 %v579_v30, 0.0  ;;  %854 = vrot.lane.b32.xlu1 %v1490_v29, %s1313_s10  ;;  %852 = vrot.lane.b32.xlu0 %v1488_v28, %s1313_s10  ;;  %v588_v36 = vmax.f32 %v580_v31, 0.0  ;;  %v738_v26 = vperm.slane %v736_v58, 4 }
  0xc4   : > { %761 = vrot.lane.b32.xlu2 %v1488_v28, %s1314_s11  ;;  %v628_v38 = vunpack.c.l.b16 %v593_v34  ;;  %v629_v33 = vunpack.c.h.b16 %v593_v34  ;;  %vm682_vm1 = vcmp.ne.s32.totalorder %v678_v20, %v1530_v51  ;;  %vm683_vm2 = vcmp.ne.s32.totalorder %v679_v21, %v1533_v52 }
  0xc5   : > { %v594_v37 = vpack.c.bf16 %v588_v36, %v587_v32  ;;  %vm1588_vm3 = vmpackc.low %vm683_vm2, %vm682_vm1 }
  0xc7   : > { %v630_v39 = vunpack.c.l.b16 %v594_v37  ;;  %v631_v41 = vunpack.c.h.b16 %v594_v37 }
  0xc9   : > { %v1495_v40 = vpack.c.b16 %v630_v39, %v628_v38  ;;  %v1500_v42 = vpack.c.b16 %v631_v41, %v629_v33  ;;  %v746_v38 = vunpack.c.l.b16 %v738_v26  ;;  %v747_v39 = vunpack.c.h.b16 %v738_v26 }
  0xcb   : > { %834 = vrot.lane.b32.xlu0 %v1490_v29, %s1315_s12  ;;  %757 = vrot.lane.b32.xlu1 %v1495_v40, %s1314_s11  ;;  %vm750_vm6 = vcmp.ne.s32.totalorder %v746_v38, %v1530_v51  ;;  %vm751_vm7 = vcmp.ne.s32.totalorder %v747_v39, %v1533_v52 }
  0xcc   : > { %832 = vrot.lane.b32.xlu2 %v1488_v28, %s1315_s12  ;;  %vm1607_vm8 = vmpackc.low %vm751_vm7, %vm750_vm6 }
  0xd3   : > { %850 = vrot.lane.b32.xlu0 %v1500_v42, %s1313_s10  ;;  %828 = vrot.lane.b32.xlu1 %v1495_v40, %s1315_s12 }
  0xd4   : > { %848 = vrot.lane.b32.xlu2 %v1495_v40, %s1313_s10 }
  0xdb   : > { %713 = vrot.lane.b32.xlu0 %v1488_v28, %s1316_s13  ;;  %763 = vrot.lane.b32.xlu1 %v1490_v29, %s1314_s11 }
  0xdc   : > { %830 = vrot.lane.b32.xlu2 %v1500_v42, %s1315_s12  ;;  %s330_s12 = scalar_lea.vmem %s1747_s8, %s1258_s26 }
  0xe3   : > { %810 = vrot.lane.b32.xlu0 %v1490_v29, %s1317_s14  ;;  %709 = vrot.lane.b32.xlu1 %v1495_v40, %s1316_s13 }
  0xe4   : > { %808 = vrot.lane.b32.xlu2 %v1488_v28, %s1317_s14 }
  0xeb   : > { %804 = vrot.lane.b32.xlu0 %v1495_v40, %s1317_s14  ;;  %806 = vrot.lane.b32.xlu1 %v1500_v42, %s1317_s14 }
  0xec   : > { %759 = vrot.lane.b32.xlu2 %v1500_v42, %s1314_s11 }
  0xf3   : > { %784 = vrot.lane.b32.xlu0 %v1488_v28, %s1318_s15  ;;  %786 = vrot.lane.b32.xlu1 %v1490_v29, %s1318_s15 }
  0xf4   : > { %715 = vrot.lane.b32.xlu2 %v1490_v29, %s1316_s13 }
  0xfb   : > { %711 = vrot.lane.b32.xlu0 %v1500_v42, %s1316_s13  ;;  %780 = vrot.lane.b32.xlu1 %v1495_v40, %s1318_s15 }
  0xfc   : > { %693 = vrot.lane.b32.xlu2 %v1488_v28, %s1319_s16 }
 0x103   : > { %689 = vrot.lane.b32.xlu0 %v1495_v40, %s1319_s16  ;;  %644 = vrot.lane.b32.xlu1 %v1488_v28, %s1320_s17 }
 0x104   : > { %782 = vrot.lane.b32.xlu2 %v1500_v42, %s1318_s15 }
 0x10b   : > { %640 = vrot.lane.b32.xlu0 %v1495_v40, %s1320_s17  ;;  %691 = vrot.lane.b32.xlu1 %v1500_v42, %s1319_s16 }
 0x10c   : > { %695 = vrot.lane.b32.xlu2 %v1490_v29, %s1319_s16 }
 0x113   : > { %642 = vrot.lane.b32.xlu0 %v1500_v42, %s1320_s17 }
 0x114   : > { %646 = vrot.lane.b32.xlu2 %v1490_v29, %s1320_s17 }
 0x11e   : > { %v1541_v54 = vpop.permute.xlu2 %761 }
 0x11f   : > { %v774_v55 = vsel %vm380_vm0, 0, %v1541_v54 }
 0x120   : > { %v778_v56 = vsel %vm1537_vm5, 0, %v774_v55  ;;  %v1244_v55 = vld [vmem:[%s1744_s5 + $0x20] sm:$0xf] }
 0x121   : > { %921 = vmatpush.bf16.msra.mxu0 %v778_v56  ;;  %v1265_v56 = vld [vmem:[%s1744_s5 + $0x28] sm:$0xf0] }
 0x122   : > { %v1628_v58 = vor.u32 %v1265_v56, %v1244_v55 }
 0x126   : > { %v833_v57 = vpop.permute.xlu2 %832 }
 0x12e   : > { %v849_v62 = vpop.permute.xlu2 %848 }
 0x135   : > { %v855_v1 = vpop.permute.xlu1 %854  ;;  %v853_v2 = vpop.permute.xlu0 %852 }
 0x136   : > { %v831_v3 = vpop.permute.xlu2 %830  ;;  %v858_v4 = vsel %vm856_vm11, %v853_v2, %v855_v1  ;;  %v1556_v0 = vsel %vm856_vm11, %v855_v1, 0 }
 0x137   : > { %v870_v5 = vsel %vm1550_vm12, 0, %v858_v4  ;;  %v843_v25 = vsel %vm836_vm13, %v831_v3, 0 }
 0x138   : > { %965 = vmatpush.bf16.msra.mxu2 %v870_v5 }
 0x13d   : > { %v835_v6 = vpop.permute.xlu0 %834  ;;  %v758_v8 = vpop.permute.xlu1 %757 }
 0x13e   : > { %v809_v7 = vpop.permute.xlu2 %808  ;;  %v838_v9 = vsel %vm836_vm13, %v833_v57, %v835_v6  ;;  %v771_v10 = vsel %vm380_vm0, 0, %v758_v8  ;;  %v846_v19 = vsel %vm836_vm13, %v835_v6, 0 }
 0x13f   : > { %940 = vmatpush.bf16.msra.mxu1 %v838_v9  ;;  %v776_v11 = vsel %vm1537_vm5, 0, %v771_v10 }
 0x140   : > { %922 = vmatpush.bf16.msra.mxu0 %v776_v11 }
 0x145   : > { %v1564_v13 = vpop.permute.xlu0 %850  ;;  %v829_v14 = vpop.permute.xlu1 %828 }
 0x146   : > { %v857_v15 = vsel %vm856_vm11, %v849_v62, %v1564_v13  ;;  %v837_v16 = vsel %vm836_vm13, %v829_v14, %v831_v3  ;;  %v760_v18 = vpop.permute.xlu2 %759  ;;  %vm788_vm13 = vcmask 1039360  }
 0x147   : > { %v868_v17 = vsel %vm1550_vm12, 0, %v857_v15  ;;  %941 = vmatpush.bf16.msra.mxu1 %v837_v16  ;;  %v766_v41 = vsel %vm380_vm0, %v758_v8, %v760_v18 }
 0x148   : > { %966 = vmatpush.bf16.msra.mxu2 %v868_v17  ;;  %v777_v43 = vsel %vm1588_vm3, 0, %v766_v41 }
 0x14b   : > { %1250 = vmatmul.msk.bf16.vlgmr.msra.gmra.mxu2 %vm914_vm14, %v1578_v24 }
 0x14c   : > { %997 = vmatpush.bf16.msrb.mxu2 %v846_v19 }
 0x14d   : > { %v714_v27 = vpop.permute.xlu0 %713  ;;  %v764_v30 = vpop.permute.xlu1 %763 }
 0x14e   : > { %v727_v31 = vsel %vm717_vm15, 0, %v714_v27  ;;  %v767_v36 = vsel %vm380_vm0, %v1541_v54, %v764_v30  ;;  %v716_v33 = vpop.permute.xlu2 %715  ;;  %v1224_v30 = vld [vmem:[%s1744_s5] sm:$0xf] }
 0x14f   : > { %v755_v32 = vsel %vm1550_vm12, 0, %v727_v31  ;;  %v779_v37 = vsel %vm1588_vm3, 0, %v767_v36  ;;  %v719_v35 = vsel %vm717_vm15, %v714_v27, %v716_v33  ;;  %v871_v27 = vsel %vm1607_vm8, 0, %v1556_v0 }
 0x150   : > { %998 = vmatpush.bf16.msrb.mxu2 %v843_v25  ;;  %923 = vmatpush.bf16.msra.mxu0 %v755_v32  ;;  %v756_v54 = vsel %vm1607_vm8, 0, %v719_v35 }
 0x151   : > { %978 = vmatpush.bf16.msra.mxu3 %v779_v37 }
 0x155   : > { %979 = vmatpush.bf16.msra.mxu3 %v777_v43  ;;  %v811_v44 = vpop.permute.xlu0 %810  ;;  %v710_v45 = vpop.permute.xlu1 %709  ;;  %v1263_v43 = vld [vmem:[%s1744_s5 + $0x1c] sm:$0xf] }
 0x156   : > { %v814_v46 = vsel %vm812_vm4, %v809_v7, %v811_v44  ;;  %v822_v48 = vsel %vm812_vm4, %v811_v44, 0  ;;  %v724_v50 = vsel %vm717_vm15, 0, %v710_v45  ;;  %v694_v59 = vpop.permute.xlu2 %693  ;;  %v1238_v44 = vld [vmem:[%s1744_s5 + $0x24] sm:$0xf0] }
 0x157   : > { %v826_v47 = vsel %vm1537_vm5, 0, %v814_v46  ;;  %v827_v51 = vsel %vm1588_vm3, 0, %v822_v48  ;;  %v753_v52 = vsel %vm1550_vm12, 0, %v724_v50  ;;  %v1236_v48 = vld [vmem:[%s1744_s5 + $0x18] sm:$0xf] }
 0x158   : > { %942 = vmatpush.bf16.msra.mxu1 %v826_v47  ;;  %999 = vmatpush.bf16.msrb.mxu2 %v827_v51  ;;  %v1264_v50 = vld [vmem:[%s1744_s5 + $0x20] sm:$0xf0] }
 0x159   : > { %924 = vmatpush.bf16.msra.mxu0 %v753_v52  ;;  %980 = vmatpush.bf16.msra.mxu3 %v756_v54  ;;  %v1237_v47 = vor.u32 %v1264_v50, %v1236_v48 }
 0x15b   : > { %1251 = vmatmul.msk.bf16.gmra.mxu2 %vm914_vm14, %v1628_v58 }
 0x15d   : > { %1247 = vmatpush.bf16.msk.msra.mxu0 %vm1624_vm10, %v694_v59  ;;  %v805_v60 = vpop.permute.xlu0 %804  ;;  %v807_v61 = vpop.permute.xlu1 %806 }
 0x15e   : > { %v813_v62 = vsel %vm812_vm4, %v805_v60, %v807_v61  ;;  %v819_v1 = vsel %vm812_vm4, %v807_v61, 0  ;;  %v783_v5 = vpop.permute.xlu2 %782 }
 0x15f   : > { %v824_v2 = vsel %vm1537_vm5, 0, %v813_v62  ;;  %v825_v3 = vsel %vm1588_vm3, 0, %v819_v1  ;;  %v795_v11 = vsel %vm788_vm13, %v783_v5, 0 }
 0x160   : > { %943 = vmatpush.bf16.msra.mxu1 %v824_v2  ;;  %1000 = vmatpush.bf16.msrb.mxu2 %v825_v3  ;;  %v801_v12 = vsel %vm1607_vm8, 0, %v795_v11 }
 0x165   : > { %v785_v4 = vpop.permute.xlu0 %784  ;;  %v787_v6 = vpop.permute.xlu1 %786 }
 0x166   : > { %v790_v7 = vsel %vm788_vm13, %v785_v4, %v787_v6  ;;  %v798_v8 = vsel %vm788_vm13, %v787_v6, 0  ;;  %v696_v19 = vpop.permute.xlu2 %695 }
 0x167   : > { %v802_v9 = vsel %vm1550_vm12, 0, %v790_v7  ;;  %v803_v10 = vsel %vm1607_vm8, 0, %v798_v8  ;;  %v699_v21 = vsel %vm697_vm9, %v694_v59, %v696_v19 }
 0x168   : > { %944 = vmatpush.bf16.msra.mxu1 %v802_v9  ;;  %1001 = vmatpush.bf16.msrb.mxu2 %v803_v10 }
 0x16c   : > { %1002 = vmatpush.bf16.msrb.mxu2 %v801_v12 }
 0x16d   : > { %v712_v14 = vpop.permute.xlu0 %711  ;;  %v781_v15 = vpop.permute.xlu1 %780 }
 0x16e   : > { %v718_v16 = vsel %vm717_vm15, %v710_v45, %v712_v14  ;;  %v789_v17 = vsel %vm788_vm13, %v781_v15, %v783_v5  ;;  %vm648_vm15 = vcmask 138240   ;;  %v647_v37 = vpop.permute.xlu2 %646  ;;  %v1241_v45 = vor.u32 %v1263_v43, %v1238_v44 }
 0x16f   : > { %v754_v18 = vsel %vm1607_vm8, 0, %v718_v16  ;;  %v800_v20 = vsel %vm1550_vm12, 0, %v789_v17 }
 0x170   : > { %981 = vmatpush.bf16.msra.mxu3 %v754_v18  ;;  %945 = vmatpush.bf16.msra.mxu1 %v800_v20 }
 0x171   : > { %1003 = vmatpush.bf16.msrb.mxu2 %v1490_v29  ;;  %v1229_v29 = vor.u32 %v1260_v22, %v1226_v23 }
 0x174   : > { %982 = vmatpush.bf16.msra.mxu3 %v699_v21  ;;  %946 = vmatpush.bf16.msra.mxu1 %v1488_v28 }
 0x175   : > { %1004 = vmatpush.bf16.msrb.mxu2 %v1500_v42  ;;  %v690_v63 = vpop.permute.xlu0 %689  ;;  %v645_v25 = vpop.permute.xlu1 %644  ;;  %v863_v42 = vsel %vm856_vm11, %v1564_v13, 0 }
 0x176   : > { %1249 = vmatpush.bf16.msk.msra.mxu0 %vm1624_vm10, %v690_v63  ;;  %v659_v26 = vsel %vm648_vm15, 0, %v645_v25  ;;  %v869_v0 = vsel %vm1607_vm8, 0, %v863_v42  ;;  %v650_v41 = vsel %vm648_vm15, %v645_v25, %v647_v37 }
 0x177   : > { %v687_v28 = vsel %vm1537_vm5, 0, %v659_v26  ;;  %v688_v33 = vsel %vm1588_vm3, 0, %v650_v41 }
 0x178   : > { %1005 = vmatmul.bf16.vlgmr.msrb.gmra.mxu2 %v1229_v29  ;;  %947 = vmatpush.bf16.msra.mxu1 %v1495_v40  ;;  %v1261_v40 = vld [vmem:[%s1744_s5 + $0x8] sm:$0xf0] }
 0x179   : > { %v1225_v39 = vor.u32 %v1261_v40, %v1224_v30 }
 0x17a   : > { %927 = vmatpush.bf16.msra.mxu0 %v687_v28 }
 0x17b   : > { %948 = vmatmul.bf16.vlgmr.msra.gmra.mxu1 %v1229_v29 }
 0x17c   : > { %1266 = vmatpush.bf16.msrb.mxu1 %v871_v27 }
 0x17d   : > { %v641_v31 = vpop.permute.xlu0 %640  ;;  %v692_v32 = vpop.permute.xlu1 %691 }
 0x17e   : > { %v656_v36 = vsel %vm648_vm15, 0, %v641_v31  ;;  %v698_v13 = vsel %vm697_vm9, %v690_v63, %v692_v32 }
 0x17f   : > { %v685_v38 = vsel %vm1537_vm5, 0, %v656_v36  ;;  %983 = vmatpush.bf16.msra.mxu3 %v698_v13 }
 0x180   : > { %1267 = vmatpush.bf16.msrb.mxu1 %v869_v0  ;;  %928 = vmatpush.bf16.msra.mxu0 %v685_v38 }
 0x183   : > { %929 = vmatmul.bf16.vlgmr.msra.gmra.mxu0 %v1225_v39  ;;  %984 = vmatpush.bf16.msra.mxu3 %v688_v33 }
 0x184   : > { %1022 = vmatpush.bf16.msrb.mxu0 %v871_v27 }
 0x185   : > { %v643_v53 = vpop.permute.xlu0 %642 }
 0x186   : > { %v649_v35 = vsel %vm648_vm15, %v641_v31, %v643_v53 }
 0x187   : > { %v686_v46 = vsel %vm1588_vm3, 0, %v649_v35 }
 0x188   : > { %1023 = vmatpush.bf16.msrb.mxu0 %v869_v0  ;;  %985 = vmatpush.bf16.msra.mxu3 %v686_v46 }
 0x189   : > { %1010 = vmatmul.bf16.gmra.mxu2 %v1241_v45 }
 0x18b   : > { %986 = vmatmul.bf16.vlgmr.msra.gmra.mxu3 %v1225_v39  ;;  %953 = vmatmul.bf16.gmra.mxu1 %v1241_v45 }
 0x193   : > { %934 = vmatmul.bf16.gmra.mxu0 %v1237_v47 }
 0x19b   : > { %991 = vmatmul.bf16.gmra.mxu3 %v1237_v47  ;;  %1253 = vmatmul.msk.bf16.vlgmr.msrb.gmra.mxu1 %vm914_vm14, %v1628_v58 }
 0x1a3   : > { %1252 = vmatmul.msk.bf16.vlgmr.msrb.gmra.mxu0 %vm914_vm14, %v1578_v24 }
 0x1ce   : > { %v968_v34 = vpop.f32.mrf.mxu2 }
 0x1d6   : > { %v970_v49 = vpop.f32.mrf.mxu2 }
 0x1de   : > { %v973_v51 = vpop.f32.mrf.mxu2 }
 0x1e6   : > { %v975_v54 = vpop.f32.mrf.mxu2 }
 0x1f8   : > { %v949_v52 = vpop.f32.mrf.mxu1 }
 0x1fb   : > { %v1006_v24 = vpop.f32.mrf.mxu2 }
 0x200   : > { %v930_v55 = vpop.f32.mrf.mxu0  ;;  %v951_v57 = vpop.f32.mrf.mxu1 }
 0x201   : > { %v950_v56 = vadd.f32 %v949_v52, %v930_v55 }
 0x203   : > { %v969_v58 = vadd.f32 %v968_v34, %v950_v56  ;;  %v1008_v3 = vpop.f32.mrf.mxu2 }
 0x205   : > { %1035 = vst [vmem:[%s1711_s25] sm:$0xff] %v969_v58  ;;  %v1055_v40 = vmul.f32 %v969_v58, %v969_v58 }
 0x208   : > { %v932_v59 = vpop.f32.mrf.mxu0  ;;  %v954_v61 = vpop.f32.mrf.mxu1 }
 0x209   : > { %v952_v60 = vadd.f32 %v951_v57, %v932_v59 }
 0x20b   : > { %v971_v62 = vadd.f32 %v970_v49, %v952_v60 }
 0x20c   : > { %v1011_v10 = vpop.f32.mrf.mxu2 }
 0x20d   : > { %1037 = vst [vmem:[%s1711_s25 + $0x10] sm:$0xff] %v971_v62  ;;  %v1057_v33 = vmul.f32 %v971_v62, %v971_v62 }
 0x20e   : > { %v987_v1 = vpop.f32.mrf.mxu3 }
 0x20f   : > { %v1007_v15 = vadd.f32 %v1006_v24, %v987_v1 }
 0x210   : > { %v935_v2 = vpop.f32.mrf.mxu0  ;;  %v956_v5 = vpop.f32.mrf.mxu1 }
 0x211   : > { %v955_v4 = vadd.f32 %v954_v61, %v935_v2 }
 0x213   : > { %v974_v6 = vadd.f32 %v973_v51, %v955_v4 }
 0x214   : > { %v1013_v22 = vpop.f32.mrf.mxu2 }
 0x215   : > { %1039 = vst [vmem:[%s1711_s25 + $0x20] sm:$0xff] %v974_v6  ;;  %v1059_v31 = vmul.f32 %v974_v6, %v974_v6 }
 0x216   : > { %v989_v7 = vpop.f32.mrf.mxu3 }
 0x217   : > { %v1009_v25 = vadd.f32 %v1008_v3, %v989_v7 }
 0x218   : > { %v937_v8 = vpop.f32.mrf.mxu0  ;;  %v1030_v12 = vpop.f32.mrf.mxu1 }
 0x219   : > { %v957_v9 = vadd.f32 %v956_v5, %v937_v8 }
 0x21b   : > { %v976_v11 = vadd.f32 %v975_v54, %v957_v9 }
 0x21d   : > { %1041 = vst [vmem:[%s1711_s25 + $0x30] sm:$0xff] %v976_v11  ;;  %v1061_v13 = vmul.f32 %v976_v11, %v976_v11 }
 0x21e   : > { %v992_v14 = vpop.f32.mrf.mxu3 }
 0x21f   : > { %v1012_v16 = vadd.f32 %v1011_v10, %v992_v14 }
 0x220   : > { %v1025_v17 = vpop.f32.mrf.mxu0  ;;  %v1032_v63 = vpop.f32.mrf.mxu1 }
 0x221   : > { %v1026_v18 = vadd.f32 %v1025_v17, %v1007_v15  ;;  %v1031_v19 = vadd.f32 %v1030_v12, %v1012_v16 }
 0x223   : > { %1036 = vst [vmem:[%s1711_s25 + $0x8] sm:$0xff] %v1026_v18  ;;  %v1043_v20 = vadd.f32 %v1026_v18, %v969_v58  ;;  %v1049_v21 = vadd.f32 %v1031_v19, %v974_v6  ;;  %v1056_v26 = vmul.f32 %v1026_v18, %v1026_v18  ;;  %v1060_v28 = vmul.f32 %v1031_v19, %v1031_v19 }
 0x224   : > { %1040 = vst [vmem:[%s1711_s25 + $0x28] sm:$0xff] %v1031_v19 }
 0x225   : > { %1044 = vadd.xlane.f32.xlu1 %v1043_v20  ;;  %1050 = vadd.xlane.f32.xlu0 %v1049_v21  ;;  %v1063_v0 = vadd.f32 %v1056_v26, %v1055_v40  ;;  %v1069_v36 = vadd.f32 %v1060_v28, %v1059_v31 }
 0x226   : > { %v994_v23 = vpop.f32.mrf.mxu3 }
 0x227   : > { %v1014_v29 = vadd.f32 %v1013_v22, %v994_v23 }
 0x228   : > { %v1027_v27 = vpop.f32.mrf.mxu0 }
 0x229   : > { %v1028_v42 = vadd.f32 %v1027_v27, %v1009_v25  ;;  %v1033_v30 = vadd.f32 %v1032_v63, %v1014_v29 }
 0x22b   : > { %1038 = vst [vmem:[%s1711_s25 + $0x18] sm:$0xff] %v1028_v42  ;;  %v1046_v32 = vadd.f32 %v1028_v42, %v971_v62  ;;  %v1062_v37 = vmul.f32 %v1033_v30, %v1033_v30  ;;  %v1052_v39 = vadd.f32 %v1033_v30, %v976_v11  ;;  %v1058_v41 = vmul.f32 %v1028_v42, %v1028_v42 }
 0x22c   : > { %1042 = vst [vmem:[%s1711_s25 + $0x38] sm:$0xff] %v1033_v30 }
 0x22d   : > { %1064 = vadd.xlane.f32.xlu1 %v1063_v0  ;;  %1047 = vadd.xlane.f32.xlu2 %v1046_v32  ;;  %v1072_v38 = vadd.f32 %v1062_v37, %v1061_v13  ;;  %v1066_v43 = vadd.f32 %v1058_v41, %v1057_v33 }
 0x22e   : > { %1070 = vadd.xlane.f32.xlu0 %v1069_v36 }
 0x235   : > { %1073 = vadd.xlane.f32.xlu1 %v1072_v38  ;;  %1053 = vadd.xlane.f32.xlu2 %v1052_v39 }
 0x23d   : > { %1067 = vadd.xlane.f32.xlu2 %v1066_v43 }
 0x298   : > { %v1045_v44 = vpop.xlane.xlu1 %1044  ;;  %v1051_v53 = vpop.xlane.xlu0 %1050 }
 0x299   : > { %1075 = vst.msk [vmem:[%s325_s9] sm:$0xff] %vm380_vm0, %v1045_v44 }
 0x29a   : > { %1077 = vst.msk [vmem:[%s325_s9 + $0x10] sm:$0xff] %vm380_vm0, %v1051_v53 }
 0x2a0   : > { %v1065_v35 = vpop.xlane.xlu1 %1064  ;;  %v1048_v45 = vpop.xlane.xlu2 %1047 }
 0x2a1   : > { %1079 = vst.msk [vmem:[%s330_s12] sm:$0xff] %vm380_vm0, %v1065_v35  ;;  %v1071_v46 = vpop.xlane.xlu0 %1070 }
 0x2a2   : > { %1076 = vst.msk [vmem:[%s325_s9 + $0x8] sm:$0xff] %vm380_vm0, %v1048_v45 }
 0x2a3   : > { %1081 = vst.msk [vmem:[%s330_s12 + $0x10] sm:$0xff] %vm380_vm0, %v1071_v46 }
 0x2a8   : > { %v1074_v48 = vpop.xlane.xlu1 %1073  ;;  %v1054_v50 = vpop.xlane.xlu2 %1053 }
 0x2a9   : > { %1082 = vst.msk [vmem:[%s330_s12 + $0x18] sm:$0xff] %vm380_vm0, %v1074_v48 }
 0x2aa   : > { %1078 = vst.msk [vmem:[%s325_s9 + $0x18] sm:$0xff] %vm380_vm0, %v1054_v50 }
 0x2b0   : > { %v1068_v47 = vpop.xlane.xlu2 %1067 }
 0x2b1   : > { %1080 = vst.msk [vmem:[%s330_s12 + $0x8] sm:$0xff] %vm380_vm0, %v1068_v47 }
 0x2b2 PF: > { %s19_s27 = sadd.s32 1, %s1308_s27  }
 0x2b3   : > { %p16_p4 = scmp.ge.s32.totalorder %s19_s27, 4  }
 0x2b5   :  { %18 = sbr.rel (!%p16_p4) target bundleno = 1 (0x1), region = 100 }

// kernel: bottleneck_ibn_forward.7
= control target key start
LH: loop header
LB: loop body
LE: loop exit
PB: predicated region body
PF: predicated region fallthrough
CT: control target
= control target key end

     0   :  { %s1335_s21 = smov 0   ;;  %s2354_s0 = inlined_call_operand.vmem [shape: f32[2,128,1], index: 0, kind: input, shape index: {}]   ;;  %s2355_s1 = inlined_call_operand.vmem [shape: f32[2,128,1], index: 1, kind: input, shape index: {}]   ;;  %s2356_s2 = inlined_call_operand.vmem [shape: f32[128,1], index: 2, kind: input, shape index: {}]   ;;  %s2357_s3 = inlined_call_operand.vmem [shape: f32[128,1], index: 3, kind: input, shape index: {}]   ;;  %s2358_s4 = inlined_call_operand.vmem [shape: f32[2,128,256], index: 4, kind: input, shape index: {}, may-alias: {4,6}]   ;;  %s2359_s5 = inlined_call_operand.vmem [shape: f32[2,128,256], index: 5, kind: input, shape index: {}]   ;;  %s2360_s6 = inlined_call_operand.vmem [shape: f32[2,128,256], index: 6, kind: output, shape index: {}, may-alias: {4,6}]  }
   0x1 LB: > { %s1227_s22 = sadd.s32 4294967295, %s1296_s21   ;;  %p1231_p0 = scmp.ge.s32.totalorder %s1296_s21, 1  ;;  %s1296_s21 = sphi %s1335_s21, %s16_s21  }
   0x2   : > { %p222_p1 = scmp.lt.s32.totalorder %s1296_s21, 3 }
   0x4   : > { %p223_p2 = pnand %p1231_p0, %p222_p1 }
   0x5   : > { %p257_p3 = scmp.lt.s32.totalorder (!%p223_p2), %s1227_s22, 1 }
   0x6   : > { %226 = sbr.rel (%p223_p2) target bundleno = 284 (0x11c), region = 44 }
   0xb   : > { %v276_v0 = vld [vmem:[%s2354_s0 + $0x20] sm:$0xff]  ;;  %vm304_vm0 = vcmask 7168   ;;  %v1298_v3 = vmov 0   ;;  %v1299_v6 = vmov 512.0   ;;  %v274_v8 = vld [vmem:[%s2354_s0 + $0x10] sm:$0xff]  ;;  %v277_v25 = vld [vmem:[%s2354_s0 + $0x28] sm:$0xff] }
   0xc   : > { %v292_v1 = vld [vmem:[%s2354_s0 + $0xa0] sm:$0xff]  ;;  %1255 = vset.pattern.permute.xlu2 %v1298_v3  ;;  %1254 = vset.pattern.permute.xlu1 %v1298_v3  ;;  %v317_v4 = vsel %vm304_vm0, %v276_v0, 0.0  ;;  %1256 = vrcp.f32 %v1299_v6  ;;  %v290_v11 = vld [vmem:[%s2354_s0 + $0x90] sm:$0xff]  ;;  %v311_v14 = vsel %vm304_vm0, %v274_v8, 0.0  ;;  %v293_v26 = vld [vmem:[%s2354_s0 + $0xa8] sm:$0xff]  ;;  %v320_v30 = vsel %vm304_vm0, %v277_v25, 0.0 }
   0xd   : > { %v380_v2 = vld [vmem:[%s2355_s1 + $0x20] sm:$0xff]  ;;  %v318_v5 = vsel %vm304_vm0, %v292_v1, 0.0  ;;  %1253 = vset.pattern.permute.xlu0 %v1298_v3  ;;  %v378_v12 = vld [vmem:[%s2355_s1 + $0x10] sm:$0xff]  ;;  %v312_v15 = vsel %vm304_vm0, %v290_v11, 0.0  ;;  %v381_v31 = vld [vmem:[%s2355_s1 + $0x28] sm:$0xff]  ;;  %v321_v35 = vsel %vm304_vm0, %v293_v26, 0.0 }
   0xe   : > { %v396_v7 = vld [vmem:[%s2355_s1 + $0xa0] sm:$0xff]  ;;  %v420_v9 = vsel %vm304_vm0, %v380_v2, 0.0  ;;  %v394_v13 = vld [vmem:[%s2355_s1 + $0x90] sm:$0xff]  ;;  %v414_v16 = vsel %vm304_vm0, %v378_v12, 0.0  ;;  %v1383_v20 = vadd.f32 %v318_v5, %v317_v4  ;;  %v397_v32 = vld [vmem:[%s2355_s1 + $0xa8] sm:$0xff]  ;;  %v1411_v34 = vadd.f32 %v312_v15, %v311_v14  ;;  %s2384_s22 = smov (!%p257_p3, %s1227_s22), 1 }
   0xf   : > { %v421_v10 = vsel %vm304_vm0, %v396_v7, 0.0  ;;  %v272_v17 = vld [vmem:[%s2354_s0] sm:$0xff]  ;;  %v415_v21 = vsel %vm304_vm0, %v394_v13, 0.0  ;;  %v275_v33 = vld [vmem:[%s2354_s0 + $0x18] sm:$0xff]  ;;  %v423_v36 = vsel %vm304_vm0, %v381_v31, 0.0  ;;  %v424_v37 = vsel %vm304_vm0, %v397_v32, 0.0 }
  0x10   : > { %v288_v18 = vld [vmem:[%s2354_s0 + $0x80] sm:$0xff]  ;;  %v305_v22 = vsel %vm304_vm0, %v272_v17, 0.0  ;;  %v1397_v27 = vadd.f32 %v421_v10, %v420_v9  ;;  %v291_v38 = vld [vmem:[%s2354_s0 + $0x98] sm:$0xff]  ;;  %v416_v42 = vadd.f32 %v415_v21, %v414_v16  ;;  %v314_v44 = vsel %vm304_vm0, %v275_v33, 0.0  ;;  %v273_v46 = vld [vmem:[%s2354_s0 + $0x8] sm:$0xff]  ;;  %s2127_s15 = sshll.u32 %s2384_s22, 8 }
  0x11   : > { %v376_v19 = vld [vmem:[%s2355_s1] sm:$0xff]  ;;  %v306_v23 = vsel %vm304_vm0, %v288_v18, 0.0  ;;  %v379_v39 = vld [vmem:[%s2355_s1 + $0x18] sm:$0xff]  ;;  %v315_v45 = vsel %vm304_vm0, %v291_v38, 0.0  ;;  %v289_v47 = vld [vmem:[%s2354_s0 + $0x88] sm:$0xff]  ;;  %v322_v51 = vadd.f32 %v321_v35, %v320_v30  ;;  %v425_v56 = vadd.f32 %v424_v37, %v423_v36  ;;  %s2137_s18 = scalar_lea.vmem %s2358_s4, %s2127_s15  ;;  %s2145_s20 = scalar_lea.vmem %s2359_s5, %s2127_s15 }
  0x12   : > { %v392_v24 = vld [vmem:[%s2355_s1 + $0x80] sm:$0xff]  ;;  %v408_v28 = vsel %vm304_vm0, %v376_v19, 0.0  ;;  %v395_v40 = vld [vmem:[%s2355_s1 + $0x98] sm:$0xff]  ;;  %v1257_v41 = vpop.eup %1256  ;;  %v307_v43 = vadd.f32 %v306_v23, %v305_v22  ;;  %v377_v48 = vld [vmem:[%s2355_s1 + $0x8] sm:$0xff]  ;;  %v417_v52 = vsel %vm304_vm0, %v379_v39, 0.0  ;;  %v308_v58 = vsel %vm304_vm0, %v273_v46, 0.0  ;;  %s2208_s25 = scalar_lea.vmem %s2360_s6, %s2127_s15 }
  0x13   : > { %v409_v29 = vsel %vm304_vm0, %v392_v24, 0.0  ;;  %v354_v49 = vmul.f32 512.0, %v1257_v41  ;;  %v393_v53 = vld [vmem:[%s2355_s1 + $0x88] sm:$0xff]  ;;  %v280_v54 = vld [vmem:[%s2354_s0 + $0x40] sm:$0xff]  ;;  %vm358_vm1 = vweird.f32 %v1257_v41  ;;  %v418_v57 = vsel %vm304_vm0, %v395_v40, 0.0  ;;  %v279_v1 = vld [vmem:[%s2354_s0 + $0x38] sm:$0xff] }
  0x14   : > { %v410_v50 = vadd.f32 %v409_v29, %v408_v28  ;;  %v296_v55 = vld [vmem:[%s2354_s0 + $0xc0] sm:$0xff]  ;;  %v316_v62 = vadd.f32 %v315_v45, %v314_v44  ;;  %v309_v63 = vsel %vm304_vm0, %v289_v47, 0.0  ;;  %v411_v0 = vsel %vm304_vm0, %v377_v48, 0.0  ;;  %v295_v2 = vld [vmem:[%s2354_s0 + $0xb8] sm:$0xff]  ;;  %v278_v9 = vld [vmem:[%s2354_s0 + $0x30] sm:$0xff] }
  0x15   : > { %v384_v59 = vld [vmem:[%s2355_s1 + $0x40] sm:$0xff]  ;;  %v355_v61 = vsub.f32 1.0, %v354_v49  ;;  %v383_v3 = vld [vmem:[%s2355_s1 + $0x38] sm:$0xff]  ;;  %v419_v4 = vadd.f32 %v418_v57, %v417_v52  ;;  %v412_v5 = vsel %vm304_vm0, %v393_v53, 0.0  ;;  %v329_v6 = vsel %vm304_vm0, %v280_v54, 0.0  ;;  %v294_v14 = vld [vmem:[%s2354_s0 + $0xb0] sm:$0xff] }
  0x16   : > { %v400_v60 = vld [vmem:[%s2355_s1 + $0xc0] sm:$0xff]  ;;  %v330_v7 = vsel %vm304_vm0, %v296_v55, 0.0  ;;  %v399_v8 = vld [vmem:[%s2355_s1 + $0xb8] sm:$0xff]  ;;  %v432_v11 = vsel %vm304_vm0, %v384_v59, 0.0  ;;  %v326_v13 = vsel %vm304_vm0, %v279_v1, 0.0  ;;  %v310_v15 = vadd.f32 %v309_v63, %v308_v58  ;;  %v382_v19 = vld [vmem:[%s2355_s1 + $0x30] sm:$0xff] }
  0x17   : > { %v356_v10 = vmul.f32 %v1257_v41, %v355_v61  ;;  %v433_v12 = vsel %vm304_vm0, %v400_v60, 0.0  ;;  %v327_v16 = vsel %vm304_vm0, %v295_v2, 0.0  ;;  %v429_v17 = vsel %vm304_vm0, %v383_v3, 0.0  ;;  %v398_v21 = vld [vmem:[%s2355_s1 + $0xb0] sm:$0xff]  ;;  %v283_v1 = vld [vmem:[%s2354_s0 + $0x58] sm:$0xff] }
  0x18   : > { %v430_v18 = vsel %vm304_vm0, %v399_v8, 0.0  ;;  %v413_v23 = vadd.f32 %v412_v5, %v411_v0  ;;  %v331_v24 = vadd.f32 %v330_v7, %v329_v6  ;;  %v323_v25 = vsel %vm304_vm0, %v278_v9, 0.0  ;;  %v299_v6 = vld [vmem:[%s2354_s0 + $0xd8] sm:$0xff] }
  0x19   : > { %v357_v22 = vadd.f32 %v1257_v41, %v356_v10  ;;  %v434_v26 = vadd.f32 %v433_v12, %v432_v11  ;;  %v328_v28 = vadd.f32 %v327_v16, %v326_v13  ;;  %v431_v29 = vadd.f32 %v430_v18, %v429_v17 }
  0x1a   : > { %v324_v30 = vsel %vm304_vm0, %v294_v14, 0.0  ;;  %v426_v33 = vsel %vm304_vm0, %v382_v19, 0.0  ;;  %v427_v35 = vsel %vm304_vm0, %v398_v21, 0.0  ;;  %v338_v14 = vsel %vm304_vm0, %v283_v1, 0.0  ;;  %v386_v1 = vld [vmem:[%s2355_s1 + $0x50] sm:$0xff] }
  0x1b   : > { %v1492_v31 = vsel %vm358_vm1, %v1257_v41, %v357_v22  ;;  %v325_v32 = vadd.f32 %v324_v30, %v323_v25  ;;  %v428_v10 = vadd.f32 %v427_v35, %v426_v33  ;;  %v403_v25 = vld [vmem:[%s2355_s1 + $0xd8] sm:$0xff] }
  0x1c   : > { %v1498_v36 = vmul.f32 %v1492_v31, %v1383_v20  ;;  %v460_v37 = vmul.f32 %v1397_v27, %v1492_v31  ;;  %v1504_v38 = vmul.f32 %v1492_v31, %v1411_v34  ;;  %v458_v39 = vmul.f32 %v416_v42, %v1492_v31 }
  0x1d   : > { %v1508_v40 = vmul.f32 %v1492_v31, %v307_v43  ;;  %v456_v41 = vmul.f32 %v410_v50, %v1492_v31  ;;  %v1512_v44 = vmul.f32 %v1492_v31, %v322_v51  ;;  %v461_v20 = vmul.f32 %v425_v56, %v1492_v31 }
  0x1e   : > { %v476_v45 = vmul.f32 %v1498_v36, %v1498_v36  ;;  %v474_v27 = vmul.f32 %v1504_v38, %v1504_v38  ;;  %v1520_v34 = vmul.f32 %v1492_v31, %v316_v62  ;;  %v459_v42 = vmul.f32 %v419_v4, %v1492_v31 }
  0x1f   : > { %v472_v43 = vmul.f32 %v1508_v40, %v1508_v40  ;;  %v477_v46 = vmul.f32 %v1512_v44, %v1512_v44  ;;  %v1528_v47 = vmul.f32 %v1492_v31, %v310_v15  ;;  %v457_v48 = vmul.f32 %v413_v23, %v1492_v31 }
  0x20   : > { %v492_v49 = vsub.f32 %v460_v37, %v476_v45  ;;  %v490_v50 = vsub.f32 %v458_v39, %v474_v27  ;;  %v475_v51 = vmul.f32 %v1520_v34, %v1520_v34  ;;  %v1534_v52 = vmul.f32 %v1492_v31, %v331_v24  ;;  %v387_v24 = vld [vmem:[%s2355_s1 + $0x58] sm:$0xff] }
  0x21   : > { %v488_v53 = vsub.f32 %v456_v41, %v472_v43  ;;  %v493_v54 = vsub.f32 %v461_v20, %v477_v46  ;;  %v473_v55 = vmul.f32 %v1528_v47, %v1528_v47  ;;  %v464_v56 = vmul.f32 %v434_v26, %v1492_v31 }
  0x22   : > { %v508_v57 = vmax.f32 %v492_v49, 0.0  ;;  %v506_v58 = vmax.f32 %v490_v50, 0.0  ;;  %v491_v59 = vsub.f32 %v459_v42, %v475_v51  ;;  %v480_v60 = vmul.f32 %v1534_v52, %v1534_v52 }
  0x23   : > { %v504_v61 = vmax.f32 %v488_v53, 0.0  ;;  %v509_v62 = vmax.f32 %v493_v54, 0.0  ;;  %v489_v63 = vsub.f32 %v457_v48, %v473_v55  ;;  %v1542_v0 = vmul.f32 %v1492_v31, %v328_v28 }
  0x24   : > { %v1547_v2 = vadd.f32 1e-05, %v508_v57  ;;  %v1549_v3 = vadd.f32 1e-05, %v506_v58  ;;  %v507_v4 = vmax.f32 %v491_v59, 0.0  ;;  %v496_v5 = vsub.f32 %v464_v56, %v480_v60 }
  0x25   : > { %v1554_v7 = vadd.f32 1e-05, %v504_v61  ;;  %v1556_v8 = vadd.f32 1e-05, %v509_v62  ;;  %v505_v9 = vmax.f32 %v489_v63, 0.0  ;;  %v463_v12 = vmul.f32 %v431_v29, %v1492_v31 }
  0x26   : > { %1258 = vrsqrt.f32 %v1547_v2  ;;  %v1559_v11 = vadd.f32 1e-05, %v507_v4  ;;  %v339_v15 = vsel %vm304_vm0, %v299_v6, 0.0  ;;  %v512_v16 = vmax.f32 %v496_v5, 0.0 }
  0x27   : > { %1260 = vrsqrt.f32 %v1549_v3  ;;  %v1563_v13 = vadd.f32 1e-05, %v505_v9  ;;  %v479_v17 = vmul.f32 %v1542_v0, %v1542_v0  ;;  %v1572_v18 = vmul.f32 %v1492_v31, %v325_v32  ;;  %v524_v9 = vld [vmem:[%s2356_s2 + $0x20] sm:$0xff] }
  0x28   : > { %1262 = vrsqrt.f32 %v1554_v7  ;;  %v462_v19 = vmul.f32 %v428_v10, %v1492_v31  ;;  %v1576_v21 = vadd.f32 1e-05, %v512_v16  ;;  %v340_v23 = vadd.f32 %v339_v15, %v338_v14  ;;  %v522_v16 = vld [vmem:[%s2356_s2 + $0x10] sm:$0xff] }
  0x29   : > { %1264 = vrsqrt.f32 %v1556_v8  ;;  %v495_v22 = vsub.f32 %v463_v12, %v479_v17  ;;  %vm598_vm2 = vweird.f32 %v1547_v2  ;;  %vm578_vm3 = vweird.f32 %v1549_v3 }
  0x2a   : > { %1266 = vrsqrt.f32 %v1559_v11  ;;  %v478_v26 = vmul.f32 %v1572_v18, %v1572_v18  ;;  %vm558_vm4 = vweird.f32 %v1554_v7  ;;  %vm608_vm5 = vweird.f32 %v1556_v8 }
  0x2b   : > { %1268 = vrsqrt.f32 %v1563_v13  ;;  %v511_v29 = vmax.f32 %v495_v22, 0.0  ;;  %vm588_vm6 = vweird.f32 %v1559_v11  ;;  %v1600_v35 = vsel %vm304_vm0, %v387_v24, 0.0 }
  0x2c   : > { %v1589_v28 = vpop.eup %1258  ;;  %1270 = vrsqrt.f32 %v1576_v21  ;;  %v494_v33 = vsub.f32 %v462_v19, %v478_v26  ;;  %v1603_v37 = vsel %vm304_vm0, %v403_v25, 0.0  ;;  %vm568_vm8 = vweird.f32 %v1563_v13  ;;  %v520_v25 = vld [vmem:[%s2356_s2] sm:$0xff]  ;;  %v302_v26 = vld [vmem:[%s2354_s0 + $0xf0] sm:$0xff] }
  0x2d   : > { %v1594_v30 = vpop.eup %1260  ;;  %v593_v32 = vmul.f32 %v1589_v28, %v1547_v2  ;;  %vm599_vm7 = vweird.f32 %v1589_v28  ;;  %v1611_v20 = vadd.f32 1e-05, %v511_v29  ;;  %v1614_v45 = vmul.f32 %v1492_v31, %v340_v23 }
  0x2e   : > { %v1605_v39 = vpop.eup %1262  ;;  %v573_v41 = vmul.f32 %v1594_v30, %v1549_v3  ;;  %vm579_vm9 = vweird.f32 %v1594_v30  ;;  %vm638_vm11 = vweird.f32 %v1576_v21  ;;  %v1630_v50 = vmax.f32 %v494_v33, 0.0  ;;  %vm1651_vm14 = vmor %vm598_vm2, %vm599_vm7 }
  0x2f   : > { %v1616_v27 = vpop.eup %1264  ;;  %v594_v42 = vmul.f32 %v1589_v28, %v593_v32  ;;  %v553_v43 = vmul.f32 %v1605_v39, %v1554_v7  ;;  %vm559_vm10 = vweird.f32 %v1605_v39  ;;  %1272 = vrsqrt.f32 %v1611_v20  ;;  %vm1665_vm1 = vmor %vm578_vm3, %vm579_vm9 }
  0x30   : > { %v1624_v46 = vpop.eup %1266  ;;  %v574_v48 = vmul.f32 %v1594_v30, %v573_v41  ;;  %v603_v49 = vmul.f32 %v1616_v27, %v1556_v8  ;;  %vm609_vm12 = vweird.f32 %v1616_v27  ;;  %vm1678_vm2 = vmor %vm558_vm4, %vm559_vm10 }
  0x31   : > { %v1632_v51 = vpop.eup %1268  ;;  %v595_v53 = vmul.f32 0.5, %v594_v42  ;;  %v554_v54 = vmul.f32 %v1605_v39, %v553_v43  ;;  %v583_v55 = vmul.f32 %v1624_v46, %v1559_v11  ;;  %vm589_vm13 = vweird.f32 %v1624_v46  ;;  %vm1696_vm4 = vmor %vm608_vm5, %vm609_vm12  ;;  %v300_v11 = vld [vmem:[%s2354_s0 + $0xe0] sm:$0xff] }
  0x32   : > { %v1638_v56 = vpop.eup %1270  ;;  %v575_v57 = vmul.f32 0.5, %v574_v48  ;;  %v604_v58 = vmul.f32 %v1616_v27, %v603_v49  ;;  %v563_v59 = vmul.f32 %v1632_v51, %v1563_v13  ;;  %vm569_vm15 = vweird.f32 %v1632_v51  ;;  %vm1710_vm7 = vmor %vm588_vm6, %vm589_vm13  ;;  %v521_v13 = vld [vmem:[%s2356_s2 + $0x8] sm:$0xff] }
  0x33   : > { %v596_v60 = vsub.f32 1.5, %v595_v53  ;;  %v555_v61 = vmul.f32 0.5, %v554_v54  ;;  %v584_v62 = vmul.f32 %v1624_v46, %v583_v55  ;;  %v633_v63 = vmul.f32 %v1638_v56, %v1576_v21  ;;  %vm1725_vm5 = vmor %vm568_vm8, %vm569_vm15  ;;  %v523_v55 = vld [vmem:[%s2356_s2 + $0x18] sm:$0xff] }
  0x34   : > { %v576_v4 = vsub.f32 1.5, %v575_v57  ;;  %v605_v5 = vmul.f32 0.5, %v604_v58  ;;  %v564_v6 = vmul.f32 %v1632_v51, %v563_v59  ;;  %vm639_vm3 = vweird.f32 %v1638_v56 }
  0x35   : > { %v597_v10 = vmul.f32 %v1589_v28, %v596_v60  ;;  %v556_v12 = vsub.f32 1.5, %v555_v61  ;;  %v585_v14 = vmul.f32 0.5, %v584_v62  ;;  %v634_v15 = vmul.f32 %v1638_v56, %v633_v63  ;;  %v1683_v23 = vpop.eup %1272  ;;  %vm1746_vm6 = vmor %vm638_vm11, %vm639_vm3  ;;  %v282_v62 = vld [vmem:[%s2354_s0 + $0x50] sm:$0xff] }
  0x36   : > { %v577_v17 = vmul.f32 %v1594_v30, %v576_v4  ;;  %v606_v19 = vsub.f32 1.5, %v605_v5  ;;  %v565_v22 = vmul.f32 0.5, %v564_v6  ;;  %v483_v21 = vmul.f32 %v1614_v45, %v1614_v45  ;;  %v298_v63 = vld [vmem:[%s2354_s0 + $0xd0] sm:$0xff] }
  0x37   : > { %v601_v24 = vsel %vm1651_vm14, %v1589_v28, %v597_v10  ;;  %v557_v7 = vmul.f32 %v1605_v39, %v556_v12  ;;  %v586_v29 = vsub.f32 1.5, %v585_v14  ;;  %v635_v32 = vmul.f32 0.5, %v634_v15  ;;  %v281_v14 = vld [vmem:[%s2354_s0 + $0x48] sm:$0xff] }
  0x38   : > { %v1700_v33 = vmul.f32 %v601_v24, %v524_v9  ;;  %v581_v28 = vsel %vm1665_vm1, %v1594_v30, %v577_v17  ;;  %v607_v41 = vmul.f32 %v1616_v27, %v606_v19  ;;  %v566_v42 = vsub.f32 1.5, %v565_v22  ;;  %v525_v30 = vld [vmem:[%s2356_s2 + $0x28] sm:$0xff]  ;;  %v402_v9 = vld [vmem:[%s2355_s1 + $0xd0] sm:$0xff] }
  0x39   : > { %v714_v43 = vmul.f32 %v581_v28, %v522_v16  ;;  %v561_v48 = vsel %vm1678_vm2, %v1605_v39, %v557_v7  ;;  %v587_v49 = vmul.f32 %v1624_v46, %v586_v29  ;;  %v636_v53 = vsub.f32 1.5, %v635_v32  ;;  %v286_v7 = vld [vmem:[%s2354_s0 + $0x70] sm:$0xff] }
  0x3a   : > { %830 = vperm.xlu2 %1255, %v1700_v33   ;;  %v1730_v54 = vmul.f32 %v561_v48, %v520_v25  ;;  %v611_v39 = vsel %vm1696_vm4, %v1616_v27, %v607_v41  ;;  %v567_v57 = vmul.f32 %v1632_v51, %v566_v42  ;;  %v443_v27 = vadd.f32 %v1603_v37, %v1600_v35  ;;  %v528_v37 = vld [vmem:[%s2356_s2 + $0x40] sm:$0xff]  ;;  %v401_v25 = vld [vmem:[%s2355_s1 + $0xc8] sm:$0xff] }
  0x3b   : > { %820 = vperm.xlu1 %1254, %v714_v43   ;;  %v1753_v59 = vmul.f32 %v714_v43, %v1504_v38  ;;  %v591_v60 = vsel %vm1710_vm7, %v1624_v46, %v587_v49  ;;  %v637_v61 = vmul.f32 %v1638_v56, %v636_v53  ;;  %v1765_v35 = vmul.f32 %v611_v39, %v525_v30  ;;  %v390_v30 = vld [vmem:[%s2355_s1 + $0x70] sm:$0xff] }
  0x3c   : > { %810 = vperm.xlu0 %1253, %v1730_v54   ;;  %v571_v38 = vsel %vm1725_vm5, %v1632_v51, %v567_v57  ;;  %v623_v46 = vmul.f32 %v1683_v23, %v1611_v20  ;;  %vm628_vm8 = vweird.f32 %v1611_v20  ;;  %v1782_v4 = vmul.f32 %v591_v60, %v523_v55  ;;  %v406_v49 = vld [vmem:[%s2355_s1 + $0xf0] sm:$0xff]  ;;  %v527_v57 = vld [vmem:[%s2356_s2 + $0x38] sm:$0xff] }
  0x3d   : > { %v1784_v51 = vmul.f32 %v571_v38, %v521_v13  ;;  %v641_v5 = vsel %vm1746_vm6, %v1638_v56, %v637_v61  ;;  %v1790_v6 = vadd.f32 1e-05, %v1630_v50  ;;  %vm629_vm9 = vweird.f32 %v1683_v23  ;;  %v297_v50 = vld [vmem:[%s2354_s0 + $0xc8] sm:$0xff] }
  0x3e   : > { %v624_v10 = vmul.f32 %v1683_v23, %v623_v46  ;;  %v467_v2 = vmul.f32 %v443_v27, %v1492_v31  ;;  %v335_v12 = vsel %vm304_vm0, %v282_v62, 0.0  ;;  %v385_v56 = vld [vmem:[%s2355_s1 + $0x48] sm:$0xff]  ;;  %v1808_v15 = vmul.f32 %v641_v5, %v528_v37  ;;  %vm1841_vm10 = vmor %vm628_vm8, %vm629_vm9 }
  0x3f   : > { %1274 = vrsqrt.f32 %v1790_v6  ;;  %v336_v16 = vsel %vm304_vm0, %v298_v63, 0.0  ;;  %v438_v17 = vsel %vm304_vm0, %v386_v1, 0.0  ;;  %v439_v24 = vsel %vm304_vm0, %v402_v9, 0.0  ;;  %v285_v1 = vld [vmem:[%s2354_s0 + $0x68] sm:$0xff] }
  0x40   : > { %v625_v3 = vmul.f32 0.5, %v624_v10  ;;  %v499_v19 = vsub.f32 %v467_v2, %v483_v21  ;;  %v337_v22 = vadd.f32 %v336_v16, %v335_v12  ;;  %v440_v29 = vadd.f32 %v439_v24, %v438_v17  ;;  %v301_v5 = vld [vmem:[%s2354_s0 + $0xe8] sm:$0xff] }
  0x41   : > { %v332_v32 = vsel %vm304_vm0, %v281_v14, 0.0  ;;  %v333_v28 = vsel %vm304_vm0, %v297_v50, 0.0  ;;  %v435_v41 = vsel %vm304_vm0, %v385_v56, 0.0  ;;  %v436_v39 = vsel %vm304_vm0, %v401_v25, 0.0  ;;  %v389_v9 = vld [vmem:[%s2355_s1 + $0x68] sm:$0xff] }
  0x42   : > { %835 = vperm.xlu2 %1255, %v1765_v35   ;;  %v626_v8 = vsub.f32 1.5, %v625_v3  ;;  %v515_v42 = vmax.f32 %v499_v19, 0.0  ;;  %v1828_v43 = vmul.f32 %v1492_v31, %v337_v22  ;;  %v334_v48 = vadd.f32 %v333_v28, %v332_v32  ;;  %v405_v16 = vld [vmem:[%s2355_s1 + $0xe8] sm:$0xff] }
  0x43   : > { %825 = vperm.xlu1 %1254, %v1782_v4   ;;  %v466_v53 = vmul.f32 %v440_v29, %v1492_v31  ;;  %v347_v55 = vsel %vm304_vm0, %v286_v7, 0.0  ;;  %v348_v13 = vsel %vm304_vm0, %v302_v26, 0.0  ;;  %v437_v21 = vadd.f32 %v436_v39, %v435_v41  ;;  %v284_v29 = vld [vmem:[%s2354_s0 + $0x60] sm:$0xff] }
  0x44   : > { %815 = vperm.xlu0 %1253, %v1784_v51   ;;  %v627_v20 = vmul.f32 %v1683_v23, %v626_v8  ;;  %v1854_v58 = vadd.f32 1e-05, %v515_v42  ;;  %v482_v27 = vmul.f32 %v1828_v43, %v1828_v43  ;;  %v1859_v60 = vmul.f32 %v1492_v31, %v334_v48 }
  0x45   : > { %v1275_v61 = vpop.eup %1274  ;;  %v349_v62 = vadd.f32 %v348_v13, %v347_v55  ;;  %v450_v38 = vsel %vm304_vm0, %v390_v30, 0.0  ;;  %v451_v37 = vsel %vm304_vm0, %v406_v49, 0.0  ;;  %vm618_vm11 = vweird.f32 %v1790_v6  ;;  %v388_v13 = vld [vmem:[%s2355_s1 + $0x60] sm:$0xff] }
  0x46   : > { %v631_v46 = vsel %vm1841_vm10, %v1683_v23, %v627_v20  ;;  %v613_v63 = vmul.f32 %v1275_v61, %v1790_v6  ;;  %1276 = vrsqrt.f32 %v1854_v58  ;;  %vm619_vm12 = vweird.f32 %v1275_v61  ;;  %v526_v6 = vld [vmem:[%s2356_s2 + $0x30] sm:$0xff] }
  0x47   : > { %v1878_v10 = vmul.f32 %v631_v46, %v527_v57  ;;  %v498_v23 = vsub.f32 %v466_v53, %v482_v27  ;;  %v465_v2 = vmul.f32 %v437_v21, %v1492_v31  ;;  %v481_v14 = vmul.f32 %v1859_v60, %v1859_v60  ;;  %vm1909_vm13 = vmor %vm618_vm11, %vm619_vm12  ;;  %v404_v46 = vld [vmem:[%s2355_s1 + $0xe0] sm:$0xff] }
  0x48   : > { %v614_v12 = vmul.f32 %v1275_v61, %v613_v63  ;;  %v1884_v50 = vmul.f32 %v1492_v31, %v349_v62  ;;  %v452_v56 = vadd.f32 %v451_v37, %v450_v38  ;;  %v344_v3 = vsel %vm304_vm0, %v285_v1, 0.0 }
  0x49   : > { %v514_v17 = vmax.f32 %v498_v23, 0.0  ;;  %v345_v19 = vsel %vm304_vm0, %v301_v5, 0.0  ;;  %v447_v22 = vsel %vm304_vm0, %v389_v9, 0.0  ;;  %v497_v25 = vsub.f32 %v465_v2, %v481_v14  ;;  %v287_v14 = vld [vmem:[%s2354_s0 + $0x78] sm:$0xff] }
  0x4a   : > { %850 = vperm.xlu2 %1255, %v1808_v15   ;;  %v615_v24 = vmul.f32 0.5, %v614_v12  ;;  %v470_v7 = vmul.f32 %v452_v56, %v1492_v31  ;;  %v486_v26 = vmul.f32 %v1884_v50, %v1884_v50  ;;  %v346_v28 = vadd.f32 %v345_v19, %v344_v3 }
  0x4b   : > { %845 = vperm.xlu1 %1254, %v1878_v10   ;;  %v1900_v32 = vadd.f32 1e-05, %v514_v17  ;;  %v448_v41 = vsel %vm304_vm0, %v405_v16, 0.0  ;;  %v513_v48 = vmax.f32 %v497_v25, 0.0  ;;  %vm668_vm14 = vweird.f32 %v1854_v58 }
  0x4c   : > { %v1277_v8 = vpop.eup %1276  ;;  %v616_v42 = vsub.f32 1.5, %v615_v24  ;;  %v502_v30 = vsub.f32 %v470_v7, %v486_v26  ;;  %v449_v49 = vadd.f32 %v448_v41, %v447_v22  ;;  %v341_v55 = vsel %vm304_vm0, %v284_v29, 0.0  ;;  %v303_v22 = vld [vmem:[%s2354_s0 + $0xf8] sm:$0xff] }
  0x4d   : > { %v663_v39 = vmul.f32 %v1277_v8, %v1854_v58  ;;  %1278 = vrsqrt.f32 %v1900_v32  ;;  %v1923_v20 = vadd.f32 1e-05, %v513_v48  ;;  %v1926_v21 = vmul.f32 %v1492_v31, %v346_v28  ;;  %v391_v24 = vld [vmem:[%s2355_s1 + $0x78] sm:$0xff] }
  0x4e   : > { %v617_v57 = vmul.f32 %v1275_v61, %v616_v42  ;;  %v518_v27 = vmax.f32 %v502_v30, 0.0  ;;  %vm669_vm15 = vweird.f32 %v1277_v8  ;;  %v469_v38 = vmul.f32 %v449_v49, %v1492_v31  ;;  %v407_v29 = vld [vmem:[%s2355_s1 + $0xf8] sm:$0xff] }
  0x4f   : > { %v664_v62 = vmul.f32 %v1277_v8, %v663_v39  ;;  %v342_v37 = vsel %vm304_vm0, %v300_v11, 0.0  ;;  %1280 = vrsqrt.f32 %v1923_v20  ;;  %v444_v5 = vsel %vm304_vm0, %v388_v13, 0.0  ;;  %vm1961_vm1 = vmor %vm668_vm14, %vm669_vm15  ;;  %v531_v28 = vld [vmem:[%s2356_s2 + $0x58] sm:$0xff] }
  0x50   : > { %v621_v63 = vsel %vm1909_vm13, %v1275_v61, %v617_v57  ;;  %v1936_v1 = vadd.f32 1e-05, %v518_v27  ;;  %v485_v2 = vmul.f32 %v1926_v21, %v1926_v21  ;;  %v343_v12 = vadd.f32 %v342_v37, %v341_v55 }
  0x51   : > { %v1939_v9 = vmul.f32 %v621_v63, %v526_v6  ;;  %v665_v23 = vmul.f32 0.5, %v664_v62  ;;  %v445_v61 = vsel %vm304_vm0, %v404_v46, 0.0  ;;  %vm658_vm2 = vweird.f32 %v1900_v32 }
  0x52   : > { %1282 = vrsqrt.f32 %v1936_v1  ;;  %v501_v17 = vsub.f32 %v469_v38, %v485_v2  ;;  %v1950_v3 = vmul.f32 %v1492_v31, %v343_v12  ;;  %v446_v19 = vadd.f32 %v445_v61, %v444_v5 }
  0x53   : > { %v1279_v56 = vpop.eup %1278  ;;  %840 = vperm.xlu0 %1253, %v1939_v9   ;;  %v666_v16 = vsub.f32 1.5, %v665_v23  ;;  %v350_v26 = vsel %vm304_vm0, %v287_v14, 0.0  ;;  %v351_v11 = vsel %vm304_vm0, %v303_v22, 0.0  ;;  %v453_v53 = vsel %vm304_vm0, %v391_v24, 0.0 }
  0x54   : > { %v653_v7 = vmul.f32 %v1279_v56, %v1900_v32  ;;  %v517_v58 = vmax.f32 %v501_v17, 0.0  ;;  %v468_v42 = vmul.f32 %v446_v19, %v1492_v31  ;;  %v484_v48 = vmul.f32 %v1950_v3, %v1950_v3 }
  0x55   : > { %v667_v41 = vmul.f32 %v1277_v8, %v666_v16  ;;  %v1281_v30 = vpop.eup %1280  ;;  %vm659_vm3 = vweird.f32 %v1279_v56  ;;  %v454_v6 = vsel %vm304_vm0, %v407_v29, 0.0  ;;  %v352_v37 = vadd.f32 %v351_v11, %v350_v26  ;;  %v530_v16 = vld [vmem:[%s2356_s2 + $0x50] sm:$0xff] }
  0x56   : > { %v654_v49 = vmul.f32 %v1279_v56, %v653_v7  ;;  %v643_v55 = vmul.f32 %v1281_v30, %v1923_v20  ;;  %v549_v13 = vadd.f32 1e-05, %v517_v58  ;;  %v500_v38 = vsub.f32 %v468_v42, %v484_v48  ;;  %vm1994_vm0 = vmor %vm658_vm2, %vm659_vm3 }
  0x57   : > { %v671_v39 = vsel %vm1961_vm1, %v1277_v8, %v667_v41  ;;  %vm648_vm4 = vweird.f32 %v1923_v20  ;;  %v1989_v23 = vmul.f32 %v1492_v31, %v352_v37  ;;  %vm649_vm7 = vweird.f32 %v1281_v30  ;;  %v534_v20 = vld [vmem:[%s2356_s2 + $0x70] sm:$0xff] }
  0x58   : > { %v1283_v57 = vpop.eup %1282  ;;  %v1983_v27 = vmul.f32 %v671_v39, %v531_v28  ;;  %v655_v62 = vmul.f32 0.5, %v654_v49  ;;  %v644_v46 = vmul.f32 %v1281_v30, %v643_v55  ;;  %1284 = vrsqrt.f32 %v549_v13  ;;  %vm650_vm8 = vmor %vm648_vm4, %vm649_vm7  ;;  %v529_v28 = vld [vmem:[%s2356_s2 + $0x48] sm:$0xff] }
  0x59   : > { %v693_v63 = vmul.f32 %v1283_v57, %v1936_v1  ;;  %v516_v8 = vmax.f32 %v500_v38, 0.0  ;;  %v455_v61 = vadd.f32 %v454_v6, %v453_v53  ;;  %vm698_vm5 = vweird.f32 %v1936_v1 }
  0x5a   : > { %865 = vperm.xlu2 %1255, %v1983_v27   ;;  %v656_v5 = vsub.f32 1.5, %v655_v62  ;;  %v645_v12 = vmul.f32 0.5, %v644_v46  ;;  %v487_v22 = vmul.f32 %v1989_v23, %v1989_v23  ;;  %vm699_vm6 = vweird.f32 %v1283_v57 }
  0x5b   : > { %v694_v14 = vmul.f32 %v1283_v57, %v693_v63  ;;  %v548_v19 = vadd.f32 1e-05, %v516_v8  ;;  %v471_v25 = vmul.f32 %v455_v61, %v1492_v31  ;;  %vm700_vm9 = vmor %vm698_vm5, %vm699_vm6  ;;  %vm688_vm10 = vweird.f32 %v549_v13  ;;  %v533_v63 = vld [vmem:[%s2356_s2 + $0x68] sm:$0xff] }
  0x5c   : > { %v657_v17 = vmul.f32 %v1279_v56, %v656_v5  ;;  %v646_v32 = vsub.f32 1.5, %v645_v12  ;;  %v745_v37 = vmul.f32 %v1784_v51, %v1528_v47  ;;  %v744_v51 = vmul.f32 %v1730_v54, %v1508_v40  ;;  %v732_v40 = vld [vmem:[%s2357_s3 + $0x20] sm:$0xff] }
  0x5d   : > { %v695_v24 = vmul.f32 0.5, %v694_v14  ;;  %1286 = vrsqrt.f32 %v548_v19  ;;  %v503_v42 = vsub.f32 %v471_v25, %v487_v22  ;;  %vm678_vm13 = vweird.f32 %v548_v19 }
  0x5e   : > { %v661_v7 = vsel %vm1994_vm0, %v1279_v56, %v657_v17  ;;  %v1285_v26 = vpop.eup %1284  ;;  %v647_v41 = vmul.f32 %v1281_v30, %v646_v32  ;;  %v728_v32 = vld [vmem:[%s2357_s3] sm:$0xff] }
  0x5f   : > { %v2009_v29 = vmul.f32 %v661_v7, %v530_v16  ;;  %v696_v58 = vsub.f32 1.5, %v695_v24  ;;  %v683_v31 = vmul.f32 %v1285_v26, %v549_v13  ;;  %v519_v49 = vmax.f32 %v503_v42, 0.0  ;;  %v532_v16 = vld [vmem:[%s2356_s2 + $0x60] sm:$0xff]  ;;  %v731_v42 = vld [vmem:[%s2357_s3 + $0x18] sm:$0xff] }
  0x60   : > { %v651_v56 = vsel %vm650_vm8, %v1281_v30, %v647_v41  ;;  %vm689_vm11 = vweird.f32 %v1285_v26  ;;  %v760_v7 = vsub.f32 %v728_v32, %v744_v51  ;;  %v747_v41 = vmul.f32 %v1782_v4, %v1520_v34  ;;  %v730_v34 = vld [vmem:[%s2357_s3 + $0x10] sm:$0xff] }
  0x61   : > { %860 = vperm.xlu1 %1254, %v2009_v29   ;;  %v697_v48 = vmul.f32 %v1283_v57, %v696_v58  ;;  %v2020_v11 = vmul.f32 %v651_v56, %v529_v28  ;;  %v684_v53 = vmul.f32 %v1285_v26, %v683_v31  ;;  %v551_v55 = vadd.f32 1e-05, %v519_v49  ;;  %vm690_vm12 = vmor %vm688_vm10, %vm689_vm11  ;;  %v778_v51 = vld [vmem:[%s2137_s18 + $0x10] sm:$0xff] }
  0x62   : > { %v751_v31 = vmul.f32 %v1878_v10, %v1542_v0  ;;  %v750_v4 = vmul.f32 %v1939_v9, %v1572_v18  ;;  %v734_v0 = vld [vmem:[%s2357_s3 + $0x30] sm:$0xff]  ;;  %v754_v10 = vmul.f32 %v2009_v29, %v1828_v43  ;;  %v737_v43 = vld [vmem:[%s2357_s3 + $0x48] sm:$0xff] }
  0x63   : > { %v701_v39 = vsel %vm700_vm9, %v1283_v57, %v697_v48  ;;  %v1287_v6 = vpop.eup %1286  ;;  %855 = vperm.xlu0 %1253, %v2020_v11   ;;  %v685_v62 = vmul.f32 0.5, %v684_v53  ;;  %1288 = vrsqrt.f32 %v551_v55  ;;  %v729_v57 = vld [vmem:[%s2357_s3 + $0x8] sm:$0xff]  ;;  %vm708_vm1 = vweird.f32 %v551_v55  ;;  %v1034_v32 = vld [vmem:[%s2145_s20 + $0x10] sm:$0xff] }
  0x64   : > { %v2023_v1 = vmul.f32 %v701_v39, %v534_v20  ;;  %v673_v30 = vmul.f32 %v1287_v6, %v548_v19  ;;  %vm679_vm14 = vweird.f32 %v1287_v6  ;;  %v761_v2 = vsub.f32 %v729_v57, %v745_v37  ;;  %v735_v20 = vld [vmem:[%s2357_s3 + $0x38] sm:$0xff]  ;;  %v738_v39 = vld [vmem:[%s2357_s3 + $0x50] sm:$0xff] }
  0x65   : > { %v686_v38 = vsub.f32 1.5, %v685_v62  ;;  %vm680_vm15 = vmor %vm678_vm13, %vm679_vm14  ;;  %v748_v19 = vmul.f32 %v1700_v33, %v1498_v36  ;;  %v535_v36 = vld [vmem:[%s2356_s2 + $0x78] sm:$0xff]  ;;  %v763_v48 = vsub.f32 %v731_v42, %v747_v41  ;;  %v767_v49 = vsub.f32 %v735_v20, %v751_v31  ;;  %v2164_v31 = vld [vmem:[%s2137_s18 + $0xd0] sm:$0xff] }
  0x66   : > { %880 = vperm.xlu2 %1255, %v2023_v1   ;;  %v674_v46 = vmul.f32 %v1287_v6, %v673_v30  ;;  %v762_v53 = vsub.f32 %v730_v34, %v1753_v59  ;;  %v770_v18 = vsub.f32 %v738_v39, %v754_v10  ;;  %v733_v59 = vld [vmem:[%s2357_s3 + $0x28] sm:$0xff]  ;;  %v753_v9 = vmul.f32 %v2020_v11, %v1859_v60  ;;  %v736_v60 = vld [vmem:[%s2357_s3 + $0x40] sm:$0xff] }
  0x67   : > { %v687_v13 = vmul.f32 %v1285_v26, %v686_v38  ;;  %v764_v28 = vsub.f32 %v732_v40, %v748_v19  ;;  %v752_v30 = vmul.f32 %v1808_v15, %v1534_v52  ;;  %v755_v57 = vmul.f32 %v1983_v27, %v1614_v45  ;;  %v739_v52 = vld [vmem:[%s2357_s3 + $0x58] sm:$0xff]  ;;  %v742_v27 = vld [vmem:[%s2357_s3 + $0x70] sm:$0xff]  ;;  %v2170_v20 = vld [vmem:[%s2137_s18 + $0xc0] sm:$0xff] }
  0x68   : > { %v675_v5 = vmul.f32 0.5, %v674_v46  ;;  %v758_v45 = vmul.f32 %v2023_v1, %v1884_v50  ;;  %v2179_v34 = vld [vmem:[%s2137_s18 + $0x80] sm:$0xff]  ;;  %v2194_v39 = vld [vmem:[%s2137_s18 + $0x28] sm:$0xff] }
  0x69   : > { %v691_v8 = vsel %vm690_vm12, %v1285_v26, %v687_v13  ;;  %v1289_v12 = vpop.eup %1288  ;;  %v768_v37 = vsub.f32 %v736_v60, %v752_v30  ;;  %v2191_v10 = vld [vmem:[%s2137_s18 + $0x20] sm:$0xff]  ;;  %v791_v60 = vld [vmem:[%s2137_s18 + $0x78] sm:$0xff] }
  0x6a   : > { %v725_v14 = vmul.f32 %v691_v8, %v533_v63  ;;  %v676_v61 = vsub.f32 1.5, %v675_v5  ;;  %v703_v47 = vmul.f32 %v1289_v12, %v551_v55  ;;  %vm709_vm2 = vweird.f32 %v1289_v12  ;;  %v743_v63 = vld [vmem:[%s2357_s3 + $0x78] sm:$0xff] }
  0x6b   : > { %vm710_vm3 = vmor %vm708_vm1, %vm709_vm2  ;;  %v766_v55 = vsub.f32 %v734_v0, %v750_v4  ;;  %v774_v8 = vsub.f32 %v742_v27, %v758_v45  ;;  %v2182_v4 = vld [vmem:[%s2137_s18 + $0x88] sm:$0xff]  ;;  %v2188_v0 = vld [vmem:[%s2137_s18 + $0xb8] sm:$0xff] }
  0x6c   : > { %875 = vperm.xlu1 %1254, %v725_v14   ;;  %v677_v17 = vmul.f32 %v1287_v6, %v676_v61  ;;  %v704_v22 = vmul.f32 %v1289_v12, %v703_v47  ;;  %v757_v29 = vmul.f32 %v725_v14, %v1926_v21  ;;  %v740_v21 = vld [vmem:[%s2357_s3 + $0x60] sm:$0xff] }
  0x6e   : > { %927 = vperm.xlu2 %1255, %v761_v2   ;;  %v681_v24 = vsel %vm680_vm15, %v1287_v6, %v677_v17  ;;  %v705_v25 = vmul.f32 0.5, %v704_v22  ;;  %v749_v6 = vmul.f32 %v1765_v35, %v1512_v44  ;;  %v741_v44 = vld [vmem:[%s2357_s3 + $0x68] sm:$0xff]  ;;  %v769_v35 = vsub.f32 %v737_v43, %v753_v9  ;;  %v2217_v43 = vld [vmem:[%s2137_s18 + $0xf8] sm:$0xff] }
  0x6f   : > { %v724_v54 = vmul.f32 %v681_v24, %v532_v16  ;;  %v773_v38 = vsub.f32 %v741_v44, %v757_v29  ;;  %v779_v16 = vld [vmem:[%s2137_s18 + $0x18] sm:$0xff]  ;;  %v2211_v9 = vld [vmem:[%s2137_s18 + $0xc8] sm:$0xff]  ;;  %v2220_v29 = vld [vmem:[%s2137_s18 + $0x30] sm:$0xff] }
  0x70   : > { %v706_v26 = vsub.f32 1.5, %v705_v25  ;;  %v765_v62 = vsub.f32 %v733_v59, %v749_v6  ;;  %v1035_v24 = vld [vmem:[%s2145_s20 + $0x18] sm:$0xff]  ;;  %v784_v25 = vld [vmem:[%s2137_s18 + $0x40] sm:$0xff]  ;;  %v777_v6 = vld [vmem:[%s2137_s18 + $0x8] sm:$0xff] }
  0x71   : > { %870 = vperm.xlu0 %1253, %v724_v54   ;;  %v756_v11 = vmul.f32 %v724_v54, %v1950_v3  ;;  %v771_v3 = vsub.f32 %v739_v52, %v755_v57  ;;  %v2202_v59 = vld [vmem:[%s2137_s18 + $0xe8] sm:$0xff]  ;;  %v2223_v44 = vld [vmem:[%s2137_s18 + $0x38] sm:$0xff] }
  0x72   : > { %v707_v33 = vmul.f32 %v1289_v12, %v706_v26  ;;  %v2152_v26 = vld [vmem:[%s2137_s18 + $0xa0] sm:$0xff] }
  0x73   : > { %v772_v46 = vsub.f32 %v740_v21, %v756_v11  ;;  %v2228_v11 = vld [vmem:[%s2137_s18 + $0x60] sm:$0xff] }
  0x74   : > { %922 = vperm.xlu1 %1254, %v760_v7   ;;  %v711_v58 = vsel %vm710_vm3, %v1289_v12, %v707_v33  ;;  %v785_v7 = vld [vmem:[%s2137_s18 + $0x48] sm:$0xff]  ;;  %v2161_v33 = vld [vmem:[%s2137_s18 + $0x98] sm:$0xff] }
  0x75   : > { %v727_v56 = vmul.f32 %v711_v58, %v535_v36  ;;  %v2158_v36 = vld [vmem:[%s2137_s18 + $0x90] sm:$0xff] }
  0x76   : > { %942 = vperm.xlu2 %1255, %v764_v28   ;;  %v2155_v28 = vld [vmem:[%s2137_s18 + $0xa8] sm:$0xff] }
  0x77   : > { %v759_v15 = vmul.f32 %v727_v56, %v1989_v23 }
  0x79   : > { %885 = vperm.xlu0 %1253, %v727_v56   ;;  %v775_v5 = vsub.f32 %v743_v63, %v759_v15  ;;  %v2167_v56 = vld [vmem:[%s2137_s18 + $0xd8] sm:$0xff]  ;;  %v1040_v15 = vld [vmem:[%s2145_s20 + $0x40] sm:$0xff] }
  0x7c   : > { %937 = vperm.xlu1 %1254, %v763_v48   ;;  %v2173_v48 = vld [vmem:[%s2137_s18 + $0x50] sm:$0xff] }
  0x7e   : > { %957 = vperm.xlu2 %1255, %v767_v49   ;;  %v2176_v49 = vld [vmem:[%s2137_s18 + $0x58] sm:$0xff] }
  0x81   : > { %932 = vperm.xlu0 %1253, %v762_v53   ;;  %v2185_v53 = vld [vmem:[%s2137_s18 + $0xb0] sm:$0xff] }
  0x84   : > { %952 = vperm.xlu1 %1254, %v766_v55   ;;  %v776_v55 = vld [vmem:[%s2137_s18] sm:$0xff] }
  0x86   : > { %972 = vperm.xlu2 %1255, %v770_v18   ;;  %v2199_v18 = vld [vmem:[%s2137_s18 + $0xe0] sm:$0xff] }
  0x89   : > { %947 = vperm.xlu0 %1253, %v765_v62   ;;  %v2214_v62 = vld [vmem:[%s2137_s18 + $0xf0] sm:$0xff] }
  0x8c   : > { %967 = vperm.xlu1 %1254, %v769_v35   ;;  %v790_v35 = vld [vmem:[%s2137_s18 + $0x70] sm:$0xff] }
  0x8e   : > { %987 = vperm.xlu2 %1255, %v773_v38  }
  0x91   : > { %962 = vperm.xlu0 %1253, %v768_v37   ;;  %v2231_v37 = vld [vmem:[%s2137_s18 + $0x68] sm:$0xff] }
  0x94   : > { %982 = vperm.xlu1 %1254, %v772_v46   ;;  %v2106_v13 = vpop.permute.xlu2 %830 }
  0x95   : > { %v896_v21 = vmul.f32 %v2106_v13, %v784_v25  ;;  %v897_v46 = vmul.f32 %v2106_v13, %v785_v7 }
  0x99   : > { %977 = vperm.xlu0 %1253, %v771_v3   ;;  %v1041_v3 = vld [vmem:[%s2145_s20 + $0x48] sm:$0xff] }
  0x9c   : > { %997 = vperm.xlu1 %1254, %v775_v5   ;;  %v2113_v23 = vpop.permute.xlu2 %835 }
  0xa1   : > { %992 = vperm.xlu0 %1253, %v774_v8  }
  0xa4   : > { %v2115_v2 = vpop.permute.xlu2 %850 }
  0xad   : > { %v2119_v14 = vpop.permute.xlu1 %820 }
  0xae   : > { %v2123_v61 = vpop.permute.xlu0 %810 }
  0xb4   : > { %v2117_v12 = vpop.permute.xlu2 %865 }
  0xb5   : > { %v2131_v1 = vpop.permute.xlu1 %825 }
  0xb6   : > { %v816_v47 = vpop.permute.xlu0 %815 }
  0xb7   : > { %v890_v17 = vmul.f32 %v816_v47, %v778_v51  ;;  %v891_v19 = vmul.f32 %v816_v47, %v779_v16 }
  0xbd   : > { %v846_v41 = vpop.permute.xlu1 %845 }
  0xbe   : > { %v902_v16 = vmul.f32 %v846_v41, %v790_v35  ;;  %v903_v13 = vmul.f32 %v846_v41, %v791_v60  ;;  %v1053_v60 = vld [vmem:[%s2145_s20 + $0xa8] sm:$0xff] }
  0xc0   : > { %v2129_v50 = vpop.permute.xlu2 %880 }
  0xc5   : > { %v2236_v57 = vpop.permute.xlu0 %840 }
  0xc8   : > { %v928_v22 = vpop.permute.xlu2 %927 }
  0xc9   : > { %v1002_v40 = vadd.f32 %v928_v22, %v890_v17  ;;  %v1003_v54 = vadd.f32 %v928_v22, %v891_v19  ;;  %v1046_v19 = vld [vmem:[%s2145_s20 + $0x70] sm:$0xff]  ;;  %v1047_v22 = vld [vmem:[%s2145_s20 + $0x78] sm:$0xff] }
  0xcb   : > { %v1066_v58 = vadd.f32 %v1034_v32, %v1002_v40  ;;  %v1067_v42 = vadd.f32 %v1035_v24, %v1003_v54 }
  0xcd   : > { %v1098_v30 = vmax.f32 %v1066_v58, 0.0  ;;  %v1099_v38 = vmax.f32 %v1067_v42, 0.0 }
  0xcf   : > { %1130 = vst [vmem:[%s2208_s25 + $0x10] sm:$0xff] %v1098_v30 }
  0xd0   : > { %v943_v52 = vpop.permute.xlu2 %942  ;;  %1131 = vst [vmem:[%s2208_s25 + $0x18] sm:$0xff] %v1099_v38  ;;  %v1052_v38 = vld [vmem:[%s2145_s20 + $0xa0] sm:$0xff] }
  0xd1   : > { %v1008_v63 = vadd.f32 %v943_v52, %v896_v21  ;;  %v1009_v5 = vadd.f32 %v943_v52, %v897_v46 }
  0xd3   : > { %v1072_v45 = vadd.f32 %v1040_v15, %v1008_v63  ;;  %v1073_v27 = vadd.f32 %v1041_v3, %v1009_v5  ;;  %v861_v8 = vpop.permute.xlu1 %860  ;;  %v888_v63 = vmul.f32 %v2123_v61, %v776_v55  ;;  %v889_v5 = vmul.f32 %v2123_v61, %v777_v6 }
  0xd4   : > { %v908_v42 = vmul.f32 %v861_v8, %v2152_v26  ;;  %v909_v41 = vmul.f32 %v861_v8, %v2155_v28 }
  0xd5   : > { %v1104_v47 = vmax.f32 %v1072_v45, 0.0  ;;  %v1105_v51 = vmax.f32 %v1073_v27, 0.0  ;;  %v2245_v40 = vpop.permute.xlu0 %855 }
  0xd7   : > { %1136 = vst [vmem:[%s2208_s25 + $0x40] sm:$0xff] %v1104_v47  ;;  %v1032_v47 = vld [vmem:[%s2145_s20] sm:$0xff] }
  0xd8   : > { %v958_v17 = vpop.permute.xlu2 %957  ;;  %1137 = vst [vmem:[%s2208_s25 + $0x48] sm:$0xff] %v1105_v51  ;;  %v1033_v51 = vld [vmem:[%s2145_s20 + $0x8] sm:$0xff] }
  0xd9   : > { %v1014_v32 = vadd.f32 %v958_v17, %v902_v16  ;;  %v1015_v24 = vadd.f32 %v958_v17, %v903_v13 }
  0xdb   : > { %v1078_v54 = vadd.f32 %v1046_v19, %v1014_v32  ;;  %v1079_v25 = vadd.f32 %v1047_v22, %v1015_v24  ;;  %v1058_v19 = vld [vmem:[%s2145_s20 + $0xd0] sm:$0xff]  ;;  %v1059_v22 = vld [vmem:[%s2145_s20 + $0xd8] sm:$0xff] }
  0xdd   : > { %v1110_v7 = vmax.f32 %v1078_v54, 0.0  ;;  %v1111_v58 = vmax.f32 %v1079_v25, 0.0 }
  0xde   : > { %v876_v35 = vpop.permute.xlu1 %875 }
  0xdf   : > { %1142 = vst [vmem:[%s2208_s25 + $0x70] sm:$0xff] %v1110_v7  ;;  %v914_v45 = vmul.f32 %v876_v35, %v2164_v31  ;;  %v915_v27 = vmul.f32 %v876_v35, %v2167_v56 }
  0xe0   : > { %v973_v30 = vpop.permute.xlu2 %972  ;;  %1143 = vst [vmem:[%s2208_s25 + $0x78] sm:$0xff] %v1111_v58 }
  0xe1   : > { %v1020_v21 = vadd.f32 %v973_v30, %v908_v42  ;;  %v1021_v46 = vadd.f32 %v973_v30, %v909_v41  ;;  %v894_v42 = vmul.f32 %v2131_v1, %v2220_v29  ;;  %v895_v41 = vmul.f32 %v2131_v1, %v2223_v44  ;;  %v1038_v30 = vld [vmem:[%s2145_s20 + $0x30] sm:$0xff] }
  0xe2   : > { %v892_v29 = vmul.f32 %v2119_v14, %v2191_v10  ;;  %v893_v1 = vmul.f32 %v2119_v14, %v2194_v39  ;;  %v1044_v39 = vld [vmem:[%s2145_s20 + $0x60] sm:$0xff] }
  0xe3   : > { %v1084_v52 = vadd.f32 %v1052_v38, %v1020_v21  ;;  %v1085_v15 = vadd.f32 %v1053_v60, %v1021_v46  ;;  %v2253_v3 = vpop.permute.xlu0 %870  ;;  %v1039_v38 = vld [vmem:[%s2145_s20 + $0x38] sm:$0xff] }
  0xe5   : > { %v1116_v26 = vmax.f32 %v1084_v52, 0.0  ;;  %v1117_v28 = vmax.f32 %v1085_v15, 0.0  ;;  %v1036_v15 = vld [vmem:[%s2145_s20 + $0x20] sm:$0xff] }
  0xe6   : > { %v923_v8 = vpop.permute.xlu1 %922 }
  0xe7   : > { %1148 = vst [vmem:[%s2208_s25 + $0xa0] sm:$0xff] %v1116_v26  ;;  %v1000_v16 = vadd.f32 %v923_v8, %v888_v63  ;;  %v1001_v13 = vadd.f32 %v923_v8, %v889_v5  ;;  %v1037_v26 = vld [vmem:[%s2145_s20 + $0x28] sm:$0xff]  ;;  %v901_v8 = vmul.f32 %v2236_v57, %v2231_v37  ;;  %v898_v37 = vmul.f32 %v2113_v23, %v2173_v48 }
  0xe8   : > { %1149 = vst [vmem:[%s2208_s25 + $0xa8] sm:$0xff] %v1117_v28  ;;  %v988_v17 = vpop.permute.xlu2 %987  ;;  %v907_v48 = vmul.f32 %v2245_v40, %v2161_v33  ;;  %v904_v33 = vmul.f32 %v2115_v2, %v2179_v34  ;;  %v913_v34 = vmul.f32 %v2253_v3, %v2211_v9  ;;  %v910_v9 = vmul.f32 %v2117_v12, %v2185_v53 }
  0xe9   : > { %v1026_v32 = vadd.f32 %v988_v17, %v914_v45  ;;  %v1027_v55 = vadd.f32 %v988_v17, %v915_v27  ;;  %v1064_v61 = vadd.f32 %v1032_v47, %v1000_v16  ;;  %v1065_v31 = vadd.f32 %v1033_v51, %v1001_v13  ;;  %v1045_v51 = vld [vmem:[%s2145_s20 + $0x68] sm:$0xff] }
  0xea   : > { %v900_v27 = vmul.f32 %v2236_v57, %v2228_v11  ;;  %v899_v57 = vmul.f32 %v2113_v23, %v2176_v49 }
  0xeb   : > { %v1090_v56 = vadd.f32 %v1058_v19, %v1026_v32  ;;  %v1091_v6 = vadd.f32 %v1059_v22, %v1027_v55  ;;  %v2265_v24 = vpop.permute.xlu0 %885  ;;  %v1096_v54 = vmax.f32 %v1064_v61, 0.0  ;;  %v1097_v25 = vmax.f32 %v1065_v31, 0.0  ;;  %v1042_v55 = vld [vmem:[%s2145_s20 + $0x50] sm:$0xff]  ;;  %v1043_v61 = vld [vmem:[%s2145_s20 + $0x58] sm:$0xff] }
  0xec   : > { %v919_v53 = vmul.f32 %v2265_v24, %v2217_v43  ;;  %v916_v43 = vmul.f32 %v2129_v50, %v2199_v18 }
  0xed   : > { %v1122_v7 = vmax.f32 %v1090_v56, 0.0  ;;  %v1123_v58 = vmax.f32 %v1091_v6, 0.0  ;;  %1128 = vst [vmem:[%s2208_s25] sm:$0xff] %v1096_v54 }
  0xee   : > { %1129 = vst [vmem:[%s2208_s25 + $0x8] sm:$0xff] %v1097_v25  ;;  %v938_v35 = vpop.permute.xlu1 %937  ;;  %v906_v25 = vmul.f32 %v2245_v40, %v2158_v36  ;;  %v905_v40 = vmul.f32 %v2115_v2, %v2182_v4 }
  0xef   : > { %1154 = vst [vmem:[%s2208_s25 + $0xd0] sm:$0xff] %v1122_v7  ;;  %v1006_v60 = vadd.f32 %v938_v35, %v894_v42  ;;  %v1007_v21 = vadd.f32 %v938_v35, %v895_v41  ;;  %v1051_v42 = vld [vmem:[%s2145_s20 + $0x98] sm:$0xff] }
  0xf0   : > { %1155 = vst [vmem:[%s2208_s25 + $0xd8] sm:$0xff] %v1123_v58  ;;  %v1050_v58 = vld [vmem:[%s2145_s20 + $0x90] sm:$0xff] }
  0xf1   : > { %v1070_v46 = vadd.f32 %v1038_v30, %v1006_v60  ;;  %v1071_v52 = vadd.f32 %v1039_v38, %v1007_v21 }
  0xf3   : > { %v933_v44 = vpop.permute.xlu0 %932  ;;  %v1102_v28 = vmax.f32 %v1070_v46, 0.0  ;;  %v1103_v63 = vmax.f32 %v1071_v52, 0.0  ;;  %v1048_v46 = vld [vmem:[%s2145_s20 + $0x80] sm:$0xff]  ;;  %v1049_v52 = vld [vmem:[%s2145_s20 + $0x88] sm:$0xff] }
  0xf4   : > { %v1004_v5 = vadd.f32 %v933_v44, %v892_v29  ;;  %v1005_v45 = vadd.f32 %v933_v44, %v893_v1 }
  0xf5   : > { %1134 = vst [vmem:[%s2208_s25 + $0x30] sm:$0xff] %v1102_v28 }
  0xf6   : > { %v1068_v10 = vadd.f32 %v1036_v15, %v1004_v5  ;;  %v1069_v47 = vadd.f32 %v1037_v26, %v1005_v45  ;;  %1135 = vst [vmem:[%s2208_s25 + $0x38] sm:$0xff] %v1103_v63  ;;  %v953_v14 = vpop.permute.xlu1 %952  ;;  %v912_v26 = vmul.f32 %v2253_v3, %v2170_v20  ;;  %v1056_v63 = vld [vmem:[%s2145_s20 + $0xc0] sm:$0xff]  ;;  %v1057_v5 = vld [vmem:[%s2145_s20 + $0xc8] sm:$0xff]  ;;  %v911_v3 = vmul.f32 %v2117_v12, %v2188_v0 }
  0xf7   : > { %v1012_v16 = vadd.f32 %v953_v14, %v900_v27  ;;  %v1013_v13 = vadd.f32 %v953_v14, %v901_v8 }
  0xf8   : > { %v1100_v17 = vmax.f32 %v1068_v10, 0.0  ;;  %v1101_v19 = vmax.f32 %v1069_v47, 0.0 }
  0xf9   : > { %v1076_v11 = vadd.f32 %v1044_v39, %v1012_v16  ;;  %v1077_v22 = vadd.f32 %v1045_v51, %v1013_v13  ;;  %v1054_v39 = vld [vmem:[%s2145_s20 + $0xb0] sm:$0xff]  ;;  %v1055_v51 = vld [vmem:[%s2145_s20 + $0xb8] sm:$0xff] }
  0xfa   : > { %1132 = vst [vmem:[%s2208_s25 + $0x20] sm:$0xff] %v1100_v17 }
  0xfb   : > { %1133 = vst [vmem:[%s2208_s25 + $0x28] sm:$0xff] %v1101_v19  ;;  %v948_v32 = vpop.permute.xlu0 %947  ;;  %v1108_v31 = vmax.f32 %v1076_v11, 0.0  ;;  %v1109_v56 = vmax.f32 %v1077_v22, 0.0  ;;  %v918_v11 = vmul.f32 %v2265_v24, %v2214_v62  ;;  %v917_v24 = vmul.f32 %v2129_v50, %v2202_v59 }
  0xfc   : > { %v1010_v6 = vadd.f32 %v948_v32, %v898_v37  ;;  %v1011_v54 = vadd.f32 %v948_v32, %v899_v57  ;;  %v1062_v37 = vld [vmem:[%s2145_s20 + $0xf0] sm:$0xff]  ;;  %v1063_v57 = vld [vmem:[%s2145_s20 + $0xf8] sm:$0xff] }
  0xfd   : > { %1140 = vst [vmem:[%s2208_s25 + $0x60] sm:$0xff] %v1108_v31 }
  0xfe   : > { %v1074_v23 = vadd.f32 %v1042_v55, %v1010_v6  ;;  %v1075_v49 = vadd.f32 %v1043_v61, %v1011_v54  ;;  %1141 = vst [vmem:[%s2208_s25 + $0x68] sm:$0xff] %v1109_v56  ;;  %v968_v7 = vpop.permute.xlu1 %967  ;;  %v1060_v54 = vld [vmem:[%s2145_s20 + $0xe0] sm:$0xff] }
  0xff   : > { %v1018_v41 = vadd.f32 %v968_v7, %v906_v25  ;;  %v1019_v35 = vadd.f32 %v968_v7, %v907_v48  ;;  %v1061_v25 = vld [vmem:[%s2145_s20 + $0xe8] sm:$0xff] }
 0x100   : > { %v1106_v30 = vmax.f32 %v1074_v23, 0.0  ;;  %v1107_v38 = vmax.f32 %v1075_v49, 0.0 }
 0x101   : > { %v1082_v36 = vadd.f32 %v1050_v58, %v1018_v41  ;;  %v1083_v60 = vadd.f32 %v1051_v42, %v1019_v35 }
 0x102   : > { %1138 = vst [vmem:[%s2208_s25 + $0x50] sm:$0xff] %v1106_v30 }
 0x103   : > { %1139 = vst [vmem:[%s2208_s25 + $0x58] sm:$0xff] %v1107_v38  ;;  %v963_v21 = vpop.permute.xlu0 %962  ;;  %v1114_v29 = vmax.f32 %v1082_v36, 0.0  ;;  %v1115_v1 = vmax.f32 %v1083_v60, 0.0 }
 0x104   : > { %v1016_v44 = vadd.f32 %v963_v21, %v904_v33  ;;  %v1017_v15 = vadd.f32 %v963_v21, %v905_v40 }
 0x105   : > { %1146 = vst [vmem:[%s2208_s25 + $0x90] sm:$0xff] %v1114_v29 }
 0x106   : > { %v1080_v2 = vadd.f32 %v1048_v46, %v1016_v44  ;;  %v1081_v4 = vadd.f32 %v1049_v52, %v1017_v15  ;;  %1147 = vst [vmem:[%s2208_s25 + $0x98] sm:$0xff] %v1115_v1  ;;  %v983_v28 = vpop.permute.xlu1 %982 }
 0x107   : > { %v1024_v45 = vadd.f32 %v983_v28, %v912_v26  ;;  %v1025_v27 = vadd.f32 %v983_v28, %v913_v34 }
 0x108   : > { %v1112_v8 = vmax.f32 %v1080_v2, 0.0  ;;  %v1113_v10 = vmax.f32 %v1081_v4, 0.0 }
 0x109   : > { %v1088_v20 = vadd.f32 %v1056_v63, %v1024_v45  ;;  %v1089_v47 = vadd.f32 %v1057_v5, %v1025_v27 }
 0x10a   : > { %1144 = vst [vmem:[%s2208_s25 + $0x80] sm:$0xff] %v1112_v8 }
 0x10b   : > { %1145 = vst [vmem:[%s2208_s25 + $0x88] sm:$0xff] %v1113_v10  ;;  %v978_v14 = vpop.permute.xlu0 %977  ;;  %v1120_v16 = vmax.f32 %v1088_v20, 0.0  ;;  %v1121_v13 = vmax.f32 %v1089_v47, 0.0 }
 0x10c   : > { %v1022_v17 = vadd.f32 %v978_v14, %v910_v9  ;;  %v1023_v19 = vadd.f32 %v978_v14, %v911_v3 }
 0x10d   : > { %1152 = vst [vmem:[%s2208_s25 + $0xc0] sm:$0xff] %v1120_v16 }
 0x10e   : > { %v1086_v12 = vadd.f32 %v1054_v39, %v1022_v17  ;;  %v1087_v0 = vadd.f32 %v1055_v51, %v1023_v19  ;;  %1153 = vst [vmem:[%s2208_s25 + $0xc8] sm:$0xff] %v1121_v13  ;;  %v998_v22 = vpop.permute.xlu1 %997 }
 0x10f   : > { %v1030_v32 = vadd.f32 %v998_v22, %v918_v11  ;;  %v1031_v55 = vadd.f32 %v998_v22, %v919_v53 }
 0x110   : > { %v1118_v61 = vmax.f32 %v1086_v12, 0.0  ;;  %v1119_v31 = vmax.f32 %v1087_v0, 0.0 }
 0x111   : > { %v1094_v62 = vadd.f32 %v1062_v37, %v1030_v32  ;;  %v1095_v56 = vadd.f32 %v1063_v57, %v1031_v55 }
 0x112   : > { %1150 = vst [vmem:[%s2208_s25 + $0xb0] sm:$0xff] %v1118_v61 }
 0x113   : > { %1151 = vst [vmem:[%s2208_s25 + $0xb8] sm:$0xff] %v1119_v31  ;;  %v993_v6 = vpop.permute.xlu0 %992  ;;  %v1126_v48 = vmax.f32 %v1094_v62, 0.0  ;;  %v1127_v23 = vmax.f32 %v1095_v56, 0.0 }
 0x114   : > { %v1028_v49 = vadd.f32 %v993_v6, %v916_v43  ;;  %v1029_v7 = vadd.f32 %v993_v6, %v917_v24 }
 0x115   : > { %1158 = vst [vmem:[%s2208_s25 + $0xf0] sm:$0xff] %v1126_v48 }
 0x116   : > { %v1092_v58 = vadd.f32 %v1060_v54, %v1028_v49  ;;  %v1093_v42 = vadd.f32 %v1061_v25, %v1029_v7  ;;  %1159 = vst [vmem:[%s2208_s25 + $0xf8] sm:$0xff] %v1127_v23 }
 0x118   : > { %v1124_v41 = vmax.f32 %v1092_v58, 0.0  ;;  %v1125_v18 = vmax.f32 %v1093_v42, 0.0 }
 0x11a   : > { %1156 = vst [vmem:[%s2208_s25 + $0xe0] sm:$0xff] %v1124_v41 }
 0x11b   : > { %1157 = vst [vmem:[%s2208_s25 + $0xe8] sm:$0xff] %v1125_v18 }
 0x11c PF: > { %s16_s21 = sadd.s32 1, %s1296_s21  }
 0x11d   : > { %p13_p4 = scmp.ge.s32.totalorder %s16_s21, 4  }
 0x11f   :  { %15 = sbr.rel (!%p13_p4) target bundleno = 1 (0x1), region = 77 }

// kernel: bottleneck_ibn_forward.6
= control target key start
LH: loop header
LB: loop body
LE: loop exit
PB: predicated region body
PF: predicated region fallthrough
CT: control target
= control target key end

     0   :  { %s1189_s27 = smov 0   ;;  %s1477_s0 = inlined_call_operand.vmem [shape: f32[2,32,1], index: 0, kind: input, shape index: {}]   ;;  %s1478_s1 = inlined_call_operand.vmem [shape: f32[2,32,1], index: 1, kind: input, shape index: {}]   ;;  %s1479_s2 = inlined_call_operand.vmem [shape: f32[32,1], index: 2, kind: input, shape index: {}]   ;;  %s1480_s3 = inlined_call_operand.vmem [shape: f32[32,1], index: 3, kind: input, shape index: {}]   ;;  %s1481_s4 = inlined_call_operand.vmem [shape: f32[2,32,256], index: 4, kind: input, shape index: {}]   ;;  %s1482_s5 = inlined_call_operand.vmem [shape: bf16[128,32], index: 5, kind: input, shape index: {}]   ;;  %s1483_s6 = inlined_call_operand.vmem [shape: f32[2,128,256], index: 6, kind: output, shape index: {0}]   ;;  %s1484_s7 = inlined_call_operand.vmem [shape: f32[2,128,1], index: 7, kind: output, shape index: {1}]   ;;  %s1485_s8 = inlined_call_operand.vmem [shape: f32[2,128,1], index: 8, kind: output, shape index: {2}]  }
   0x1 LB: > { %s1032_s28 = sadd.s32 4294967295, %s1140_s27   ;;  %p1036_p0 = scmp.ge.s32.totalorder %s1140_s27, 1  ;;  %s1140_s27 = sphi %s1189_s27, %s19_s27  }
   0x2   : > { %p267_p1 = scmp.lt.s32.totalorder %s1140_s27, 3 }
   0x4   : > { %p268_p2 = pnand %p1036_p0, %p267_p1 }
   0x5   : > { %p311_p3 = scmp.lt.s32.totalorder (!%p268_p2), %s1032_s28, 1 }
   0x6   : > { %271 = sbr.rel (%p268_p2) target bundleno = 536 (0x218), region = 44 }
   0xb   : > { %v1142_v0 = vmov 0   ;;  %v1143_v1 = vmov 512.0   ;;  %v334_v2 = vld [vmem:[%s1477_s0 + $0x10] sm:$0xff]  ;;  %vm340_vm0 = vcmask 7168   ;;  %v335_v6 = vld [vmem:[%s1477_s0 + $0x18] sm:$0xff]  ;;  %v332_v10 = vld [vmem:[%s1477_s0] sm:$0xff] }
   0xc   : > { %1121 = vset.pattern.permute.xlu0 %v1142_v0  ;;  %1124 = vrcp.f32 %v1143_v1  ;;  %1123 = vset.pattern.permute.xlu1 %v1142_v0  ;;  %v338_v3 = vld [vmem:[%s1477_s0 + $0x30] sm:$0xff]  ;;  %v339_v7 = vld [vmem:[%s1477_s0 + $0x38] sm:$0xff]  ;;  %v336_v11 = vld [vmem:[%s1477_s0 + $0x20] sm:$0xff]  ;;  %v347_v13 = vsel %vm340_vm0, %v334_v2, 0.0  ;;  %v350_v21 = vsel %vm340_vm0, %v335_v6, 0.0  ;;  %v341_v28 = vsel %vm340_vm0, %v332_v10, 0.0 }
   0xd   : > { %1122 = vset.pattern.permute.xlu2 %v1142_v0  ;;  %v366_v4 = vld [vmem:[%s1478_s1 + $0x10] sm:$0xff]  ;;  %v367_v8 = vld [vmem:[%s1478_s1 + $0x18] sm:$0xff]  ;;  %v348_v14 = vsel %vm340_vm0, %v338_v3, 0.0  ;;  %v364_v16 = vld [vmem:[%s1478_s1] sm:$0xff]  ;;  %v351_v25 = vsel %vm340_vm0, %v339_v7, 0.0  ;;  %v342_v30 = vsel %vm340_vm0, %v336_v11, 0.0 }
   0xe   : > { %v370_v5 = vld [vmem:[%s1478_s1 + $0x30] sm:$0xff]  ;;  %v371_v9 = vld [vmem:[%s1478_s1 + $0x38] sm:$0xff]  ;;  %v378_v15 = vsel %vm340_vm0, %v366_v4, 0.0  ;;  %v368_v17 = vld [vmem:[%s1478_s1 + $0x20] sm:$0xff]  ;;  %v381_v26 = vsel %vm340_vm0, %v367_v8, 0.0  ;;  %v372_v31 = vsel %vm340_vm0, %v364_v16, 0.0  ;;  %v349_v37 = vadd.f32 %v348_v14, %v347_v13 }
   0xf   : > { %v333_v18 = vld [vmem:[%s1477_s0 + $0x8] sm:$0xff]  ;;  %v379_v20 = vsel %vm340_vm0, %v370_v5, 0.0  ;;  %v382_v27 = vsel %vm340_vm0, %v371_v9, 0.0  ;;  %v373_v32 = vsel %vm340_vm0, %v368_v17, 0.0  ;;  %v352_v40 = vadd.f32 %v351_v25, %v350_v21  ;;  %s1489_s28 = smov (!%p311_p3, %s1032_s28), 1 }
  0x10   : > { %v337_v22 = vld [vmem:[%s1477_s0 + $0x28] sm:$0xff]  ;;  %v344_v33 = vsel %vm340_vm0, %v333_v18, 0.0  ;;  %v380_v39 = vadd.f32 %v379_v20, %v378_v15  ;;  %v383_v41 = vadd.f32 %v382_v27, %v381_v26  ;;  %v343_v42 = vadd.f32 %v342_v30, %v341_v28  ;;  %v402_v26 = vld [vmem:[%s1479_s2 + $0x10] sm:$0xff]  ;;  %s1095_s15 = sshll.u32 %s1489_s28, 6  ;;  %s1097_s19 = sshll.u32 %s1489_s28, 7 }
  0x11   : > { %v365_v23 = vld [vmem:[%s1478_s1 + $0x8] sm:$0xff]  ;;  %v345_v34 = vsel %vm340_vm0, %v337_v22, 0.0  ;;  %v374_v44 = vadd.f32 %v373_v32, %v372_v31  ;;  %v403_v32 = vld [vmem:[%s1479_s2 + $0x18] sm:$0xff]  ;;  %s315_s18 = scalar_lea.vmem %s1481_s4, %s1095_s15  ;;  %vm596_vm14 = vcmask 261120   ;;  %s1096_s15 = sshll.u32 %s1489_s28, 8 }
  0x12   : > { %v1125_v12 = vpop.eup %1124  ;;  %v369_v24 = vld [vmem:[%s1478_s1 + $0x28] sm:$0xff]  ;;  %v375_v35 = vsel %vm340_vm0, %v365_v23, 0.0  ;;  %v346_v45 = vadd.f32 %v345_v34, %v344_v33  ;;  %v400_v33 = vld [vmem:[%s1479_s2] sm:$0xff]  ;;  %s1403_s22 = scalar_lea.vmem %s1484_s7, %s1097_s19  ;;  %s1410_s25 = scalar_lea.vmem %s1485_s8, %s1097_s19 }
  0x13   : > { %v354_v19 = vmul.f32 512.0, %v1125_v12  ;;  %v376_v36 = vsel %vm340_vm0, %v369_v24, 0.0  ;;  %vm358_vm1 = vweird.f32 %v1125_v12 }
  0x14   : > { %v377_v46 = vadd.f32 %v376_v36, %v375_v35 }
  0x15   : > { %v355_v29 = vsub.f32 1.0, %v354_v19 }
  0x17   : > { %v356_v38 = vmul.f32 %v1125_v12, %v355_v29 }
  0x19   : > { %v357_v43 = vadd.f32 %v1125_v12, %v356_v38  ;;  %v454_v38 = vld [vmem:[%s1480_s3 + $0x10] sm:$0xff] }
  0x1b   : > { %v359_v47 = vsel %vm358_vm1, %v1125_v12, %v357_v43 }
  0x1c   : > { %v1261_v48 = vmul.f32 %v359_v47, %v349_v37  ;;  %v386_v49 = vmul.f32 %v380_v39, %v359_v47  ;;  %v1263_v50 = vmul.f32 %v359_v47, %v352_v40  ;;  %v387_v51 = vmul.f32 %v383_v41, %v359_v47 }
  0x1d   : > { %v1265_v52 = vmul.f32 %v359_v47, %v343_v42  ;;  %v384_v53 = vmul.f32 %v374_v44, %v359_v47  ;;  %v1267_v54 = vmul.f32 %v359_v47, %v346_v45  ;;  %v385_v55 = vmul.f32 %v377_v46, %v359_v47  ;;  %v455_v46 = vld [vmem:[%s1480_s3 + $0x18] sm:$0xff]  ;;  %v401_v47 = vld [vmem:[%s1479_s2 + $0x8] sm:$0xff] }
  0x1e   : > { %v390_v56 = vmul.f32 %v1261_v48, %v1261_v48  ;;  %v391_v57 = vmul.f32 %v1263_v50, %v1263_v50 }
  0x1f   : > { %v388_v58 = vmul.f32 %v1265_v52, %v1265_v52  ;;  %v389_v59 = vmul.f32 %v1267_v54, %v1267_v54 }
  0x20   : > { %v394_v60 = vsub.f32 %v386_v49, %v390_v56  ;;  %v395_v61 = vsub.f32 %v387_v51, %v391_v57  ;;  %v453_v57 = vld [vmem:[%s1480_s3 + $0x8] sm:$0xff] }
  0x21   : > { %v392_v62 = vsub.f32 %v384_v53, %v388_v58  ;;  %v393_v63 = vsub.f32 %v385_v55, %v389_v59  ;;  %v469_v59 = vld [vmem:[%s315_s18 + $0x28] sm:$0xff] }
  0x22   : > { %v398_v0 = vmax.f32 %v394_v60, 0.0  ;;  %v399_v1 = vmax.f32 %v395_v61, 0.0 }
  0x23   : > { %v396_v2 = vmax.f32 %v392_v62, 0.0  ;;  %v397_v3 = vmax.f32 %v393_v63, 0.0 }
  0x24   : > { %v406_v4 = vadd.f32 1e-05, %v398_v0  ;;  %v407_v5 = vadd.f32 1e-05, %v399_v1  ;;  %v470_v1 = vld [vmem:[%s315_s18 + $0x30] sm:$0xff] }
  0x25   : > { %v404_v6 = vadd.f32 1e-05, %v396_v2  ;;  %v405_v7 = vadd.f32 1e-05, %v397_v3  ;;  %v471_v2 = vld [vmem:[%s315_s18 + $0x38] sm:$0xff] }
  0x26   : > { %1126 = vrsqrt.f32 %v406_v4  ;;  %vm434_vm2 = vweird.f32 %v406_v4  ;;  %vm444_vm4 = vweird.f32 %v407_v5 }
  0x27   : > { %1128 = vrsqrt.f32 %v407_v5  ;;  %vm414_vm6 = vweird.f32 %v404_v6  ;;  %vm424_vm11 = vweird.f32 %v405_v7 }
  0x28   : > { %1130 = vrsqrt.f32 %v404_v6 }
  0x29   : > { %1132 = vrsqrt.f32 %v405_v7 }
  0x2c   : > { %v1127_v8 = vpop.eup %1126 }
  0x2d   : > { %v1129_v9 = vpop.eup %1128  ;;  %v429_v10 = vmul.f32 %v1127_v8, %v406_v4  ;;  %vm435_vm3 = vweird.f32 %v1127_v8 }
  0x2e   : > { %v1131_v11 = vpop.eup %1130  ;;  %v439_v12 = vmul.f32 %v1129_v9, %v407_v5  ;;  %vm445_vm5 = vweird.f32 %v1129_v9  ;;  %vm436_vm8 = vmor %vm434_vm2, %vm435_vm3 }
  0x2f   : > { %v1133_v13 = vpop.eup %1132  ;;  %v430_v14 = vmul.f32 %v1127_v8, %v429_v10  ;;  %v409_v15 = vmul.f32 %v1131_v11, %v404_v6  ;;  %vm415_vm7 = vweird.f32 %v1131_v11  ;;  %vm1280_vm9 = vmor %vm444_vm4, %vm445_vm5  ;;  %v464_v10 = vld [vmem:[%s315_s18] sm:$0xff] }
  0x30   : > { %v440_v16 = vmul.f32 %v1129_v9, %v439_v12  ;;  %v419_v17 = vmul.f32 %v1133_v13, %v405_v7  ;;  %vm416_vm10 = vmor %vm414_vm6, %vm415_vm7  ;;  %vm425_vm12 = vweird.f32 %v1133_v13 }
  0x31   : > { %v431_v18 = vmul.f32 0.5, %v430_v14  ;;  %v410_v19 = vmul.f32 %v1131_v11, %v409_v15  ;;  %vm426_vm13 = vmor %vm424_vm11, %vm425_vm12  ;;  %v466_v15 = vld [vmem:[%s315_s18 + $0x10] sm:$0xff] }
  0x32   : > { %v441_v20 = vmul.f32 0.5, %v440_v16  ;;  %v420_v21 = vmul.f32 %v1133_v13, %v419_v17 }
  0x33   : > { %v432_v22 = vsub.f32 1.5, %v431_v18  ;;  %v411_v23 = vmul.f32 0.5, %v410_v19  ;;  %v467_v18 = vld [vmem:[%s315_s18 + $0x18] sm:$0xff] }
  0x34   : > { %v442_v24 = vsub.f32 1.5, %v441_v20  ;;  %v421_v25 = vmul.f32 0.5, %v420_v21 }
  0x35   : > { %v433_v27 = vmul.f32 %v1127_v8, %v432_v22  ;;  %v412_v29 = vsub.f32 1.5, %v411_v23 }
  0x36   : > { %v443_v30 = vmul.f32 %v1129_v9, %v442_v24  ;;  %v422_v35 = vsub.f32 1.5, %v421_v25 }
  0x37   : > { %v437_v31 = vsel %vm436_vm8, %v1127_v8, %v433_v27  ;;  %v413_v34 = vmul.f32 %v1131_v11, %v412_v29 }
  0x38   : > { %v450_v36 = vmul.f32 %v437_v31, %v402_v26  ;;  %v447_v37 = vsel %vm1280_vm9, %v1129_v9, %v443_v30  ;;  %v423_v43 = vmul.f32 %v1133_v13, %v422_v35 }
  0x39   : > { %v417_v39 = vsel %vm416_vm10, %v1131_v11, %v413_v34  ;;  %v451_v41 = vmul.f32 %v447_v37, %v403_v32  ;;  %v465_v11 = vld [vmem:[%s315_s18 + $0x8] sm:$0xff]  ;;  %v1099_v37 = vld [vmem:[%s1482_s5] sm:$0xff] }
  0x3a   : > { %484 = vperm.xlu0 %1121, %v450_v36   ;;  %v458_v40 = vmul.f32 %v450_v36, %v1261_v48  ;;  %v448_v42 = vmul.f32 %v417_v39, %v400_v33  ;;  %v427_v48 = vsel %vm426_vm13, %v1133_v13, %v423_v43  ;;  %v1100_v39 = vld [vmem:[%s1482_s5 + $0x8] sm:$0xff]  ;;  %v1106_v43 = vld [vmem:[%s1482_s5 + $0x38] sm:$0xff] }
  0x3b   : > { %v459_v45 = vmul.f32 %v451_v41, %v1263_v50  ;;  %v449_v53 = vmul.f32 %v427_v48, %v401_v47  ;;  %v452_v50 = vld [vmem:[%s1480_s3] sm:$0xff] }
  0x3c   : > { %v462_v44 = vsub.f32 %v454_v38, %v458_v40  ;;  %474 = vperm.xlu2 %1122, %v448_v42   ;;  %v456_v51 = vmul.f32 %v448_v42, %v1265_v52  ;;  %v1103_v38 = vld [vmem:[%s1482_s5 + $0x20] sm:$0xff]  ;;  %v1104_v40 = vld [vmem:[%s1482_s5 + $0x28] sm:$0xff]  ;;  %v1105_v42 = vld [vmem:[%s1482_s5 + $0x30] sm:$0xff] }
  0x3d   : > { %v463_v49 = vsub.f32 %v455_v46, %v459_v45  ;;  %v457_v56 = vmul.f32 %v449_v53, %v1267_v54  ;;  %v468_v54 = vld [vmem:[%s315_s18 + $0x20] sm:$0xff]  ;;  %s1365_s18 = scalar_lea.vmem %s1483_s6, %s1096_s15 }
  0x3e   : > { %512 = vperm.xlu1 %1123, %v462_v44   ;;  %v460_v55 = vsub.f32 %v452_v50, %v456_v51  ;;  %v1102_v44 = vld [vmem:[%s1482_s5 + $0x18] sm:$0xff] }
  0x3f   : > { %v461_v58 = vsub.f32 %v453_v57, %v457_v56 }
  0x42   : > { %489 = vperm.xlu0 %1121, %v451_v41   ;;  %v1101_v41 = vld [vmem:[%s1482_s5 + $0x10] sm:$0xff] }
  0x44   : > { %479 = vperm.xlu2 %1122, %v449_v53  }
  0x46   : > { %517 = vperm.xlu1 %1123, %v463_v49  }
  0x4a   : > { %502 = vperm.xlu0 %1121, %v460_v55  }
  0x4e   : > { %507 = vperm.xlu1 %1123, %v461_v58  }
  0x96   : > { %v475_v61 = vpop.permute.xlu2 %474 }
  0x97   : > { %v492_v20 = vmul.f32 %v475_v61, %v464_v10  ;;  %v493_v21 = vmul.f32 %v475_v61, %v465_v11 }
  0x9e   : > { %v480_v14 = vpop.permute.xlu2 %479 }
  0x9f   : > { %v494_v24 = vmul.f32 %v480_v14, %v466_v15  ;;  %v495_v25 = vmul.f32 %v480_v14, %v467_v18 }
  0xac   : > { %v485_v52 = vpop.permute.xlu0 %484 }
  0xad   : > { %v496_v62 = vmul.f32 %v485_v52, %v468_v54  ;;  %v497_v63 = vmul.f32 %v485_v52, %v469_v59 }
  0xb0   : > { %v513_v60 = vpop.permute.xlu1 %512 }
  0xb1   : > { %v524_v3 = vadd.f32 %v513_v60, %v496_v62  ;;  %v525_v4 = vadd.f32 %v513_v60, %v497_v63 }
  0xb3   : > { %v532_v12 = vmax.f32 %v524_v3, 0.0  ;;  %v533_v13 = vmax.f32 %v525_v4, 0.0 }
  0xb4   : > { %v490_v0 = vpop.permute.xlu0 %489 }
  0xb5   : > { %v498_v5 = vmul.f32 %v490_v0, %v470_v1  ;;  %v499_v6 = vmul.f32 %v490_v0, %v471_v2 }
  0xb8   : > { %v518_v7 = vpop.permute.xlu1 %517 }
  0xb9   : > { %v526_v8 = vadd.f32 %v518_v7, %v498_v5  ;;  %v527_v9 = vadd.f32 %v518_v7, %v499_v6 }
  0xbb   : > { %v534_v16 = vmax.f32 %v526_v8, 0.0  ;;  %v535_v17 = vmax.f32 %v527_v9, 0.0 }
  0xbc   : > { %v503_v19 = vpop.permute.xlu0 %502 }
  0xbd   : > { %v538_v22 = vpack.c.bf16 %v534_v16, %v532_v12  ;;  %v539_v23 = vpack.c.bf16 %v535_v17, %v533_v13  ;;  %v520_v26 = vadd.f32 %v503_v19, %v492_v20  ;;  %v521_v27 = vadd.f32 %v503_v19, %v493_v21 }
  0xbf   : > { %627 = vmatpush.bf16.msra.mxu0 %v538_v22  ;;  %1107 = vmatpush.bf16.msra.mxu2 %v538_v22  ;;  %v528_v31 = vmax.f32 %v520_v26, 0.0  ;;  %v529_v32 = vmax.f32 %v521_v27, 0.0 }
  0xc0   : > { %676 = vmatpush.bf16.msra.mxu1 %v539_v23  ;;  %1109 = vmatpush.bf16.msra.mxu3 %v539_v23  ;;  %v508_v28 = vpop.permute.xlu1 %507 }
  0xc1   : > { %v522_v29 = vadd.f32 %v508_v28, %v494_v24  ;;  %v523_v30 = vadd.f32 %v508_v28, %v495_v25 }
  0xc3   : > { %v530_v33 = vmax.f32 %v522_v29, 0.0  ;;  %v531_v34 = vmax.f32 %v523_v30, 0.0 }
  0xc5   : > { %v536_v35 = vpack.c.bf16 %v530_v33, %v528_v31  ;;  %v537_v36 = vpack.c.bf16 %v531_v34, %v529_v32 }
  0xc7   : > { %628 = vmatpush.bf16.msra.mxu0 %v536_v35  ;;  %1108 = vmatpush.bf16.msra.mxu2 %v536_v35 }
  0xc8   : > { %677 = vmatpush.bf16.msra.mxu1 %v537_v36  ;;  %1110 = vmatpush.bf16.msra.mxu3 %v537_v36 }
  0xca   : > { %1077 = vmatmul.msk.bf16.vlgmr.msra.gmra.mxu0 %vm596_vm14, %v1099_v37  ;;  %1081 = vmatmul.msk.bf16.vlgmr.msra.gmra.mxu2 %vm596_vm14, %v1103_v38 }
  0xcb   : > { %1085 = vmatmul.msk.bf16.vlgmr.msra.gmra.mxu1 %vm596_vm14, %v1099_v37  ;;  %1089 = vmatmul.msk.bf16.vlgmr.msra.gmra.mxu3 %vm596_vm14, %v1103_v38 }
  0xda   : > { %1078 = vmatmul.msk.bf16.gmra.mxu0 %vm596_vm14, %v1100_v39  ;;  %1082 = vmatmul.msk.bf16.gmra.mxu2 %vm596_vm14, %v1104_v40 }
  0xdb   : > { %1086 = vmatmul.msk.bf16.gmra.mxu1 %vm596_vm14, %v1100_v39  ;;  %1090 = vmatmul.msk.bf16.gmra.mxu3 %vm596_vm14, %v1104_v40 }
  0xea   : > { %1079 = vmatmul.msk.bf16.gmra.mxu0 %vm596_vm14, %v1101_v41  ;;  %1083 = vmatmul.msk.bf16.gmra.mxu2 %vm596_vm14, %v1105_v42 }
  0xeb   : > { %1087 = vmatmul.msk.bf16.gmra.mxu1 %vm596_vm14, %v1101_v41  ;;  %1091 = vmatmul.msk.bf16.gmra.mxu3 %vm596_vm14, %v1105_v42 }
  0xfa   : > { %1084 = vmatmul.msk.bf16.gmra.mxu2 %vm596_vm14, %v1106_v43  ;;  %1080 = vmatmul.msk.bf16.gmra.mxu0 %vm596_vm14, %v1102_v44 }
  0xfb   : > { %1092 = vmatmul.msk.bf16.gmra.mxu3 %vm596_vm14, %v1106_v43  ;;  %1088 = vmatmul.msk.bf16.gmra.mxu1 %vm596_vm14, %v1102_v44 }
 0x147   : > { %v630_v45 = vpop.f32.mrf.mxu0 }
 0x148   : > { %719 = vst [vmem:[%s1365_s18] sm:$0xff] %v630_v45  ;;  %v679_v46 = vpop.f32.mrf.mxu1  ;;  %v799_v49 = vmul.f32 %v630_v45, %v630_v45 }
 0x149   : > { %720 = vst [vmem:[%s1365_s18 + $0x8] sm:$0xff] %v679_v46  ;;  %v751_v47 = vadd.f32 %v679_v46, %v630_v45  ;;  %v800_v51 = vmul.f32 %v679_v46, %v679_v46 }
 0x14b   : > { %752 = vadd.xlane.f32.xlu2 %v751_v47  ;;  %v831_v54 = vadd.f32 %v800_v51, %v799_v49 }
 0x14d   : > { %v650_v48 = vpop.f32.mrf.mxu2 }
 0x14e   : > { %735 = vst [vmem:[%s1365_s18 + $0x80] sm:$0xff] %v650_v48  ;;  %v699_v53 = vpop.f32.mrf.mxu3  ;;  %v815_v50 = vmul.f32 %v650_v48, %v650_v48 }
 0x14f   : > { %736 = vst [vmem:[%s1365_s18 + $0x88] sm:$0xff] %v699_v53  ;;  %v632_v55 = vpop.f32.mrf.mxu0  ;;  %v775_v56 = vadd.f32 %v699_v53, %v650_v48  ;;  %v816_v57 = vmul.f32 %v699_v53, %v699_v53 }
 0x150   : > { %721 = vst [vmem:[%s1365_s18 + $0x10] sm:$0xff] %v632_v55  ;;  %v681_v58 = vpop.f32.mrf.mxu1  ;;  %v801_v4 = vmul.f32 %v632_v55, %v632_v55 }
 0x151   : > { %722 = vst [vmem:[%s1365_s18 + $0x18] sm:$0xff] %v681_v58  ;;  %776 = vadd.xlane.f32.xlu0 %v775_v56  ;;  %v855_v52 = vadd.f32 %v816_v57, %v815_v50  ;;  %v754_v63 = vadd.f32 %v681_v58, %v632_v55  ;;  %v802_v5 = vmul.f32 %v681_v58, %v681_v58 }
 0x153   : > { %856 = vadd.xlane.f32.xlu1 %v855_v52  ;;  %832 = vadd.xlane.f32.xlu2 %v831_v54  ;;  %v834_v9 = vadd.f32 %v802_v5, %v801_v4 }
 0x155   : > { %v652_v59 = vpop.f32.mrf.mxu2 }
 0x156   : > { %737 = vst [vmem:[%s1365_s18 + $0x90] sm:$0xff] %v652_v59  ;;  %v701_v60 = vpop.f32.mrf.mxu3  ;;  %v817_v61 = vmul.f32 %v652_v59, %v652_v59 }
 0x157   : > { %738 = vst [vmem:[%s1365_s18 + $0x98] sm:$0xff] %v701_v60  ;;  %v635_v62 = vpop.f32.mrf.mxu0  ;;  %v818_v0 = vmul.f32 %v701_v60, %v701_v60  ;;  %v778_v2 = vadd.f32 %v701_v60, %v652_v59 }
 0x158   : > { %723 = vst [vmem:[%s1365_s18 + $0x20] sm:$0xff] %v635_v62  ;;  %v684_v1 = vpop.f32.mrf.mxu1  ;;  %v803_v16 = vmul.f32 %v635_v62, %v635_v62 }
 0x159   : > { %724 = vst [vmem:[%s1365_s18 + $0x28] sm:$0xff] %v684_v1  ;;  %755 = vadd.xlane.f32.xlu0 %v754_v63  ;;  %v858_v3 = vadd.f32 %v818_v0, %v817_v61  ;;  %v757_v11 = vadd.f32 %v684_v1, %v635_v62  ;;  %v804_v17 = vmul.f32 %v684_v1, %v684_v1 }
 0x15b   : > { %779 = vadd.xlane.f32.xlu1 %v778_v2  ;;  %859 = vadd.xlane.f32.xlu2 %v858_v3  ;;  %v837_v22 = vadd.f32 %v804_v17, %v803_v16 }
 0x15d   : > { %v655_v6 = vpop.f32.mrf.mxu2 }
 0x15e   : > { %739 = vst [vmem:[%s1365_s18 + $0xa0] sm:$0xff] %v655_v6  ;;  %v704_v7 = vpop.f32.mrf.mxu3  ;;  %v819_v13 = vmul.f32 %v655_v6, %v655_v6 }
 0x15f   : > { %740 = vst [vmem:[%s1365_s18 + $0xa8] sm:$0xff] %v704_v7  ;;  %v637_v8 = vpop.f32.mrf.mxu0  ;;  %v781_v10 = vadd.f32 %v704_v7, %v655_v6  ;;  %v820_v14 = vmul.f32 %v704_v7, %v704_v7 }
 0x160   : > { %725 = vst [vmem:[%s1365_s18 + $0x30] sm:$0xff] %v637_v8  ;;  %v686_v12 = vpop.f32.mrf.mxu1  ;;  %v805_v24 = vmul.f32 %v637_v8, %v637_v8 }
 0x161   : > { %726 = vst [vmem:[%s1365_s18 + $0x38] sm:$0xff] %v686_v12  ;;  %835 = vadd.xlane.f32.xlu0 %v834_v9  ;;  %v861_v19 = vadd.f32 %v820_v14, %v819_v13  ;;  %v760_v23 = vadd.f32 %v686_v12, %v637_v8  ;;  %v806_v25 = vmul.f32 %v686_v12, %v686_v12 }
 0x163   : > { %782 = vadd.xlane.f32.xlu2 %v781_v10  ;;  %758 = vadd.xlane.f32.xlu1 %v757_v11  ;;  %v840_v32 = vadd.f32 %v806_v25, %v805_v24 }
 0x165   : > { %v657_v15 = vpop.f32.mrf.mxu2 }
 0x166   : > { %741 = vst [vmem:[%s1365_s18 + $0xb0] sm:$0xff] %v657_v15  ;;  %v706_v18 = vpop.f32.mrf.mxu3  ;;  %v821_v26 = vmul.f32 %v657_v15, %v657_v15 }
 0x167   : > { %742 = vst [vmem:[%s1365_s18 + $0xb8] sm:$0xff] %v706_v18  ;;  %v640_v20 = vpop.f32.mrf.mxu0  ;;  %v822_v27 = vmul.f32 %v706_v18, %v706_v18  ;;  %v784_v30 = vadd.f32 %v706_v18, %v657_v15 }
 0x168   : > { %727 = vst [vmem:[%s1365_s18 + $0x40] sm:$0xff] %v640_v20  ;;  %v689_v21 = vpop.f32.mrf.mxu1  ;;  %v807_v35 = vmul.f32 %v640_v20, %v640_v20 }
 0x169   : > { %862 = vadd.xlane.f32.xlu0 %v861_v19  ;;  %728 = vst [vmem:[%s1365_s18 + $0x48] sm:$0xff] %v689_v21  ;;  %v864_v34 = vadd.f32 %v822_v27, %v821_v26  ;;  %v808_v36 = vmul.f32 %v689_v21, %v689_v21  ;;  %v763_v41 = vadd.f32 %v689_v21, %v640_v20 }
 0x16b   : > { %838 = vadd.xlane.f32.xlu1 %v837_v22  ;;  %761 = vadd.xlane.f32.xlu2 %v760_v23  ;;  %v843_v37 = vadd.f32 %v808_v36, %v807_v35 }
 0x16d   : > { %v660_v28 = vpop.f32.mrf.mxu2 }
 0x16e   : > { %743 = vst [vmem:[%s1365_s18 + $0xc0] sm:$0xff] %v660_v28  ;;  %v709_v29 = vpop.f32.mrf.mxu3  ;;  %v823_v44 = vmul.f32 %v660_v28, %v660_v28 }
 0x16f   : > { %744 = vst [vmem:[%s1365_s18 + $0xc8] sm:$0xff] %v709_v29  ;;  %v642_v31 = vpop.f32.mrf.mxu0  ;;  %v787_v40 = vadd.f32 %v709_v29, %v660_v28  ;;  %v824_v45 = vmul.f32 %v709_v29, %v709_v29 }
 0x170   : > { %729 = vst [vmem:[%s1365_s18 + $0x50] sm:$0xff] %v642_v31  ;;  %v691_v33 = vpop.f32.mrf.mxu1  ;;  %v809_v46 = vmul.f32 %v642_v31, %v642_v31 }
 0x171   : > { %785 = vadd.xlane.f32.xlu0 %v784_v30  ;;  %730 = vst [vmem:[%s1365_s18 + $0x58] sm:$0xff] %v691_v33  ;;  %v810_v47 = vmul.f32 %v691_v33, %v691_v33  ;;  %v766_v51 = vadd.f32 %v691_v33, %v642_v31  ;;  %v867_v53 = vadd.f32 %v824_v45, %v823_v44 }
 0x173   : > { %865 = vadd.xlane.f32.xlu1 %v864_v34  ;;  %841 = vadd.xlane.f32.xlu2 %v840_v32  ;;  %v846_v56 = vadd.f32 %v810_v47, %v809_v46 }
 0x175   : > { %v662_v38 = vpop.f32.mrf.mxu2 }
 0x176   : > { %745 = vst [vmem:[%s1365_s18 + $0xd0] sm:$0xff] %v662_v38  ;;  %v711_v39 = vpop.f32.mrf.mxu3  ;;  %v825_v3 = vmul.f32 %v662_v38, %v662_v38 }
 0x177   : > { %746 = vst [vmem:[%s1365_s18 + $0xd8] sm:$0xff] %v711_v39  ;;  %v645_v42 = vpop.f32.mrf.mxu0  ;;  %v790_v59 = vadd.f32 %v711_v39, %v662_v38  ;;  %v826_v4 = vmul.f32 %v711_v39, %v711_v39 }
 0x178   : > { %731 = vst [vmem:[%s1365_s18 + $0x60] sm:$0xff] %v645_v42  ;;  %v694_v43 = vpop.f32.mrf.mxu1  ;;  %v811_v62 = vmul.f32 %v645_v42, %v645_v42 }
 0x179   : > { %844 = vadd.xlane.f32.xlu0 %v843_v37  ;;  %732 = vst [vmem:[%s1365_s18 + $0x68] sm:$0xff] %v694_v43  ;;  %v769_v54 = vadd.f32 %v694_v43, %v645_v42  ;;  %v812_v63 = vmul.f32 %v694_v43, %v694_v43  ;;  %v870_v7 = vadd.f32 %v826_v4, %v825_v3 }
 0x17b   : > { %788 = vadd.xlane.f32.xlu1 %v787_v40  ;;  %764 = vadd.xlane.f32.xlu2 %v763_v41  ;;  %v849_v1 = vadd.f32 %v812_v63, %v811_v62 }
 0x17d   : > { %v665_v48 = vpop.f32.mrf.mxu2 }
 0x17e   : > { %747 = vst [vmem:[%s1365_s18 + $0xe0] sm:$0xff] %v665_v48  ;;  %v714_v49 = vpop.f32.mrf.mxu3  ;;  %v827_v5 = vmul.f32 %v665_v48, %v665_v48 }
 0x17f   : > { %748 = vst [vmem:[%s1365_s18 + $0xe8] sm:$0xff] %v714_v49  ;;  %v647_v50 = vpop.f32.mrf.mxu0  ;;  %v793_v57 = vadd.f32 %v714_v49, %v665_v48  ;;  %v828_v6 = vmul.f32 %v714_v49, %v714_v49 }
 0x180   : > { %733 = vst [vmem:[%s1365_s18 + $0x70] sm:$0xff] %v647_v50  ;;  %v696_v55 = vpop.f32.mrf.mxu1  ;;  %v813_v60 = vmul.f32 %v647_v50, %v647_v50 }
 0x181   : > { %767 = vadd.xlane.f32.xlu0 %v766_v51  ;;  %734 = vst [vmem:[%s1365_s18 + $0x78] sm:$0xff] %v696_v55  ;;  %v814_v61 = vmul.f32 %v696_v55, %v696_v55  ;;  %v873_v8 = vadd.f32 %v828_v6, %v827_v5  ;;  %v772_v9 = vadd.f32 %v696_v55, %v647_v50 }
 0x183   : > { %868 = vadd.xlane.f32.xlu2 %v867_v53  ;;  %847 = vadd.xlane.f32.xlu1 %v846_v56  ;;  %v852_v0 = vadd.f32 %v814_v61, %v813_v60 }
 0x185   : > { %v667_v58 = vpop.f32.mrf.mxu2 }
 0x186   : > { %749 = vst [vmem:[%s1365_s18 + $0xf0] sm:$0xff] %v667_v58  ;;  %v716_v52 = vpop.f32.mrf.mxu3  ;;  %v829_v10 = vmul.f32 %v667_v58, %v667_v58 }
 0x187   : > { %750 = vst [vmem:[%s1365_s18 + $0xf8] sm:$0xff] %v716_v52  ;;  %v796_v2 = vadd.f32 %v716_v52, %v667_v58  ;;  %v830_v11 = vmul.f32 %v716_v52, %v716_v52 }
 0x189   : > { %794 = vadd.xlane.f32.xlu0 %v793_v57  ;;  %v876_v12 = vadd.f32 %v830_v11, %v829_v10 }
 0x18b   : > { %791 = vadd.xlane.f32.xlu2 %v790_v59  ;;  %770 = vadd.xlane.f32.xlu1 %v769_v54 }
 0x191   : > { %853 = vadd.xlane.f32.xlu0 %v852_v0 }
 0x193   : > { %850 = vadd.xlane.f32.xlu2 %v849_v1  ;;  %797 = vadd.xlane.f32.xlu1 %v796_v2 }
 0x199   : > { %871 = vadd.xlane.f32.xlu0 %v870_v7 }
 0x19b   : > { %874 = vadd.xlane.f32.xlu1 %v873_v8  ;;  %773 = vadd.xlane.f32.xlu2 %v772_v9 }
 0x1a3   : > { %877 = vadd.xlane.f32.xlu2 %v876_v12 }
 0x1be   : > { %v753_v13 = vpop.xlane.xlu2 %752 }
 0x1bf   : > { %879 = vst.msk [vmem:[%s1403_s22] sm:$0xff] %vm340_vm0, %v753_v13 }
 0x1c4   : > { %v777_v14 = vpop.xlane.xlu0 %776 }
 0x1c5   : > { %887 = vst.msk [vmem:[%s1403_s22 + $0x40] sm:$0xff] %vm340_vm0, %v777_v14 }
 0x1c6   : > { %v857_v15 = vpop.xlane.xlu1 %856  ;;  %v833_v16 = vpop.xlane.xlu2 %832 }
 0x1c7   : > { %903 = vst.msk [vmem:[%s1410_s25 + $0x40] sm:$0xff] %vm340_vm0, %v857_v15 }
 0x1c8   : > { %895 = vst.msk [vmem:[%s1410_s25] sm:$0xff] %vm340_vm0, %v833_v16 }
 0x1cc   : > { %v756_v17 = vpop.xlane.xlu0 %755 }
 0x1cd   : > { %880 = vst.msk [vmem:[%s1403_s22 + $0x8] sm:$0xff] %vm340_vm0, %v756_v17 }
 0x1ce   : > { %v780_v18 = vpop.xlane.xlu1 %779  ;;  %v860_v19 = vpop.xlane.xlu2 %859 }
 0x1cf   : > { %888 = vst.msk [vmem:[%s1403_s22 + $0x48] sm:$0xff] %vm340_vm0, %v780_v18 }
 0x1d0   : > { %904 = vst.msk [vmem:[%s1410_s25 + $0x48] sm:$0xff] %vm340_vm0, %v860_v19 }
 0x1d4   : > { %v836_v20 = vpop.xlane.xlu0 %835 }
 0x1d5   : > { %896 = vst.msk [vmem:[%s1410_s25 + $0x8] sm:$0xff] %vm340_vm0, %v836_v20 }
 0x1d6   : > { %v783_v21 = vpop.xlane.xlu2 %782  ;;  %v759_v22 = vpop.xlane.xlu1 %758 }
 0x1d7   : > { %889 = vst.msk [vmem:[%s1403_s22 + $0x50] sm:$0xff] %vm340_vm0, %v783_v21 }
 0x1d8   : > { %881 = vst.msk [vmem:[%s1403_s22 + $0x10] sm:$0xff] %vm340_vm0, %v759_v22 }
 0x1dc   : > { %v863_v23 = vpop.xlane.xlu0 %862 }
 0x1dd   : > { %905 = vst.msk [vmem:[%s1410_s25 + $0x50] sm:$0xff] %vm340_vm0, %v863_v23 }
 0x1de   : > { %v839_v24 = vpop.xlane.xlu1 %838  ;;  %v762_v25 = vpop.xlane.xlu2 %761 }
 0x1df   : > { %897 = vst.msk [vmem:[%s1410_s25 + $0x10] sm:$0xff] %vm340_vm0, %v839_v24 }
 0x1e0   : > { %882 = vst.msk [vmem:[%s1403_s22 + $0x18] sm:$0xff] %vm340_vm0, %v762_v25 }
 0x1e4   : > { %v786_v26 = vpop.xlane.xlu0 %785 }
 0x1e5   : > { %890 = vst.msk [vmem:[%s1403_s22 + $0x58] sm:$0xff] %vm340_vm0, %v786_v26 }
 0x1e6   : > { %v866_v27 = vpop.xlane.xlu1 %865  ;;  %v842_v28 = vpop.xlane.xlu2 %841 }
 0x1e7   : > { %906 = vst.msk [vmem:[%s1410_s25 + $0x58] sm:$0xff] %vm340_vm0, %v866_v27 }
 0x1e8   : > { %898 = vst.msk [vmem:[%s1410_s25 + $0x18] sm:$0xff] %vm340_vm0, %v842_v28 }
 0x1ec   : > { %v845_v29 = vpop.xlane.xlu0 %844 }
 0x1ed   : > { %899 = vst.msk [vmem:[%s1410_s25 + $0x20] sm:$0xff] %vm340_vm0, %v845_v29 }
 0x1ee   : > { %v789_v30 = vpop.xlane.xlu1 %788  ;;  %v765_v31 = vpop.xlane.xlu2 %764 }
 0x1ef   : > { %891 = vst.msk [vmem:[%s1403_s22 + $0x60] sm:$0xff] %vm340_vm0, %v789_v30 }
 0x1f0   : > { %883 = vst.msk [vmem:[%s1403_s22 + $0x20] sm:$0xff] %vm340_vm0, %v765_v31 }
 0x1f4   : > { %v768_v32 = vpop.xlane.xlu0 %767 }
 0x1f5   : > { %884 = vst.msk [vmem:[%s1403_s22 + $0x28] sm:$0xff] %vm340_vm0, %v768_v32 }
 0x1f6   : > { %v869_v33 = vpop.xlane.xlu2 %868  ;;  %v848_v34 = vpop.xlane.xlu1 %847 }
 0x1f7   : > { %907 = vst.msk [vmem:[%s1410_s25 + $0x60] sm:$0xff] %vm340_vm0, %v869_v33 }
 0x1f8   : > { %900 = vst.msk [vmem:[%s1410_s25 + $0x28] sm:$0xff] %vm340_vm0, %v848_v34 }
 0x1fc   : > { %v795_v35 = vpop.xlane.xlu0 %794 }
 0x1fd   : > { %893 = vst.msk [vmem:[%s1403_s22 + $0x70] sm:$0xff] %vm340_vm0, %v795_v35 }
 0x1fe   : > { %v792_v36 = vpop.xlane.xlu2 %791  ;;  %v771_v37 = vpop.xlane.xlu1 %770 }
 0x1ff   : > { %892 = vst.msk [vmem:[%s1403_s22 + $0x68] sm:$0xff] %vm340_vm0, %v792_v36 }
 0x200   : > { %885 = vst.msk [vmem:[%s1403_s22 + $0x30] sm:$0xff] %vm340_vm0, %v771_v37 }
 0x204   : > { %v854_v38 = vpop.xlane.xlu0 %853 }
 0x205   : > { %902 = vst.msk [vmem:[%s1410_s25 + $0x38] sm:$0xff] %vm340_vm0, %v854_v38 }
 0x206   : > { %v851_v39 = vpop.xlane.xlu2 %850  ;;  %v798_v40 = vpop.xlane.xlu1 %797 }
 0x207   : > { %901 = vst.msk [vmem:[%s1410_s25 + $0x30] sm:$0xff] %vm340_vm0, %v851_v39 }
 0x208   : > { %894 = vst.msk [vmem:[%s1403_s22 + $0x78] sm:$0xff] %vm340_vm0, %v798_v40 }
 0x20c   : > { %v872_v41 = vpop.xlane.xlu0 %871 }
 0x20d   : > { %908 = vst.msk [vmem:[%s1410_s25 + $0x68] sm:$0xff] %vm340_vm0, %v872_v41 }
 0x20e   : > { %v875_v42 = vpop.xlane.xlu1 %874  ;;  %v774_v43 = vpop.xlane.xlu2 %773 }
 0x20f   : > { %909 = vst.msk [vmem:[%s1410_s25 + $0x70] sm:$0xff] %vm340_vm0, %v875_v42 }
 0x210   : > { %886 = vst.msk [vmem:[%s1403_s22 + $0x38] sm:$0xff] %vm340_vm0, %v774_v43 }
 0x216   : > { %v878_v44 = vpop.xlane.xlu2 %877 }
 0x217   : > { %910 = vst.msk [vmem:[%s1410_s25 + $0x78] sm:$0xff] %vm340_vm0, %v878_v44 }
 0x218 PF: > { %s19_s27 = sadd.s32 1, %s1140_s27  }
 0x219   : > { %p16_p4 = scmp.ge.s32.totalorder %s19_s27, 4  }
 0x21b   :  { %18 = sbr.rel (!%p16_p4) target bundleno = 1 (0x1), region = 98 }

</bundles_post_ra>
